<compile_context>
chip_gen: v5e
topology: v5e:2x2
jax: 0.10.0
libtpu: 0.0.40
codegen_flags: <defaults>
</compile_context>

<pallas_src>
import math
import numpy as np
import jax
import jax.numpy as jnp
from jax import lax
from jax.experimental import pallas as pl
from jax.experimental.pallas import tpu as pltpu

_VMEM_LIMIT = 32 * 1024 * 1024   # modest explicit budget (tiles here are tiny)


# ----------------------------- in-kernel helpers -----------------------------

def _row_taps(row_refs, w_ref):
    """Load the R+2 haloed input rows and the 9 weight blocks (all 2-D values)."""
    rows = [r[0, 0] for r in row_refs]                       # each (W+2, C_in) bf16
    w = rows[0].shape[0] - 2
    taps = [[row[dx:dx + w, :] for dx in range(3)] for row in rows]   # (W, C_in) slices
    wblks = [w_ref[k] for k in range(9)]                     # each (C_in, NC) bf16
    return taps, wblks, w


def _conv_row(taps, wblks, t):
    """Phase-folded transposed conv for base row t: 9 accumulated MXU matmuls."""
    acc = None
    for dy in range(3):
        for dx in range(3):
            p = jnp.dot(taps[t + dy][dx], wblks[dy * 3 + dx],
                        preferred_element_type=jnp.float32)   # (W, NC) f32
            acc = p if acc is None else acc + p
    return acc


# ------------------------------- Pallas kernels -------------------------------

def _make_stats_kernel(rows_per_step):
    """Pass 1: per-step centered BatchNorm partial stats; conv output never stored."""
    def kernel(*refs):
        row_refs = refs[:rows_per_step + 2]
        w_ref = refs[rows_per_step + 2]
        mean_ref, m2_ref = refs[rows_per_step + 3], refs[rows_per_step + 4]

        taps, wblks, w = _row_taps(row_refs, w_ref)
        accs = [_conv_row(taps, wblks, t) for t in range(rows_per_step)]

        total = None
        for acc in accs:
            s = jnp.sum(acc, axis=0, keepdims=True)           # (1, NC)
            total = s if total is None else total + s
        mu = total * (1.0 / (rows_per_step * w))              # per-step mean

        m2 = None
        for acc in accs:                                      # centered sum of squares
            d = acc - mu
            part = jnp.sum(d * d, axis=0, keepdims=True)
            m2 = part if m2 is None else m2 + part

        mean_ref[0, 0] = mu                                   # (1, NC) lane rows, no concat
        m2_ref[0, 0] = m2
    return kernel


def _make_norm_kernel(rows_per_step):
    """Pass 2: recompute conv, fuse BatchNorm affine + ReLU, write activations once."""
    def kernel(*refs):
        row_refs = refs[:rows_per_step + 2]
        w_ref, scale_ref, shift_ref, o_ref = refs[rows_per_step + 2:rows_per_step + 6]

        taps, wblks, _ = _row_taps(row_refs, w_ref)
        scale = scale_ref[...]                                # (1, NC)
        shift = shift_ref[...]
        for t in range(rows_per_step):
            acc = _conv_row(taps, wblks, t)                   # (W, NC) f32
            o_ref[0, t] = jnp.maximum(acc * scale + shift, 0.0)
    return kernel


# -------------------------------- forward pass --------------------------------

def up_conv_layer(x, weight, gamma, beta, eps=1e-5, use_dropout=False):
    """Forward of UpConvLayer.

    x:      (N, C_in, H, W)       NCHW, float32
    weight: (C_in, C_out, 4, 4)   nn.ConvTranspose2d weight layout
    gamma, beta: (C_out,)         BatchNorm2d affine params
    """
    N, C_in, H, W = x.shape
    C_out = weight.shape[1]
    OH, OW = 2 * H, 2 * W
    NC = 4 * C_out                       # (py, px) sub-pixel phases folded into lanes
    R = math.gcd(H, 8)                   # base rows handled per grid step
    QB = H // R
    grid = (N, QB)

    # --- padded channels-last input, bf16 (only input-side HBM materialization) ---
    xp = jnp.pad(jnp.transpose(x, (0, 2, 3, 1)).astype(jnp.bfloat16),
                 ((0, 0), (1, 1), (1, 1), (0, 0)))            # (N, H+2, W+2, C_in)

    # --- phase-folded weight matrix (9, C_in, 4*C_out), bf16 ---
    # out[n, co, 2q+py, 2r+px] = sum_{a,b in {0,1}, ci}
    #     xpad[n, q+py+a, r+px+b, ci] * weight[ci, co, 3-py-2a, 3-px-2b]
    wf = weight.astype(jnp.float32)
    wm = jnp.zeros((9, C_in, NC), jnp.float32)
    for py in range(2):
        for px in range(2):
            for da in range(2):
                for db in range(2):
                    dy, dx = py + da, px + db
                    blk = wf[:, :, 3 - py - 2 * da, 3 - px - 2 * db]   # (C_in, C_out)
                    c0 = (py * 2 + px) * C_out
                    wm = wm.at[dy * 3 + dx, :, c0:c0 + C_out].set(blk)
    wm = wm.astype(jnp.bfloat16)
    # TODO(synk): for very large C_in/C_out, tile K (=9*C_in) and NC so the resident
    # weight block stays inside the 32 MiB scoped VMEM budget on v7x.

    # haloed per-row input specs: step (n, qb) reads rows qb*R .. qb*R+R+1 of xp[n]
    row_specs = [
        pl.BlockSpec((1, 1, W + 2, C_in), lambda n, qb, j=j: (n, qb * R + j, 0, 0))
        for j in range(R + 2)
    ]
    w_spec = pl.BlockSpec((9, C_in, NC), lambda n, qb: (0, 0, 0))
    vec_spec = pl.BlockSpec((1, NC), lambda n, qb: (0, 0))
    cparams = pltpu.CompilerParams(
        dimension_semantics=("parallel", "parallel"),
        vmem_limit_bytes=_VMEM_LIMIT)

    # --- pass 1: per-step centered BN partial stats (no y written to HBM) ---
    mu_s, m2_s = pl.pallas_call(
        _make_stats_kernel(R),
        out_shape=(jax.ShapeDtypeStruct((N, QB, 1, NC), jnp.float32),
                   jax.ShapeDtypeStruct((N, QB, 1, NC), jnp.float32)),
        grid_spec=pltpu.PrefetchScalarGridSpec(
            num_scalar_prefetch=0, grid=grid,
            in_specs=row_specs + [w_spec],
            out_specs=(pl.BlockSpec((1, 1, 1, NC), lambda n, qb: (n, qb, 0, 0)),
                       pl.BlockSpec((1, 1, 1, NC), lambda n, qb: (n, qb, 0, 0)))),
        compiler_params=cparams,
    )(*([xp] * (R + 2)), wm)

    # --- BatchNorm2d training statistics: Chan combine of centered per-group stats ---
    cnt_g = R * W                                       # rows per (step, phase) group
    mu_g = mu_s.reshape(-1, C_out)                      # (N*QB*4, C_out), phase-major lanes
    m2_g = m2_s.reshape(-1, C_out)
    mean_c = jnp.mean(mu_g, axis=0)                     # equal group counts
    m2_c = jnp.sum(m2_g, axis=0) + cnt_g * jnp.sum((mu_g - mean_c[None, :]) ** 2, axis=0)
    var_c = m2_c / (mu_g.shape[0] * cnt_g)              # biased variance over N*OH*OW
    scale_c = gamma.astype(jnp.float32) / jnp.sqrt(var_c + eps)
    shift_c = beta.astype(jnp.float32) - mean_c * scale_c
    scale_l = jnp.tile(scale_c, 4).reshape(1, NC)       # per-lane (phase, channel)
    shift_l = jnp.tile(shift_c, 4).reshape(1, NC)

    # --- pass 2: recompute conv, fused BN affine + ReLU, single write of activations ---
    out = pl.pallas_call(
        _make_norm_kernel(R),
        out_shape=jax.ShapeDtypeStruct((N, H, W, NC), jnp.float32),
        grid_spec=pltpu.PrefetchScalarGridSpec(
            num_scalar_prefetch=0, grid=grid,
            in_specs=row_specs + [w_spec, vec_spec, vec_spec],
            out_specs=pl.BlockSpec((1, R, W, NC), lambda n, qb: (n, qb, 0, 0))),
        compiler_params=cparams,
    )(*([xp] * (R + 2)), wm, scale_l, shift_l)

    # --- glue: interleave the 4 phases back into NCHW spatial positions ---
    out = out.reshape(N, H, W, 2, 2, C_out)
    out = jnp.transpose(out, (0, 5, 1, 3, 2, 4)).reshape(N, C_out, OH, OW)
    # TODO(synk): emitting NCHW directly from the pass-2 out_spec would remove this last
    # XLA transpose pass, but needs an in-kernel (W,2,2,C)->(C,2,W,2) relayout.
    # TODO(synk): training-mode nn.Dropout(p=0.5) (use_dropout=True) not implemented;
    # the default use_dropout=False path (identity) is what is exercised here.
    return out


# ------------------------------ pure-JAX reference ------------------------------

def _reference(x, weight, gamma, beta, eps=1e-5):
    w_oihw = jnp.transpose(weight[:, :, ::-1, ::-1], (1, 0, 2, 3))   # (C_out, C_in, 4, 4)
    y = lax.conv_general_dilated(
        x.astype(jnp.float32), w_oihw.astype(jnp.float32),
        window_strides=(1, 1), padding=((2, 2), (2, 2)),
        lhs_dilation=(2, 2),
        dimension_numbers=("NCHW", "OIHW", "NCHW"),
        precision=jax.lax.Precision.HIGHEST)
    mean = y.mean(axis=(0, 2, 3), keepdims=True)
    var = y.var(axis=(0, 2, 3), keepdims=True)
    yn = (y - mean) / jnp.sqrt(var + eps)
    yn = yn * gamma.reshape(1, -1, 1, 1) + beta.reshape(1, -1, 1, 1)
    return jnp.maximum(yn, 0.0)


# ----------------------------------- main -----------------------------------

if __name__ == "__main__":
    N, C_in, H, W = 2, 4, 16, 16
    C_out = 8

    key = jax.random.PRNGKey(0)
    kx, kw, kg, kb = jax.random.split(key, 4)
    x = jax.random.normal(kx, (N, C_in, H, W), jnp.float32)
    weight = jax.random.normal(kw, (C_in, C_out, 4, 4), jnp.float32) * 0.1
    gamma = jax.random.uniform(kg, (C_out,), jnp.float32, 0.5, 1.5)
    beta = jax.random.normal(kb, (C_out,), jnp.float32) * 0.1

    fwd = jax.jit(up_conv_layer)
    out = fwd(x, weight, gamma, beta)
    jax.block_until_ready(out)

    assert out.shape == (N, C_out, 2 * H, 2 * W), out.shape

    ref = _reference(x, weight, gamma, beta)
    # bf16 MXU inputs vs f32 HIGHEST reference; BN re-normalization absorbs most of the
    # quantization, keep a bf16-appropriate tolerance.
    np.testing.assert_allclose(np.asarray(out), np.asarray(ref), rtol=2e-2, atol=2e-2)

    print("KERNEL_OK")
</pallas_src>

<mosaic_0001>
module attributes {stable_mosaic.version = 11 : i64} {
  func.func @kernel(%arg0: i32, %arg1: i32, %arg2: memref<1x1x18x4xbf16, #tpu.memory_space<vmem>>, %arg3: memref<1x1x18x4xbf16, #tpu.memory_space<vmem>>, %arg4: memref<1x1x18x4xbf16, #tpu.memory_space<vmem>>, %arg5: memref<1x1x18x4xbf16, #tpu.memory_space<vmem>>, %arg6: memref<1x1x18x4xbf16, #tpu.memory_space<vmem>>, %arg7: memref<1x1x18x4xbf16, #tpu.memory_space<vmem>>, %arg8: memref<1x1x18x4xbf16, #tpu.memory_space<vmem>>, %arg9: memref<1x1x18x4xbf16, #tpu.memory_space<vmem>>, %arg10: memref<1x1x18x4xbf16, #tpu.memory_space<vmem>>, %arg11: memref<1x1x18x4xbf16, #tpu.memory_space<vmem>>, %arg12: memref<9x4x32xbf16, #tpu.memory_space<vmem>>, %arg13: memref<1x1x1x32xf32, #tpu.memory_space<vmem>>, %arg14: memref<1x1x1x32xf32, #tpu.memory_space<vmem>>) attributes {dimension_semantics = [#tpu.dimension_semantics<parallel>, #tpu.dimension_semantics<parallel>], iteration_bounds = array<i64: 2, 2>, scalar_prefetch = 0 : i64, scratch_operands = 0 : i64, tpu.core_type = #tpu.core_type<tc>, window_params = [{transform_indices = @transform_0, window_bounds = array<i64: 1, 1, 18, 4>}, {transform_indices = @transform_1, window_bounds = array<i64: 1, 1, 18, 4>}, {transform_indices = @transform_2, window_bounds = array<i64: 1, 1, 18, 4>}, {transform_indices = @transform_3, window_bounds = array<i64: 1, 1, 18, 4>}, {transform_indices = @transform_4, window_bounds = array<i64: 1, 1, 18, 4>}, {transform_indices = @transform_5, window_bounds = array<i64: 1, 1, 18, 4>}, {transform_indices = @transform_6, window_bounds = array<i64: 1, 1, 18, 4>}, {transform_indices = @transform_7, window_bounds = array<i64: 1, 1, 18, 4>}, {transform_indices = @transform_8, window_bounds = array<i64: 1, 1, 18, 4>}, {transform_indices = @transform_9, window_bounds = array<i64: 1, 1, 18, 4>}, {pipeline_mode = #tpu.pipeline_mode<synchronous>, transform_indices = @transform_10, window_bounds = array<i64: 9, 4, 32>}, {transform_indices = @transform_11, window_bounds = array<i64: 1, 1, 1, 32>}, {transform_indices = @transform_12, window_bounds = array<i64: 1, 1, 1, 32>}]} {
    %c0 = arith.constant 0 : index
    %c0_0 = arith.constant 0 : index
    %c0_1 = arith.constant 0 : index
    %c0_2 = arith.constant 0 : index
    %0 = vector.load %arg2[%c0, %c0_0, %c0_1, %c0_2] : memref<1x1x18x4xbf16, #tpu.memory_space<vmem>>, vector<1x1x18x4xbf16>
    %1 = vector.shape_cast %0 : vector<1x1x18x4xbf16> to vector<18x4xbf16>
    %c0_3 = arith.constant 0 : index
    %c0_4 = arith.constant 0 : index
    %c0_5 = arith.constant 0 : index
    %c0_6 = arith.constant 0 : index
    %2 = vector.load %arg3[%c0_3, %c0_4, %c0_5, %c0_6] : memref<1x1x18x4xbf16, #tpu.memory_space<vmem>>, vector<1x1x18x4xbf16>
    %3 = vector.shape_cast %2 : vector<1x1x18x4xbf16> to vector<18x4xbf16>
    %c0_7 = arith.constant 0 : index
    %c0_8 = arith.constant 0 : index
    %c0_9 = arith.constant 0 : index
    %c0_10 = arith.constant 0 : index
    %4 = vector.load %arg4[%c0_7, %c0_8, %c0_9, %c0_10] : memref<1x1x18x4xbf16, #tpu.memory_space<vmem>>, vector<1x1x18x4xbf16>
    %5 = vector.shape_cast %4 : vector<1x1x18x4xbf16> to vector<18x4xbf16>
    %c0_11 = arith.constant 0 : index
    %c0_12 = arith.constant 0 : index
    %c0_13 = arith.constant 0 : index
    %c0_14 = arith.constant 0 : index
    %6 = vector.load %arg5[%c0_11, %c0_12, %c0_13, %c0_14] : memref<1x1x18x4xbf16, #tpu.memory_space<vmem>>, vector<1x1x18x4xbf16>
    %7 = vector.shape_cast %6 : vector<1x1x18x4xbf16> to vector<18x4xbf16>
    %c0_15 = arith.constant 0 : index
    %c0_16 = arith.constant 0 : index
    %c0_17 = arith.constant 0 : index
    %c0_18 = arith.constant 0 : index
    %8 = vector.load %arg6[%c0_15, %c0_16, %c0_17, %c0_18] : memref<1x1x18x4xbf16, #tpu.memory_space<vmem>>, vector<1x1x18x4xbf16>
    %9 = vector.shape_cast %8 : vector<1x1x18x4xbf16> to vector<18x4xbf16>
    %c0_19 = arith.constant 0 : index
    %c0_20 = arith.constant 0 : index
    %c0_21 = arith.constant 0 : index
    %c0_22 = arith.constant 0 : index
    %10 = vector.load %arg7[%c0_19, %c0_20, %c0_21, %c0_22] : memref<1x1x18x4xbf16, #tpu.memory_space<vmem>>, vector<1x1x18x4xbf16>
    %11 = vector.shape_cast %10 : vector<1x1x18x4xbf16> to vector<18x4xbf16>
    %c0_23 = arith.constant 0 : index
    %c0_24 = arith.constant 0 : index
    %c0_25 = arith.constant 0 : index
    %c0_26 = arith.constant 0 : index
    %12 = vector.load %arg8[%c0_23, %c0_24, %c0_25, %c0_26] : memref<1x1x18x4xbf16, #tpu.memory_space<vmem>>, vector<1x1x18x4xbf16>
    %13 = vector.shape_cast %12 : vector<1x1x18x4xbf16> to vector<18x4xbf16>
    %c0_27 = arith.constant 0 : index
    %c0_28 = arith.constant 0 : index
    %c0_29 = arith.constant 0 : index
    %c0_30 = arith.constant 0 : index
    %14 = vector.load %arg9[%c0_27, %c0_28, %c0_29, %c0_30] : memref<1x1x18x4xbf16, #tpu.memory_space<vmem>>, vector<1x1x18x4xbf16>
    %15 = vector.shape_cast %14 : vector<1x1x18x4xbf16> to vector<18x4xbf16>
    %c0_31 = arith.constant 0 : index
    %c0_32 = arith.constant 0 : index
    %c0_33 = arith.constant 0 : index
    %c0_34 = arith.constant 0 : index
    %16 = vector.load %arg10[%c0_31, %c0_32, %c0_33, %c0_34] : memref<1x1x18x4xbf16, #tpu.memory_space<vmem>>, vector<1x1x18x4xbf16>
    %17 = vector.shape_cast %16 : vector<1x1x18x4xbf16> to vector<18x4xbf16>
    %c0_35 = arith.constant 0 : index
    %c0_36 = arith.constant 0 : index
    %c0_37 = arith.constant 0 : index
    %c0_38 = arith.constant 0 : index
    %18 = vector.load %arg11[%c0_35, %c0_36, %c0_37, %c0_38] : memref<1x1x18x4xbf16, #tpu.memory_space<vmem>>, vector<1x1x18x4xbf16>
    %19 = vector.shape_cast %18 : vector<1x1x18x4xbf16> to vector<18x4xbf16>
    %20 = vector.extract_strided_slice %1 {offsets = [0, 0], sizes = [16, 4], strides = [1, 1]} : vector<18x4xbf16> to vector<16x4xbf16>
    %21 = vector.extract_strided_slice %1 {offsets = [1, 0], sizes = [16, 4], strides = [1, 1]} : vector<18x4xbf16> to vector<16x4xbf16>
    %22 = vector.extract_strided_slice %1 {offsets = [2, 0], sizes = [16, 4], strides = [1, 1]} : vector<18x4xbf16> to vector<16x4xbf16>
    %23 = vector.extract_strided_slice %3 {offsets = [0, 0], sizes = [16, 4], strides = [1, 1]} : vector<18x4xbf16> to vector<16x4xbf16>
    %24 = vector.extract_strided_slice %3 {offsets = [1, 0], sizes = [16, 4], strides = [1, 1]} : vector<18x4xbf16> to vector<16x4xbf16>
    %25 = vector.extract_strided_slice %3 {offsets = [2, 0], sizes = [16, 4], strides = [1, 1]} : vector<18x4xbf16> to vector<16x4xbf16>
    %26 = vector.extract_strided_slice %5 {offsets = [0, 0], sizes = [16, 4], strides = [1, 1]} : vector<18x4xbf16> to vector<16x4xbf16>
    %27 = vector.extract_strided_slice %5 {offsets = [1, 0], sizes = [16, 4], strides = [1, 1]} : vector<18x4xbf16> to vector<16x4xbf16>
    %28 = vector.extract_strided_slice %5 {offsets = [2, 0], sizes = [16, 4], strides = [1, 1]} : vector<18x4xbf16> to vector<16x4xbf16>
    %29 = vector.extract_strided_slice %7 {offsets = [0, 0], sizes = [16, 4], strides = [1, 1]} : vector<18x4xbf16> to vector<16x4xbf16>
    %30 = vector.extract_strided_slice %7 {offsets = [1, 0], sizes = [16, 4], strides = [1, 1]} : vector<18x4xbf16> to vector<16x4xbf16>
    %31 = vector.extract_strided_slice %7 {offsets = [2, 0], sizes = [16, 4], strides = [1, 1]} : vector<18x4xbf16> to vector<16x4xbf16>
    %32 = vector.extract_strided_slice %9 {offsets = [0, 0], sizes = [16, 4], strides = [1, 1]} : vector<18x4xbf16> to vector<16x4xbf16>
    %33 = vector.extract_strided_slice %9 {offsets = [1, 0], sizes = [16, 4], strides = [1, 1]} : vector<18x4xbf16> to vector<16x4xbf16>
    %34 = vector.extract_strided_slice %9 {offsets = [2, 0], sizes = [16, 4], strides = [1, 1]} : vector<18x4xbf16> to vector<16x4xbf16>
    %35 = vector.extract_strided_slice %11 {offsets = [0, 0], sizes = [16, 4], strides = [1, 1]} : vector<18x4xbf16> to vector<16x4xbf16>
    %36 = vector.extract_strided_slice %11 {offsets = [1, 0], sizes = [16, 4], strides = [1, 1]} : vector<18x4xbf16> to vector<16x4xbf16>
    %37 = vector.extract_strided_slice %11 {offsets = [2, 0], sizes = [16, 4], strides = [1, 1]} : vector<18x4xbf16> to vector<16x4xbf16>
    %38 = vector.extract_strided_slice %13 {offsets = [0, 0], sizes = [16, 4], strides = [1, 1]} : vector<18x4xbf16> to vector<16x4xbf16>
    %39 = vector.extract_strided_slice %13 {offsets = [1, 0], sizes = [16, 4], strides = [1, 1]} : vector<18x4xbf16> to vector<16x4xbf16>
    %40 = vector.extract_strided_slice %13 {offsets = [2, 0], sizes = [16, 4], strides = [1, 1]} : vector<18x4xbf16> to vector<16x4xbf16>
    %41 = vector.extract_strided_slice %15 {offsets = [0, 0], sizes = [16, 4], strides = [1, 1]} : vector<18x4xbf16> to vector<16x4xbf16>
    %42 = vector.extract_strided_slice %15 {offsets = [1, 0], sizes = [16, 4], strides = [1, 1]} : vector<18x4xbf16> to vector<16x4xbf16>
    %43 = vector.extract_strided_slice %15 {offsets = [2, 0], sizes = [16, 4], strides = [1, 1]} : vector<18x4xbf16> to vector<16x4xbf16>
    %44 = vector.extract_strided_slice %17 {offsets = [0, 0], sizes = [16, 4], strides = [1, 1]} : vector<18x4xbf16> to vector<16x4xbf16>
    %45 = vector.extract_strided_slice %17 {offsets = [1, 0], sizes = [16, 4], strides = [1, 1]} : vector<18x4xbf16> to vector<16x4xbf16>
    %46 = vector.extract_strided_slice %17 {offsets = [2, 0], sizes = [16, 4], strides = [1, 1]} : vector<18x4xbf16> to vector<16x4xbf16>
    %47 = vector.extract_strided_slice %19 {offsets = [0, 0], sizes = [16, 4], strides = [1, 1]} : vector<18x4xbf16> to vector<16x4xbf16>
    %48 = vector.extract_strided_slice %19 {offsets = [1, 0], sizes = [16, 4], strides = [1, 1]} : vector<18x4xbf16> to vector<16x4xbf16>
    %49 = vector.extract_strided_slice %19 {offsets = [2, 0], sizes = [16, 4], strides = [1, 1]} : vector<18x4xbf16> to vector<16x4xbf16>
    %c0_39 = arith.constant 0 : index
    %c0_40 = arith.constant 0 : index
    %c0_41 = arith.constant 0 : index
    %50 = vector.load %arg12[%c0_39, %c0_40, %c0_41] : memref<9x4x32xbf16, #tpu.memory_space<vmem>>, vector<1x4x32xbf16>
    %51 = vector.shape_cast %50 : vector<1x4x32xbf16> to vector<4x32xbf16>
    %c1 = arith.constant 1 : index
    %c0_42 = arith.constant 0 : index
    %c0_43 = arith.constant 0 : index
    %52 = vector.load %arg12[%c1, %c0_42, %c0_43] : memref<9x4x32xbf16, #tpu.memory_space<vmem>>, vector<1x4x32xbf16>
    %53 = vector.shape_cast %52 : vector<1x4x32xbf16> to vector<4x32xbf16>
    %c2 = arith.constant 2 : index
    %c0_44 = arith.constant 0 : index
    %c0_45 = arith.constant 0 : index
    %54 = vector.load %arg12[%c2, %c0_44, %c0_45] : memref<9x4x32xbf16, #tpu.memory_space<vmem>>, vector<1x4x32xbf16>
    %55 = vector.shape_cast %54 : vector<1x4x32xbf16> to vector<4x32xbf16>
    %c3 = arith.constant 3 : index
    %c0_46 = arith.constant 0 : index
    %c0_47 = arith.constant 0 : index
    %56 = vector.load %arg12[%c3, %c0_46, %c0_47] : memref<9x4x32xbf16, #tpu.memory_space<vmem>>, vector<1x4x32xbf16>
    %57 = vector.shape_cast %56 : vector<1x4x32xbf16> to vector<4x32xbf16>
    %c4 = arith.constant 4 : index
    %c0_48 = arith.constant 0 : index
    %c0_49 = arith.constant 0 : index
    %58 = vector.load %arg12[%c4, %c0_48, %c0_49] : memref<9x4x32xbf16, #tpu.memory_space<vmem>>, vector<1x4x32xbf16>
    %59 = vector.shape_cast %58 : vector<1x4x32xbf16> to vector<4x32xbf16>
    %c5 = arith.constant 5 : index
    %c0_50 = arith.constant 0 : index
    %c0_51 = arith.constant 0 : index
    %60 = vector.load %arg12[%c5, %c0_50, %c0_51] : memref<9x4x32xbf16, #tpu.memory_space<vmem>>, vector<1x4x32xbf16>
    %61 = vector.shape_cast %60 : vector<1x4x32xbf16> to vector<4x32xbf16>
    %c6 = arith.constant 6 : index
    %c0_52 = arith.constant 0 : index
    %c0_53 = arith.constant 0 : index
    %62 = vector.load %arg12[%c6, %c0_52, %c0_53] : memref<9x4x32xbf16, #tpu.memory_space<vmem>>, vector<1x4x32xbf16>
    %63 = vector.shape_cast %62 : vector<1x4x32xbf16> to vector<4x32xbf16>
    %c7 = arith.constant 7 : index
    %c0_54 = arith.constant 0 : index
    %c0_55 = arith.constant 0 : index
    %64 = vector.load %arg12[%c7, %c0_54, %c0_55] : memref<9x4x32xbf16, #tpu.memory_space<vmem>>, vector<1x4x32xbf16>
    %65 = vector.shape_cast %64 : vector<1x4x32xbf16> to vector<4x32xbf16>
    %c8 = arith.constant 8 : index
    %c0_56 = arith.constant 0 : index
    %c0_57 = arith.constant 0 : index
    %66 = vector.load %arg12[%c8, %c0_56, %c0_57] : memref<9x4x32xbf16, #tpu.memory_space<vmem>>, vector<1x4x32xbf16>
    %67 = vector.shape_cast %66 : vector<1x4x32xbf16> to vector<4x32xbf16>
    %cst = arith.constant dense<0.000000e+00> : vector<16x32xf32>
    %68 = tpu.matmul %20, %51, %cst {dimension_numbers = #tpu.dot_dimension_numbers<[1], [0], [0], [1], [0, 0, 1, 1], [], []>} : vector<16x4xbf16>, vector<4x32xbf16>, vector<16x32xf32> -> vector<16x32xf32>
    %cst_58 = arith.constant dense<0.000000e+00> : vector<16x32xf32>
    %69 = tpu.matmul %21, %53, %cst_58 {dimension_numbers = #tpu.dot_dimension_numbers<[1], [0], [0], [1], [0, 0, 1, 1], [], []>} : vector<16x4xbf16>, vector<4x32xbf16>, vector<16x32xf32> -> vector<16x32xf32>
    %70 = arith.addf %68, %69 : vector<16x32xf32>
    %cst_59 = arith.constant dense<0.000000e+00> : vector<16x32xf32>
    %71 = tpu.matmul %22, %55, %cst_59 {dimension_numbers = #tpu.dot_dimension_numbers<[1], [0], [0], [1], [0, 0, 1, 1], [], []>} : vector<16x4xbf16>, vector<4x32xbf16>, vector<16x32xf32> -> vector<16x32xf32>
    %72 = arith.addf %70, %71 : vector<16x32xf32>
    %cst_60 = arith.constant dense<0.000000e+00> : vector<16x32xf32>
    %73 = tpu.matmul %23, %57, %cst_60 {dimension_numbers = #tpu.dot_dimension_numbers<[1], [0], [0], [1], [0, 0, 1, 1], [], []>} : vector<16x4xbf16>, vector<4x32xbf16>, vector<16x32xf32> -> vector<16x32xf32>
    %74 = arith.addf %72, %73 : vector<16x32xf32>
    %cst_61 = arith.constant dense<0.000000e+00> : vector<16x32xf32>
    %75 = tpu.matmul %24, %59, %cst_61 {dimension_numbers = #tpu.dot_dimension_numbers<[1], [0], [0], [1], [0, 0, 1, 1], [], []>} : vector<16x4xbf16>, vector<4x32xbf16>, vector<16x32xf32> -> vector<16x32xf32>
    %76 = arith.addf %74, %75 : vector<16x32xf32>
    %cst_62 = arith.constant dense<0.000000e+00> : vector<16x32xf32>
    %77 = tpu.matmul %25, %61, %cst_62 {dimension_numbers = #tpu.dot_dimension_numbers<[1], [0], [0], [1], [0, 0, 1, 1], [], []>} : vector<16x4xbf16>, vector<4x32xbf16>, vector<16x32xf32> -> vector<16x32xf32>
    %78 = arith.addf %76, %77 : vector<16x32xf32>
    %cst_63 = arith.constant dense<0.000000e+00> : vector<16x32xf32>
    %79 = tpu.matmul %26, %63, %cst_63 {dimension_numbers = #tpu.dot_dimension_numbers<[1], [0], [0], [1], [0, 0, 1, 1], [], []>} : vector<16x4xbf16>, vector<4x32xbf16>, vector<16x32xf32> -> vector<16x32xf32>
    %80 = arith.addf %78, %79 : vector<16x32xf32>
    %cst_64 = arith.constant dense<0.000000e+00> : vector<16x32xf32>
    %81 = tpu.matmul %27, %65, %cst_64 {dimension_numbers = #tpu.dot_dimension_numbers<[1], [0], [0], [1], [0, 0, 1, 1], [], []>} : vector<16x4xbf16>, vector<4x32xbf16>, vector<16x32xf32> -> vector<16x32xf32>
    %82 = arith.addf %80, %81 : vector<16x32xf32>
    %cst_65 = arith.constant dense<0.000000e+00> : vector<16x32xf32>
    %83 = tpu.matmul %28, %67, %cst_65 {dimension_numbers = #tpu.dot_dimension_numbers<[1], [0], [0], [1], [0, 0, 1, 1], [], []>} : vector<16x4xbf16>, vector<4x32xbf16>, vector<16x32xf32> -> vector<16x32xf32>
    %84 = arith.addf %82, %83 : vector<16x32xf32>
    %cst_66 = arith.constant dense<0.000000e+00> : vector<16x32xf32>
    %85 = tpu.matmul %23, %51, %cst_66 {dimension_numbers = #tpu.dot_dimension_numbers<[1], [0], [0], [1], [0, 0, 1, 1], [], []>} : vector<16x4xbf16>, vector<4x32xbf16>, vector<16x32xf32> -> vector<16x32xf32>
    %cst_67 = arith.constant dense<0.000000e+00> : vector<16x32xf32>
    %86 = tpu.matmul %24, %53, %cst_67 {dimension_numbers = #tpu.dot_dimension_numbers<[1], [0], [0], [1], [0, 0, 1, 1], [], []>} : vector<16x4xbf16>, vector<4x32xbf16>, vector<16x32xf32> -> vector<16x32xf32>
    %87 = arith.addf %85, %86 : vector<16x32xf32>
    %cst_68 = arith.constant dense<0.000000e+00> : vector<16x32xf32>
    %88 = tpu.matmul %25, %55, %cst_68 {dimension_numbers = #tpu.dot_dimension_numbers<[1], [0], [0], [1], [0, 0, 1, 1], [], []>} : vector<16x4xbf16>, vector<4x32xbf16>, vector<16x32xf32> -> vector<16x32xf32>
    %89 = arith.addf %87, %88 : vector<16x32xf32>
    %cst_69 = arith.constant dense<0.000000e+00> : vector<16x32xf32>
    %90 = tpu.matmul %26, %57, %cst_69 {dimension_numbers = #tpu.dot_dimension_numbers<[1], [0], [0], [1], [0, 0, 1, 1], [], []>} : vector<16x4xbf16>, vector<4x32xbf16>, vector<16x32xf32> -> vector<16x32xf32>
    %91 = arith.addf %89, %90 : vector<16x32xf32>
    %cst_70 = arith.constant dense<0.000000e+00> : vector<16x32xf32>
    %92 = tpu.matmul %27, %59, %cst_70 {dimension_numbers = #tpu.dot_dimension_numbers<[1], [0], [0], [1], [0, 0, 1, 1], [], []>} : vector<16x4xbf16>, vector<4x32xbf16>, vector<16x32xf32> -> vector<16x32xf32>
    %93 = arith.addf %91, %92 : vector<16x32xf32>
    %cst_71 = arith.constant dense<0.000000e+00> : vector<16x32xf32>
    %94 = tpu.matmul %28, %61, %cst_71 {dimension_numbers = #tpu.dot_dimension_numbers<[1], [0], [0], [1], [0, 0, 1, 1], [], []>} : vector<16x4xbf16>, vector<4x32xbf16>, vector<16x32xf32> -> vector<16x32xf32>
    %95 = arith.addf %93, %94 : vector<16x32xf32>
    %cst_72 = arith.constant dense<0.000000e+00> : vector<16x32xf32>
    %96 = tpu.matmul %29, %63, %cst_72 {dimension_numbers = #tpu.dot_dimension_numbers<[1], [0], [0], [1], [0, 0, 1, 1], [], []>} : vector<16x4xbf16>, vector<4x32xbf16>, vector<16x32xf32> -> vector<16x32xf32>
    %97 = arith.addf %95, %96 : vector<16x32xf32>
    %cst_73 = arith.constant dense<0.000000e+00> : vector<16x32xf32>
    %98 = tpu.matmul %30, %65, %cst_73 {dimension_numbers = #tpu.dot_dimension_numbers<[1], [0], [0], [1], [0, 0, 1, 1], [], []>} : vector<16x4xbf16>, vector<4x32xbf16>, vector<16x32xf32> -> vector<16x32xf32>
    %99 = arith.addf %97, %98 : vector<16x32xf32>
    %cst_74 = arith.constant dense<0.000000e+00> : vector<16x32xf32>
    %100 = tpu.matmul %31, %67, %cst_74 {dimension_numbers = #tpu.dot_dimension_numbers<[1], [0], [0], [1], [0, 0, 1, 1], [], []>} : vector<16x4xbf16>, vector<4x32xbf16>, vector<16x32xf32> -> vector<16x32xf32>
    %101 = arith.addf %99, %100 : vector<16x32xf32>
    %cst_75 = arith.constant dense<0.000000e+00> : vector<16x32xf32>
    %102 = tpu.matmul %26, %51, %cst_75 {dimension_numbers = #tpu.dot_dimension_numbers<[1], [0], [0], [1], [0, 0, 1, 1], [], []>} : vector<16x4xbf16>, vector<4x32xbf16>, vector<16x32xf32> -> vector<16x32xf32>
    %cst_76 = arith.constant dense<0.000000e+00> : vector<16x32xf32>
    %103 = tpu.matmul %27, %53, %cst_76 {dimension_numbers = #tpu.dot_dimension_numbers<[1], [0], [0], [1], [0, 0, 1, 1], [], []>} : vector<16x4xbf16>, vector<4x32xbf16>, vector<16x32xf32> -> vector<16x32xf32>
    %104 = arith.addf %102, %103 : vector<16x32xf32>
    %cst_77 = arith.constant dense<0.000000e+00> : vector<16x32xf32>
    %105 = tpu.matmul %28, %55, %cst_77 {dimension_numbers = #tpu.dot_dimension_numbers<[1], [0], [0], [1], [0, 0, 1, 1], [], []>} : vector<16x4xbf16>, vector<4x32xbf16>, vector<16x32xf32> -> vector<16x32xf32>
    %106 = arith.addf %104, %105 : vector<16x32xf32>
    %cst_78 = arith.constant dense<0.000000e+00> : vector<16x32xf32>
    %107 = tpu.matmul %29, %57, %cst_78 {dimension_numbers = #tpu.dot_dimension_numbers<[1], [0], [0], [1], [0, 0, 1, 1], [], []>} : vector<16x4xbf16>, vector<4x32xbf16>, vector<16x32xf32> -> vector<16x32xf32>
    %108 = arith.addf %106, %107 : vector<16x32xf32>
    %cst_79 = arith.constant dense<0.000000e+00> : vector<16x32xf32>
    %109 = tpu.matmul %30, %59, %cst_79 {dimension_numbers = #tpu.dot_dimension_numbers<[1], [0], [0], [1], [0, 0, 1, 1], [], []>} : vector<16x4xbf16>, vector<4x32xbf16>, vector<16x32xf32> -> vector<16x32xf32>
    %110 = arith.addf %108, %109 : vector<16x32xf32>
    %cst_80 = arith.constant dense<0.000000e+00> : vector<16x32xf32>
    %111 = tpu.matmul %31, %61, %cst_80 {dimension_numbers = #tpu.dot_dimension_numbers<[1], [0], [0], [1], [0, 0, 1, 1], [], []>} : vector<16x4xbf16>, vector<4x32xbf16>, vector<16x32xf32> -> vector<16x32xf32>
    %112 = arith.addf %110, %111 : vector<16x32xf32>
    %cst_81 = arith.constant dense<0.000000e+00> : vector<16x32xf32>
    %113 = tpu.matmul %32, %63, %cst_81 {dimension_numbers = #tpu.dot_dimension_numbers<[1], [0], [0], [1], [0, 0, 1, 1], [], []>} : vector<16x4xbf16>, vector<4x32xbf16>, vector<16x32xf32> -> vector<16x32xf32>
    %114 = arith.addf %112, %113 : vector<16x32xf32>
    %cst_82 = arith.constant dense<0.000000e+00> : vector<16x32xf32>
    %115 = tpu.matmul %33, %65, %cst_82 {dimension_numbers = #tpu.dot_dimension_numbers<[1], [0], [0], [1], [0, 0, 1, 1], [], []>} : vector<16x4xbf16>, vector<4x32xbf16>, vector<16x32xf32> -> vector<16x32xf32>
    %116 = arith.addf %114, %115 : vector<16x32xf32>
    %cst_83 = arith.constant dense<0.000000e+00> : vector<16x32xf32>
    %117 = tpu.matmul %34, %67, %cst_83 {dimension_numbers = #tpu.dot_dimension_numbers<[1], [0], [0], [1], [0, 0, 1, 1], [], []>} : vector<16x4xbf16>, vector<4x32xbf16>, vector<16x32xf32> -> vector<16x32xf32>
    %118 = arith.addf %116, %117 : vector<16x32xf32>
    %cst_84 = arith.constant dense<0.000000e+00> : vector<16x32xf32>
    %119 = tpu.matmul %29, %51, %cst_84 {dimension_numbers = #tpu.dot_dimension_numbers<[1], [0], [0], [1], [0, 0, 1, 1], [], []>} : vector<16x4xbf16>, vector<4x32xbf16>, vector<16x32xf32> -> vector<16x32xf32>
    %cst_85 = arith.constant dense<0.000000e+00> : vector<16x32xf32>
    %120 = tpu.matmul %30, %53, %cst_85 {dimension_numbers = #tpu.dot_dimension_numbers<[1], [0], [0], [1], [0, 0, 1, 1], [], []>} : vector<16x4xbf16>, vector<4x32xbf16>, vector<16x32xf32> -> vector<16x32xf32>
    %121 = arith.addf %119, %120 : vector<16x32xf32>
    %cst_86 = arith.constant dense<0.000000e+00> : vector<16x32xf32>
    %122 = tpu.matmul %31, %55, %cst_86 {dimension_numbers = #tpu.dot_dimension_numbers<[1], [0], [0], [1], [0, 0, 1, 1], [], []>} : vector<16x4xbf16>, vector<4x32xbf16>, vector<16x32xf32> -> vector<16x32xf32>
    %123 = arith.addf %121, %122 : vector<16x32xf32>
    %cst_87 = arith.constant dense<0.000000e+00> : vector<16x32xf32>
    %124 = tpu.matmul %32, %57, %cst_87 {dimension_numbers = #tpu.dot_dimension_numbers<[1], [0], [0], [1], [0, 0, 1, 1], [], []>} : vector<16x4xbf16>, vector<4x32xbf16>, vector<16x32xf32> -> vector<16x32xf32>
    %125 = arith.addf %123, %124 : vector<16x32xf32>
    %cst_88 = arith.constant dense<0.000000e+00> : vector<16x32xf32>
    %126 = tpu.matmul %33, %59, %cst_88 {dimension_numbers = #tpu.dot_dimension_numbers<[1], [0], [0], [1], [0, 0, 1, 1], [], []>} : vector<16x4xbf16>, vector<4x32xbf16>, vector<16x32xf32> -> vector<16x32xf32>
    %127 = arith.addf %125, %126 : vector<16x32xf32>
    %cst_89 = arith.constant dense<0.000000e+00> : vector<16x32xf32>
    %128 = tpu.matmul %34, %61, %cst_89 {dimension_numbers = #tpu.dot_dimension_numbers<[1], [0], [0], [1], [0, 0, 1, 1], [], []>} : vector<16x4xbf16>, vector<4x32xbf16>, vector<16x32xf32> -> vector<16x32xf32>
    %129 = arith.addf %127, %128 : vector<16x32xf32>
    %cst_90 = arith.constant dense<0.000000e+00> : vector<16x32xf32>
    %130 = tpu.matmul %35, %63, %cst_90 {dimension_numbers = #tpu.dot_dimension_numbers<[1], [0], [0], [1], [0, 0, 1, 1], [], []>} : vector<16x4xbf16>, vector<4x32xbf16>, vector<16x32xf32> -> vector<16x32xf32>
    %131 = arith.addf %129, %130 : vector<16x32xf32>
    %cst_91 = arith.constant dense<0.000000e+00> : vector<16x32xf32>
    %132 = tpu.matmul %36, %65, %cst_91 {dimension_numbers = #tpu.dot_dimension_numbers<[1], [0], [0], [1], [0, 0, 1, 1], [], []>} : vector<16x4xbf16>, vector<4x32xbf16>, vector<16x32xf32> -> vector<16x32xf32>
    %133 = arith.addf %131, %132 : vector<16x32xf32>
    %cst_92 = arith.constant dense<0.000000e+00> : vector<16x32xf32>
    %134 = tpu.matmul %37, %67, %cst_92 {dimension_numbers = #tpu.dot_dimension_numbers<[1], [0], [0], [1], [0, 0, 1, 1], [], []>} : vector<16x4xbf16>, vector<4x32xbf16>, vector<16x32xf32> -> vector<16x32xf32>
    %135 = arith.addf %133, %134 : vector<16x32xf32>
    %cst_93 = arith.constant dense<0.000000e+00> : vector<16x32xf32>
    %136 = tpu.matmul %32, %51, %cst_93 {dimension_numbers = #tpu.dot_dimension_numbers<[1], [0], [0], [1], [0, 0, 1, 1], [], []>} : vector<16x4xbf16>, vector<4x32xbf16>, vector<16x32xf32> -> vector<16x32xf32>
    %cst_94 = arith.constant dense<0.000000e+00> : vector<16x32xf32>
    %137 = tpu.matmul %33, %53, %cst_94 {dimension_numbers = #tpu.dot_dimension_numbers<[1], [0], [0], [1], [0, 0, 1, 1], [], []>} : vector<16x4xbf16>, vector<4x32xbf16>, vector<16x32xf32> -> vector<16x32xf32>
    %138 = arith.addf %136, %137 : vector<16x32xf32>
    %cst_95 = arith.constant dense<0.000000e+00> : vector<16x32xf32>
    %139 = tpu.matmul %34, %55, %cst_95 {dimension_numbers = #tpu.dot_dimension_numbers<[1], [0], [0], [1], [0, 0, 1, 1], [], []>} : vector<16x4xbf16>, vector<4x32xbf16>, vector<16x32xf32> -> vector<16x32xf32>
    %140 = arith.addf %138, %139 : vector<16x32xf32>
    %cst_96 = arith.constant dense<0.000000e+00> : vector<16x32xf32>
    %141 = tpu.matmul %35, %57, %cst_96 {dimension_numbers = #tpu.dot_dimension_numbers<[1], [0], [0], [1], [0, 0, 1, 1], [], []>} : vector<16x4xbf16>, vector<4x32xbf16>, vector<16x32xf32> -> vector<16x32xf32>
    %142 = arith.addf %140, %141 : vector<16x32xf32>
    %cst_97 = arith.constant dense<0.000000e+00> : vector<16x32xf32>
    %143 = tpu.matmul %36, %59, %cst_97 {dimension_numbers = #tpu.dot_dimension_numbers<[1], [0], [0], [1], [0, 0, 1, 1], [], []>} : vector<16x4xbf16>, vector<4x32xbf16>, vector<16x32xf32> -> vector<16x32xf32>
    %144 = arith.addf %142, %143 : vector<16x32xf32>
    %cst_98 = arith.constant dense<0.000000e+00> : vector<16x32xf32>
    %145 = tpu.matmul %37, %61, %cst_98 {dimension_numbers = #tpu.dot_dimension_numbers<[1], [0], [0], [1], [0, 0, 1, 1], [], []>} : vector<16x4xbf16>, vector<4x32xbf16>, vector<16x32xf32> -> vector<16x32xf32>
    %146 = arith.addf %144, %145 : vector<16x32xf32>
    %cst_99 = arith.constant dense<0.000000e+00> : vector<16x32xf32>
    %147 = tpu.matmul %38, %63, %cst_99 {dimension_numbers = #tpu.dot_dimension_numbers<[1], [0], [0], [1], [0, 0, 1, 1], [], []>} : vector<16x4xbf16>, vector<4x32xbf16>, vector<16x32xf32> -> vector<16x32xf32>
    %148 = arith.addf %146, %147 : vector<16x32xf32>
    %cst_100 = arith.constant dense<0.000000e+00> : vector<16x32xf32>
    %149 = tpu.matmul %39, %65, %cst_100 {dimension_numbers = #tpu.dot_dimension_numbers<[1], [0], [0], [1], [0, 0, 1, 1], [], []>} : vector<16x4xbf16>, vector<4x32xbf16>, vector<16x32xf32> -> vector<16x32xf32>
    %150 = arith.addf %148, %149 : vector<16x32xf32>
    %cst_101 = arith.constant dense<0.000000e+00> : vector<16x32xf32>
    %151 = tpu.matmul %40, %67, %cst_101 {dimension_numbers = #tpu.dot_dimension_numbers<[1], [0], [0], [1], [0, 0, 1, 1], [], []>} : vector<16x4xbf16>, vector<4x32xbf16>, vector<16x32xf32> -> vector<16x32xf32>
    %152 = arith.addf %150, %151 : vector<16x32xf32>
    %cst_102 = arith.constant dense<0.000000e+00> : vector<16x32xf32>
    %153 = tpu.matmul %35, %51, %cst_102 {dimension_numbers = #tpu.dot_dimension_numbers<[1], [0], [0], [1], [0, 0, 1, 1], [], []>} : vector<16x4xbf16>, vector<4x32xbf16>, vector<16x32xf32> -> vector<16x32xf32>
    %cst_103 = arith.constant dense<0.000000e+00> : vector<16x32xf32>
    %154 = tpu.matmul %36, %53, %cst_103 {dimension_numbers = #tpu.dot_dimension_numbers<[1], [0], [0], [1], [0, 0, 1, 1], [], []>} : vector<16x4xbf16>, vector<4x32xbf16>, vector<16x32xf32> -> vector<16x32xf32>
    %155 = arith.addf %153, %154 : vector<16x32xf32>
    %cst_104 = arith.constant dense<0.000000e+00> : vector<16x32xf32>
    %156 = tpu.matmul %37, %55, %cst_104 {dimension_numbers = #tpu.dot_dimension_numbers<[1], [0], [0], [1], [0, 0, 1, 1], [], []>} : vector<16x4xbf16>, vector<4x32xbf16>, vector<16x32xf32> -> vector<16x32xf32>
    %157 = arith.addf %155, %156 : vector<16x32xf32>
    %cst_105 = arith.constant dense<0.000000e+00> : vector<16x32xf32>
    %158 = tpu.matmul %38, %57, %cst_105 {dimension_numbers = #tpu.dot_dimension_numbers<[1], [0], [0], [1], [0, 0, 1, 1], [], []>} : vector<16x4xbf16>, vector<4x32xbf16>, vector<16x32xf32> -> vector<16x32xf32>
    %159 = arith.addf %157, %158 : vector<16x32xf32>
    %cst_106 = arith.constant dense<0.000000e+00> : vector<16x32xf32>
    %160 = tpu.matmul %39, %59, %cst_106 {dimension_numbers = #tpu.dot_dimension_numbers<[1], [0], [0], [1], [0, 0, 1, 1], [], []>} : vector<16x4xbf16>, vector<4x32xbf16>, vector<16x32xf32> -> vector<16x32xf32>
    %161 = arith.addf %159, %160 : vector<16x32xf32>
    %cst_107 = arith.constant dense<0.000000e+00> : vector<16x32xf32>
    %162 = tpu.matmul %40, %61, %cst_107 {dimension_numbers = #tpu.dot_dimension_numbers<[1], [0], [0], [1], [0, 0, 1, 1], [], []>} : vector<16x4xbf16>, vector<4x32xbf16>, vector<16x32xf32> -> vector<16x32xf32>
    %163 = arith.addf %161, %162 : vector<16x32xf32>
    %cst_108 = arith.constant dense<0.000000e+00> : vector<16x32xf32>
    %164 = tpu.matmul %41, %63, %cst_108 {dimension_numbers = #tpu.dot_dimension_numbers<[1], [0], [0], [1], [0, 0, 1, 1], [], []>} : vector<16x4xbf16>, vector<4x32xbf16>, vector<16x32xf32> -> vector<16x32xf32>
    %165 = arith.addf %163, %164 : vector<16x32xf32>
    %cst_109 = arith.constant dense<0.000000e+00> : vector<16x32xf32>
    %166 = tpu.matmul %42, %65, %cst_109 {dimension_numbers = #tpu.dot_dimension_numbers<[1], [0], [0], [1], [0, 0, 1, 1], [], []>} : vector<16x4xbf16>, vector<4x32xbf16>, vector<16x32xf32> -> vector<16x32xf32>
    %167 = arith.addf %165, %166 : vector<16x32xf32>
    %cst_110 = arith.constant dense<0.000000e+00> : vector<16x32xf32>
    %168 = tpu.matmul %43, %67, %cst_110 {dimension_numbers = #tpu.dot_dimension_numbers<[1], [0], [0], [1], [0, 0, 1, 1], [], []>} : vector<16x4xbf16>, vector<4x32xbf16>, vector<16x32xf32> -> vector<16x32xf32>
    %169 = arith.addf %167, %168 : vector<16x32xf32>
    %cst_111 = arith.constant dense<0.000000e+00> : vector<16x32xf32>
    %170 = tpu.matmul %38, %51, %cst_111 {dimension_numbers = #tpu.dot_dimension_numbers<[1], [0], [0], [1], [0, 0, 1, 1], [], []>} : vector<16x4xbf16>, vector<4x32xbf16>, vector<16x32xf32> -> vector<16x32xf32>
    %cst_112 = arith.constant dense<0.000000e+00> : vector<16x32xf32>
    %171 = tpu.matmul %39, %53, %cst_112 {dimension_numbers = #tpu.dot_dimension_numbers<[1], [0], [0], [1], [0, 0, 1, 1], [], []>} : vector<16x4xbf16>, vector<4x32xbf16>, vector<16x32xf32> -> vector<16x32xf32>
    %172 = arith.addf %170, %171 : vector<16x32xf32>
    %cst_113 = arith.constant dense<0.000000e+00> : vector<16x32xf32>
    %173 = tpu.matmul %40, %55, %cst_113 {dimension_numbers = #tpu.dot_dimension_numbers<[1], [0], [0], [1], [0, 0, 1, 1], [], []>} : vector<16x4xbf16>, vector<4x32xbf16>, vector<16x32xf32> -> vector<16x32xf32>
    %174 = arith.addf %172, %173 : vector<16x32xf32>
    %cst_114 = arith.constant dense<0.000000e+00> : vector<16x32xf32>
    %175 = tpu.matmul %41, %57, %cst_114 {dimension_numbers = #tpu.dot_dimension_numbers<[1], [0], [0], [1], [0, 0, 1, 1], [], []>} : vector<16x4xbf16>, vector<4x32xbf16>, vector<16x32xf32> -> vector<16x32xf32>
    %176 = arith.addf %174, %175 : vector<16x32xf32>
    %cst_115 = arith.constant dense<0.000000e+00> : vector<16x32xf32>
    %177 = tpu.matmul %42, %59, %cst_115 {dimension_numbers = #tpu.dot_dimension_numbers<[1], [0], [0], [1], [0, 0, 1, 1], [], []>} : vector<16x4xbf16>, vector<4x32xbf16>, vector<16x32xf32> -> vector<16x32xf32>
    %178 = arith.addf %176, %177 : vector<16x32xf32>
    %cst_116 = arith.constant dense<0.000000e+00> : vector<16x32xf32>
    %179 = tpu.matmul %43, %61, %cst_116 {dimension_numbers = #tpu.dot_dimension_numbers<[1], [0], [0], [1], [0, 0, 1, 1], [], []>} : vector<16x4xbf16>, vector<4x32xbf16>, vector<16x32xf32> -> vector<16x32xf32>
    %180 = arith.addf %178, %179 : vector<16x32xf32>
    %cst_117 = arith.constant dense<0.000000e+00> : vector<16x32xf32>
    %181 = tpu.matmul %44, %63, %cst_117 {dimension_numbers = #tpu.dot_dimension_numbers<[1], [0], [0], [1], [0, 0, 1, 1], [], []>} : vector<16x4xbf16>, vector<4x32xbf16>, vector<16x32xf32> -> vector<16x32xf32>
    %182 = arith.addf %180, %181 : vector<16x32xf32>
    %cst_118 = arith.constant dense<0.000000e+00> : vector<16x32xf32>
    %183 = tpu.matmul %45, %65, %cst_118 {dimension_numbers = #tpu.dot_dimension_numbers<[1], [0], [0], [1], [0, 0, 1, 1], [], []>} : vector<16x4xbf16>, vector<4x32xbf16>, vector<16x32xf32> -> vector<16x32xf32>
    %184 = arith.addf %182, %183 : vector<16x32xf32>
    %cst_119 = arith.constant dense<0.000000e+00> : vector<16x32xf32>
    %185 = tpu.matmul %46, %67, %cst_119 {dimension_numbers = #tpu.dot_dimension_numbers<[1], [0], [0], [1], [0, 0, 1, 1], [], []>} : vector<16x4xbf16>, vector<4x32xbf16>, vector<16x32xf32> -> vector<16x32xf32>
    %186 = arith.addf %184, %185 : vector<16x32xf32>
    %cst_120 = arith.constant dense<0.000000e+00> : vector<16x32xf32>
    %187 = tpu.matmul %41, %51, %cst_120 {dimension_numbers = #tpu.dot_dimension_numbers<[1], [0], [0], [1], [0, 0, 1, 1], [], []>} : vector<16x4xbf16>, vector<4x32xbf16>, vector<16x32xf32> -> vector<16x32xf32>
    %cst_121 = arith.constant dense<0.000000e+00> : vector<16x32xf32>
    %188 = tpu.matmul %42, %53, %cst_121 {dimension_numbers = #tpu.dot_dimension_numbers<[1], [0], [0], [1], [0, 0, 1, 1], [], []>} : vector<16x4xbf16>, vector<4x32xbf16>, vector<16x32xf32> -> vector<16x32xf32>
    %189 = arith.addf %187, %188 : vector<16x32xf32>
    %cst_122 = arith.constant dense<0.000000e+00> : vector<16x32xf32>
    %190 = tpu.matmul %43, %55, %cst_122 {dimension_numbers = #tpu.dot_dimension_numbers<[1], [0], [0], [1], [0, 0, 1, 1], [], []>} : vector<16x4xbf16>, vector<4x32xbf16>, vector<16x32xf32> -> vector<16x32xf32>
    %191 = arith.addf %189, %190 : vector<16x32xf32>
    %cst_123 = arith.constant dense<0.000000e+00> : vector<16x32xf32>
    %192 = tpu.matmul %44, %57, %cst_123 {dimension_numbers = #tpu.dot_dimension_numbers<[1], [0], [0], [1], [0, 0, 1, 1], [], []>} : vector<16x4xbf16>, vector<4x32xbf16>, vector<16x32xf32> -> vector<16x32xf32>
    %193 = arith.addf %191, %192 : vector<16x32xf32>
    %cst_124 = arith.constant dense<0.000000e+00> : vector<16x32xf32>
    %194 = tpu.matmul %45, %59, %cst_124 {dimension_numbers = #tpu.dot_dimension_numbers<[1], [0], [0], [1], [0, 0, 1, 1], [], []>} : vector<16x4xbf16>, vector<4x32xbf16>, vector<16x32xf32> -> vector<16x32xf32>
    %195 = arith.addf %193, %194 : vector<16x32xf32>
    %cst_125 = arith.constant dense<0.000000e+00> : vector<16x32xf32>
    %196 = tpu.matmul %46, %61, %cst_125 {dimension_numbers = #tpu.dot_dimension_numbers<[1], [0], [0], [1], [0, 0, 1, 1], [], []>} : vector<16x4xbf16>, vector<4x32xbf16>, vector<16x32xf32> -> vector<16x32xf32>
    %197 = arith.addf %195, %196 : vector<16x32xf32>
    %cst_126 = arith.constant dense<0.000000e+00> : vector<16x32xf32>
    %198 = tpu.matmul %47, %63, %cst_126 {dimension_numbers = #tpu.dot_dimension_numbers<[1], [0], [0], [1], [0, 0, 1, 1], [], []>} : vector<16x4xbf16>, vector<4x32xbf16>, vector<16x32xf32> -> vector<16x32xf32>
    %199 = arith.addf %197, %198 : vector<16x32xf32>
    %cst_127 = arith.constant dense<0.000000e+00> : vector<16x32xf32>
    %200 = tpu.matmul %48, %65, %cst_127 {dimension_numbers = #tpu.dot_dimension_numbers<[1], [0], [0], [1], [0, 0, 1, 1], [], []>} : vector<16x4xbf16>, vector<4x32xbf16>, vector<16x32xf32> -> vector<16x32xf32>
    %201 = arith.addf %199, %200 : vector<16x32xf32>
    %cst_128 = arith.constant dense<0.000000e+00> : vector<16x32xf32>
    %202 = tpu.matmul %49, %67, %cst_128 {dimension_numbers = #tpu.dot_dimension_numbers<[1], [0], [0], [1], [0, 0, 1, 1], [], []>} : vector<16x4xbf16>, vector<4x32xbf16>, vector<16x32xf32> -> vector<16x32xf32>
    %203 = arith.addf %201, %202 : vector<16x32xf32>
    %cst_129 = arith.constant dense<0.000000e+00> : vector<32xf32>
    %204 = vector.multi_reduction <add>, %84, %cst_129 [0] : vector<16x32xf32> to vector<32xf32>
    %205 = vector.shape_cast %204 : vector<32xf32> to vector<1x32xf32>
    %cst_130 = arith.constant dense<0.000000e+00> : vector<32xf32>
    %206 = vector.multi_reduction <add>, %101, %cst_130 [0] : vector<16x32xf32> to vector<32xf32>
    %207 = vector.shape_cast %206 : vector<32xf32> to vector<1x32xf32>
    %208 = arith.addf %205, %207 : vector<1x32xf32>
    %cst_131 = arith.constant dense<0.000000e+00> : vector<32xf32>
    %209 = vector.multi_reduction <add>, %118, %cst_131 [0] : vector<16x32xf32> to vector<32xf32>
    %210 = vector.shape_cast %209 : vector<32xf32> to vector<1x32xf32>
    %211 = arith.addf %208, %210 : vector<1x32xf32>
    %cst_132 = arith.constant dense<0.000000e+00> : vector<32xf32>
    %212 = vector.multi_reduction <add>, %135, %cst_132 [0] : vector<16x32xf32> to vector<32xf32>
    %213 = vector.shape_cast %212 : vector<32xf32> to vector<1x32xf32>
    %214 = arith.addf %211, %213 : vector<1x32xf32>
    %cst_133 = arith.constant dense<0.000000e+00> : vector<32xf32>
    %215 = vector.multi_reduction <add>, %152, %cst_133 [0] : vector<16x32xf32> to vector<32xf32>
    %216 = vector.shape_cast %215 : vector<32xf32> to vector<1x32xf32>
    %217 = arith.addf %214, %216 : vector<1x32xf32>
    %cst_134 = arith.constant dense<0.000000e+00> : vector<32xf32>
    %218 = vector.multi_reduction <add>, %169, %cst_134 [0] : vector<16x32xf32> to vector<32xf32>
    %219 = vector.shape_cast %218 : vector<32xf32> to vector<1x32xf32>
    %220 = arith.addf %217, %219 : vector<1x32xf32>
    %cst_135 = arith.constant dense<0.000000e+00> : vector<32xf32>
    %221 = vector.multi_reduction <add>, %186, %cst_135 [0] : vector<16x32xf32> to vector<32xf32>
    %222 = vector.shape_cast %221 : vector<32xf32> to vector<1x32xf32>
    %223 = arith.addf %220, %222 : vector<1x32xf32>
    %cst_136 = arith.constant dense<0.000000e+00> : vector<32xf32>
    %224 = vector.multi_reduction <add>, %203, %cst_136 [0] : vector<16x32xf32> to vector<32xf32>
    %225 = vector.shape_cast %224 : vector<32xf32> to vector<1x32xf32>
    %226 = arith.addf %223, %225 : vector<1x32xf32>
    %cst_137 = arith.constant 7.812500e-03 : f32
    %227 = vector.broadcast %cst_137 : f32 to vector<1x32xf32>
    %228 = arith.mulf %226, %227 : vector<1x32xf32>
    %229 = vector.broadcast %228 : vector<1x32xf32> to vector<16x32xf32>
    %230 = arith.subf %84, %229 : vector<16x32xf32>
    %231 = arith.mulf %230, %230 : vector<16x32xf32>
    %cst_138 = arith.constant dense<0.000000e+00> : vector<32xf32>
    %232 = vector.multi_reduction <add>, %231, %cst_138 [0] : vector<16x32xf32> to vector<32xf32>
    %233 = vector.shape_cast %232 : vector<32xf32> to vector<1x32xf32>
    %234 = vector.broadcast %228 : vector<1x32xf32> to vector<16x32xf32>
    %235 = arith.subf %101, %234 : vector<16x32xf32>
    %236 = arith.mulf %235, %235 : vector<16x32xf32>
    %cst_139 = arith.constant dense<0.000000e+00> : vector<32xf32>
    %237 = vector.multi_reduction <add>, %236, %cst_139 [0] : vector<16x32xf32> to vector<32xf32>
    %238 = vector.shape_cast %237 : vector<32xf32> to vector<1x32xf32>
    %239 = arith.addf %233, %238 : vector<1x32xf32>
    %240 = vector.broadcast %228 : vector<1x32xf32> to vector<16x32xf32>
    %241 = arith.subf %118, %240 : vector<16x32xf32>
    %242 = arith.mulf %241, %241 : vector<16x32xf32>
    %cst_140 = arith.constant dense<0.000000e+00> : vector<32xf32>
    %243 = vector.multi_reduction <add>, %242, %cst_140 [0] : vector<16x32xf32> to vector<32xf32>
    %244 = vector.shape_cast %243 : vector<32xf32> to vector<1x32xf32>
    %245 = arith.addf %239, %244 : vector<1x32xf32>
    %246 = vector.broadcast %228 : vector<1x32xf32> to vector<16x32xf32>
    %247 = arith.subf %135, %246 : vector<16x32xf32>
    %248 = arith.mulf %247, %247 : vector<16x32xf32>
    %cst_141 = arith.constant dense<0.000000e+00> : vector<32xf32>
    %249 = vector.multi_reduction <add>, %248, %cst_141 [0] : vector<16x32xf32> to vector<32xf32>
    %250 = vector.shape_cast %249 : vector<32xf32> to vector<1x32xf32>
    %251 = arith.addf %245, %250 : vector<1x32xf32>
    %252 = vector.broadcast %228 : vector<1x32xf32> to vector<16x32xf32>
    %253 = arith.subf %152, %252 : vector<16x32xf32>
    %254 = arith.mulf %253, %253 : vector<16x32xf32>
    %cst_142 = arith.constant dense<0.000000e+00> : vector<32xf32>
    %255 = vector.multi_reduction <add>, %254, %cst_142 [0] : vector<16x32xf32> to vector<32xf32>
    %256 = vector.shape_cast %255 : vector<32xf32> to vector<1x32xf32>
    %257 = arith.addf %251, %256 : vector<1x32xf32>
    %258 = vector.broadcast %228 : vector<1x32xf32> to vector<16x32xf32>
    %259 = arith.subf %169, %258 : vector<16x32xf32>
    %260 = arith.mulf %259, %259 : vector<16x32xf32>
    %cst_143 = arith.constant dense<0.000000e+00> : vector<32xf32>
    %261 = vector.multi_reduction <add>, %260, %cst_143 [0] : vector<16x32xf32> to vector<32xf32>
    %262 = vector.shape_cast %261 : vector<32xf32> to vector<1x32xf32>
    %263 = arith.addf %257, %262 : vector<1x32xf32>
    %264 = vector.broadcast %228 : vector<1x32xf32> to vector<16x32xf32>
    %265 = arith.subf %186, %264 : vector<16x32xf32>
    %266 = arith.mulf %265, %265 : vector<16x32xf32>
    %cst_144 = arith.constant dense<0.000000e+00> : vector<32xf32>
    %267 = vector.multi_reduction <add>, %266, %cst_144 [0] : vector<16x32xf32> to vector<32xf32>
    %268 = vector.shape_cast %267 : vector<32xf32> to vector<1x32xf32>
    %269 = arith.addf %263, %268 : vector<1x32xf32>
    %270 = vector.broadcast %228 : vector<1x32xf32> to vector<16x32xf32>
    %271 = arith.subf %203, %270 : vector<16x32xf32>
    %272 = arith.mulf %271, %271 : vector<16x32xf32>
    %cst_145 = arith.constant dense<0.000000e+00> : vector<32xf32>
    %273 = vector.multi_reduction <add>, %272, %cst_145 [0] : vector<16x32xf32> to vector<32xf32>
    %274 = vector.shape_cast %273 : vector<32xf32> to vector<1x32xf32>
    %275 = arith.addf %269, %274 : vector<1x32xf32>
    %c0_146 = arith.constant 0 : index
    %c0_147 = arith.constant 0 : index
    %c0_148 = arith.constant 0 : index
    %c0_149 = arith.constant 0 : index
    %276 = vector.load %arg13[%c0_146, %c0_147, %c0_148, %c0_149] : memref<1x1x1x32xf32, #tpu.memory_space<vmem>>, vector<1x1x1x32xf32>
    %277 = vector.shape_cast %276 : vector<1x1x1x32xf32> to vector<1x32xf32>
    %278 = vector.shape_cast %228 : vector<1x32xf32> to vector<1x1x1x32xf32>
    tpu.vector_store %arg13[%c0_146, %c0_147, %c0_148, %c0_149], %278 {strides = array<i32>} : memref<1x1x1x32xf32, #tpu.memory_space<vmem>>, vector<1x1x1x32xf32>,
    %c0_150 = arith.constant 0 : index
    %c0_151 = arith.constant 0 : index
    %c0_152 = arith.constant 0 : index
    %c0_153 = arith.constant 0 : index
    %279 = vector.load %arg14[%c0_150, %c0_151, %c0_152, %c0_153] : memref<1x1x1x32xf32, #tpu.memory_space<vmem>>, vector<1x1x1x32xf32>
    %280 = vector.shape_cast %279 : vector<1x1x1x32xf32> to vector<1x32xf32>
    %281 = vector.shape_cast %275 : vector<1x32xf32> to vector<1x1x1x32xf32>
    tpu.vector_store %arg14[%c0_150, %c0_151, %c0_152, %c0_153], %281 {strides = array<i32>} : memref<1x1x1x32xf32, #tpu.memory_space<vmem>>, vector<1x1x1x32xf32>,
    return
  }
  func.func @transform_0(%arg0: i32, %arg1: i32) -> (i32, i32, i32, i32) {
    %c8_i32 = arith.constant 8 : i32
    %0 = arith.muli %arg1, %c8_i32 : i32
    %c0_i32 = arith.constant 0 : i32
    %1 = arith.addi %0, %c0_i32 : i32
    %c0_i32_0 = arith.constant 0 : i32
    %c0_i32_1 = arith.constant 0 : i32
    %c0_i32_2 = arith.constant 0 : i32
    return %arg0, %1, %c0_i32_0, %c0_i32_1 : i32, i32, i32, i32
  }
  func.func @transform_1(%arg0: i32, %arg1: i32) -> (i32, i32, i32, i32) {
    %c8_i32 = arith.constant 8 : i32
    %0 = arith.muli %arg1, %c8_i32 : i32
    %c1_i32 = arith.constant 1 : i32
    %1 = arith.addi %0, %c1_i32 : i32
    %c0_i32 = arith.constant 0 : i32
    %c0_i32_0 = arith.constant 0 : i32
    %c0_i32_1 = arith.constant 0 : i32
    return %arg0, %1, %c0_i32, %c0_i32_0 : i32, i32, i32, i32
  }
  func.func @transform_2(%arg0: i32, %arg1: i32) -> (i32, i32, i32, i32) {
    %c8_i32 = arith.constant 8 : i32
    %0 = arith.muli %arg1, %c8_i32 : i32
    %c2_i32 = arith.constant 2 : i32
    %1 = arith.addi %0, %c2_i32 : i32
    %c0_i32 = arith.constant 0 : i32
    %c0_i32_0 = arith.constant 0 : i32
    %c0_i32_1 = arith.constant 0 : i32
    return %arg0, %1, %c0_i32, %c0_i32_0 : i32, i32, i32, i32
  }
  func.func @transform_3(%arg0: i32, %arg1: i32) -> (i32, i32, i32, i32) {
    %c8_i32 = arith.constant 8 : i32
    %0 = arith.muli %arg1, %c8_i32 : i32
    %c3_i32 = arith.constant 3 : i32
    %1 = arith.addi %0, %c3_i32 : i32
    %c0_i32 = arith.constant 0 : i32
    %c0_i32_0 = arith.constant 0 : i32
    %c0_i32_1 = arith.constant 0 : i32
    return %arg0, %1, %c0_i32, %c0_i32_0 : i32, i32, i32, i32
  }
  func.func @transform_4(%arg0: i32, %arg1: i32) -> (i32, i32, i32, i32) {
    %c8_i32 = arith.constant 8 : i32
    %0 = arith.muli %arg1, %c8_i32 : i32
    %c4_i32 = arith.constant 4 : i32
    %1 = arith.addi %0, %c4_i32 : i32
    %c0_i32 = arith.constant 0 : i32
    %c0_i32_0 = arith.constant 0 : i32
    %c0_i32_1 = arith.constant 0 : i32
    return %arg0, %1, %c0_i32, %c0_i32_0 : i32, i32, i32, i32
  }
  func.func @transform_5(%arg0: i32, %arg1: i32) -> (i32, i32, i32, i32) {
    %c8_i32 = arith.constant 8 : i32
    %0 = arith.muli %arg1, %c8_i32 : i32
    %c5_i32 = arith.constant 5 : i32
    %1 = arith.addi %0, %c5_i32 : i32
    %c0_i32 = arith.constant 0 : i32
    %c0_i32_0 = arith.constant 0 : i32
    %c0_i32_1 = arith.constant 0 : i32
    return %arg0, %1, %c0_i32, %c0_i32_0 : i32, i32, i32, i32
  }
  func.func @transform_6(%arg0: i32, %arg1: i32) -> (i32, i32, i32, i32) {
    %c8_i32 = arith.constant 8 : i32
    %0 = arith.muli %arg1, %c8_i32 : i32
    %c6_i32 = arith.constant 6 : i32
    %1 = arith.addi %0, %c6_i32 : i32
    %c0_i32 = arith.constant 0 : i32
    %c0_i32_0 = arith.constant 0 : i32
    %c0_i32_1 = arith.constant 0 : i32
    return %arg0, %1, %c0_i32, %c0_i32_0 : i32, i32, i32, i32
  }
  func.func @transform_7(%arg0: i32, %arg1: i32) -> (i32, i32, i32, i32) {
    %c8_i32 = arith.constant 8 : i32
    %0 = arith.muli %arg1, %c8_i32 : i32
    %c7_i32 = arith.constant 7 : i32
    %1 = arith.addi %0, %c7_i32 : i32
    %c0_i32 = arith.constant 0 : i32
    %c0_i32_0 = arith.constant 0 : i32
    %c0_i32_1 = arith.constant 0 : i32
    return %arg0, %1, %c0_i32, %c0_i32_0 : i32, i32, i32, i32
  }
  func.func @transform_8(%arg0: i32, %arg1: i32) -> (i32, i32, i32, i32) {
    %c8_i32 = arith.constant 8 : i32
    %0 = arith.muli %arg1, %c8_i32 : i32
    %c8_i32_0 = arith.constant 8 : i32
    %1 = arith.addi %0, %c8_i32_0 : i32
    %c0_i32 = arith.constant 0 : i32
    %c0_i32_1 = arith.constant 0 : i32
    %c0_i32_2 = arith.constant 0 : i32
    return %arg0, %1, %c0_i32, %c0_i32_1 : i32, i32, i32, i32
  }
  func.func @transform_9(%arg0: i32, %arg1: i32) -> (i32, i32, i32, i32) {
    %c8_i32 = arith.constant 8 : i32
    %0 = arith.muli %arg1, %c8_i32 : i32
    %c9_i32 = arith.constant 9 : i32
    %1 = arith.addi %0, %c9_i32 : i32
    %c0_i32 = arith.constant 0 : i32
    %c0_i32_0 = arith.constant 0 : i32
    %c0_i32_1 = arith.constant 0 : i32
    return %arg0, %1, %c0_i32, %c0_i32_0 : i32, i32, i32, i32
  }
  func.func @transform_10(%arg0: i32, %arg1: i32) -> (i32, i32, i32) {
    %c0_i32 = arith.constant 0 : i32
    %c0_i32_0 = arith.constant 0 : i32
    %c0_i32_1 = arith.constant 0 : i32
    %c0_i32_2 = arith.constant 0 : i32
    return %c0_i32, %c0_i32_0, %c0_i32_1 : i32, i32, i32
  }
  func.func @transform_11(%arg0: i32, %arg1: i32) -> (i32, i32, i32, i32) {
    %c0_i32 = arith.constant 0 : i32
    %c0_i32_0 = arith.constant 0 : i32
    %c0_i32_1 = arith.constant 0 : i32
    return %arg0, %arg1, %c0_i32, %c0_i32_0 : i32, i32, i32, i32
  }
  func.func @transform_12(%arg0: i32, %arg1: i32) -> (i32, i32, i32, i32) {
    %c0_i32 = arith.constant 0 : i32
    %c0_i32_0 = arith.constant 0 : i32
    %c0_i32_1 = arith.constant 0 : i32
    return %arg0, %arg1, %c0_i32, %c0_i32_0 : i32, i32, i32, i32
  }
}

module attributes {stable_mosaic.version = 11 : i64} {
  func.func @kernel(%arg0: i32, %arg1: i32, %arg2: memref<1x1x18x4xbf16, #tpu.memory_space<vmem>>, %arg3: memref<1x1x18x4xbf16, #tpu.memory_space<vmem>>, %arg4: memref<1x1x18x4xbf16, #tpu.memory_space<vmem>>, %arg5: memref<1x1x18x4xbf16, #tpu.memory_space<vmem>>, %arg6: memref<1x1x18x4xbf16, #tpu.memory_space<vmem>>, %arg7: memref<1x1x18x4xbf16, #tpu.memory_space<vmem>>, %arg8: memref<1x1x18x4xbf16, #tpu.memory_space<vmem>>, %arg9: memref<1x1x18x4xbf16, #tpu.memory_space<vmem>>, %arg10: memref<1x1x18x4xbf16, #tpu.memory_space<vmem>>, %arg11: memref<1x1x18x4xbf16, #tpu.memory_space<vmem>>, %arg12: memref<9x4x32xbf16, #tpu.memory_space<vmem>>, %arg13: memref<1x32xf32, #tpu.memory_space<vmem>>, %arg14: memref<1x32xf32, #tpu.memory_space<vmem>>, %arg15: memref<1x8x16x32xf32, #tpu.memory_space<vmem>>) attributes {dimension_semantics = [#tpu.dimension_semantics<parallel>, #tpu.dimension_semantics<parallel>], iteration_bounds = array<i64: 2, 2>, scalar_prefetch = 0 : i64, scratch_operands = 0 : i64, tpu.core_type = #tpu.core_type<tc>, window_params = [{transform_indices = @transform_0, window_bounds = array<i64: 1, 1, 18, 4>}, {transform_indices = @transform_1, window_bounds = array<i64: 1, 1, 18, 4>}, {transform_indices = @transform_2, window_bounds = array<i64: 1, 1, 18, 4>}, {transform_indices = @transform_3, window_bounds = array<i64: 1, 1, 18, 4>}, {transform_indices = @transform_4, window_bounds = array<i64: 1, 1, 18, 4>}, {transform_indices = @transform_5, window_bounds = array<i64: 1, 1, 18, 4>}, {transform_indices = @transform_6, window_bounds = array<i64: 1, 1, 18, 4>}, {transform_indices = @transform_7, window_bounds = array<i64: 1, 1, 18, 4>}, {transform_indices = @transform_8, window_bounds = array<i64: 1, 1, 18, 4>}, {transform_indices = @transform_9, window_bounds = array<i64: 1, 1, 18, 4>}, {pipeline_mode = #tpu.pipeline_mode<synchronous>, transform_indices = @transform_10, window_bounds = array<i64: 9, 4, 32>}, {pipeline_mode = #tpu.pipeline_mode<synchronous>, transform_indices = @transform_11, window_bounds = array<i64: 1, 32>}, {pipeline_mode = #tpu.pipeline_mode<synchronous>, transform_indices = @transform_12, window_bounds = array<i64: 1, 32>}, {transform_indices = @transform_13, window_bounds = array<i64: 1, 8, 16, 32>}]} {
    %c0 = arith.constant 0 : index
    %c0_0 = arith.constant 0 : index
    %c0_1 = arith.constant 0 : index
    %c0_2 = arith.constant 0 : index
    %0 = vector.load %arg2[%c0, %c0_0, %c0_1, %c0_2] : memref<1x1x18x4xbf16, #tpu.memory_space<vmem>>, vector<1x1x18x4xbf16>
    %1 = vector.shape_cast %0 : vector<1x1x18x4xbf16> to vector<18x4xbf16>
    %c0_3 = arith.constant 0 : index
    %c0_4 = arith.constant 0 : index
    %c0_5 = arith.constant 0 : index
    %c0_6 = arith.constant 0 : index
    %2 = vector.load %arg3[%c0_3, %c0_4, %c0_5, %c0_6] : memref<1x1x18x4xbf16, #tpu.memory_space<vmem>>, vector<1x1x18x4xbf16>
    %3 = vector.shape_cast %2 : vector<1x1x18x4xbf16> to vector<18x4xbf16>
    %c0_7 = arith.constant 0 : index
    %c0_8 = arith.constant 0 : index
    %c0_9 = arith.constant 0 : index
    %c0_10 = arith.constant 0 : index
    %4 = vector.load %arg4[%c0_7, %c0_8, %c0_9, %c0_10] : memref<1x1x18x4xbf16, #tpu.memory_space<vmem>>, vector<1x1x18x4xbf16>
    %5 = vector.shape_cast %4 : vector<1x1x18x4xbf16> to vector<18x4xbf16>
    %c0_11 = arith.constant 0 : index
    %c0_12 = arith.constant 0 : index
    %c0_13 = arith.constant 0 : index
    %c0_14 = arith.constant 0 : index
    %6 = vector.load %arg5[%c0_11, %c0_12, %c0_13, %c0_14] : memref<1x1x18x4xbf16, #tpu.memory_space<vmem>>, vector<1x1x18x4xbf16>
    %7 = vector.shape_cast %6 : vector<1x1x18x4xbf16> to vector<18x4xbf16>
    %c0_15 = arith.constant 0 : index
    %c0_16 = arith.constant 0 : index
    %c0_17 = arith.constant 0 : index
    %c0_18 = arith.constant 0 : index
    %8 = vector.load %arg6[%c0_15, %c0_16, %c0_17, %c0_18] : memref<1x1x18x4xbf16, #tpu.memory_space<vmem>>, vector<1x1x18x4xbf16>
    %9 = vector.shape_cast %8 : vector<1x1x18x4xbf16> to vector<18x4xbf16>
    %c0_19 = arith.constant 0 : index
    %c0_20 = arith.constant 0 : index
    %c0_21 = arith.constant 0 : index
    %c0_22 = arith.constant 0 : index
    %10 = vector.load %arg7[%c0_19, %c0_20, %c0_21, %c0_22] : memref<1x1x18x4xbf16, #tpu.memory_space<vmem>>, vector<1x1x18x4xbf16>
    %11 = vector.shape_cast %10 : vector<1x1x18x4xbf16> to vector<18x4xbf16>
    %c0_23 = arith.constant 0 : index
    %c0_24 = arith.constant 0 : index
    %c0_25 = arith.constant 0 : index
    %c0_26 = arith.constant 0 : index
    %12 = vector.load %arg8[%c0_23, %c0_24, %c0_25, %c0_26] : memref<1x1x18x4xbf16, #tpu.memory_space<vmem>>, vector<1x1x18x4xbf16>
    %13 = vector.shape_cast %12 : vector<1x1x18x4xbf16> to vector<18x4xbf16>
    %c0_27 = arith.constant 0 : index
    %c0_28 = arith.constant 0 : index
    %c0_29 = arith.constant 0 : index
    %c0_30 = arith.constant 0 : index
    %14 = vector.load %arg9[%c0_27, %c0_28, %c0_29, %c0_30] : memref<1x1x18x4xbf16, #tpu.memory_space<vmem>>, vector<1x1x18x4xbf16>
    %15 = vector.shape_cast %14 : vector<1x1x18x4xbf16> to vector<18x4xbf16>
    %c0_31 = arith.constant 0 : index
    %c0_32 = arith.constant 0 : index
    %c0_33 = arith.constant 0 : index
    %c0_34 = arith.constant 0 : index
    %16 = vector.load %arg10[%c0_31, %c0_32, %c0_33, %c0_34] : memref<1x1x18x4xbf16, #tpu.memory_space<vmem>>, vector<1x1x18x4xbf16>
    %17 = vector.shape_cast %16 : vector<1x1x18x4xbf16> to vector<18x4xbf16>
    %c0_35 = arith.constant 0 : index
    %c0_36 = arith.constant 0 : index
    %c0_37 = arith.constant 0 : index
    %c0_38 = arith.constant 0 : index
    %18 = vector.load %arg11[%c0_35, %c0_36, %c0_37, %c0_38] : memref<1x1x18x4xbf16, #tpu.memory_space<vmem>>, vector<1x1x18x4xbf16>
    %19 = vector.shape_cast %18 : vector<1x1x18x4xbf16> to vector<18x4xbf16>
    %20 = vector.extract_strided_slice %1 {offsets = [0, 0], sizes = [16, 4], strides = [1, 1]} : vector<18x4xbf16> to vector<16x4xbf16>
    %21 = vector.extract_strided_slice %1 {offsets = [1, 0], sizes = [16, 4], strides = [1, 1]} : vector<18x4xbf16> to vector<16x4xbf16>
    %22 = vector.extract_strided_slice %1 {offsets = [2, 0], sizes = [16, 4], strides = [1, 1]} : vector<18x4xbf16> to vector<16x4xbf16>
    %23 = vector.extract_strided_slice %3 {offsets = [0, 0], sizes = [16, 4], strides = [1, 1]} : vector<18x4xbf16> to vector<16x4xbf16>
    %24 = vector.extract_strided_slice %3 {offsets = [1, 0], sizes = [16, 4], strides = [1, 1]} : vector<18x4xbf16> to vector<16x4xbf16>
    %25 = vector.extract_strided_slice %3 {offsets = [2, 0], sizes = [16, 4], strides = [1, 1]} : vector<18x4xbf16> to vector<16x4xbf16>
    %26 = vector.extract_strided_slice %5 {offsets = [0, 0], sizes = [16, 4], strides = [1, 1]} : vector<18x4xbf16> to vector<16x4xbf16>
    %27 = vector.extract_strided_slice %5 {offsets = [1, 0], sizes = [16, 4], strides = [1, 1]} : vector<18x4xbf16> to vector<16x4xbf16>
    %28 = vector.extract_strided_slice %5 {offsets = [2, 0], sizes = [16, 4], strides = [1, 1]} : vector<18x4xbf16> to vector<16x4xbf16>
    %29 = vector.extract_strided_slice %7 {offsets = [0, 0], sizes = [16, 4], strides = [1, 1]} : vector<18x4xbf16> to vector<16x4xbf16>
    %30 = vector.extract_strided_slice %7 {offsets = [1, 0], sizes = [16, 4], strides = [1, 1]} : vector<18x4xbf16> to vector<16x4xbf16>
    %31 = vector.extract_strided_slice %7 {offsets = [2, 0], sizes = [16, 4], strides = [1, 1]} : vector<18x4xbf16> to vector<16x4xbf16>
    %32 = vector.extract_strided_slice %9 {offsets = [0, 0], sizes = [16, 4], strides = [1, 1]} : vector<18x4xbf16> to vector<16x4xbf16>
    %33 = vector.extract_strided_slice %9 {offsets = [1, 0], sizes = [16, 4], strides = [1, 1]} : vector<18x4xbf16> to vector<16x4xbf16>
    %34 = vector.extract_strided_slice %9 {offsets = [2, 0], sizes = [16, 4], strides = [1, 1]} : vector<18x4xbf16> to vector<16x4xbf16>
    %35 = vector.extract_strided_slice %11 {offsets = [0, 0], sizes = [16, 4], strides = [1, 1]} : vector<18x4xbf16> to vector<16x4xbf16>
    %36 = vector.extract_strided_slice %11 {offsets = [1, 0], sizes = [16, 4], strides = [1, 1]} : vector<18x4xbf16> to vector<16x4xbf16>
    %37 = vector.extract_strided_slice %11 {offsets = [2, 0], sizes = [16, 4], strides = [1, 1]} : vector<18x4xbf16> to vector<16x4xbf16>
    %38 = vector.extract_strided_slice %13 {offsets = [0, 0], sizes = [16, 4], strides = [1, 1]} : vector<18x4xbf16> to vector<16x4xbf16>
    %39 = vector.extract_strided_slice %13 {offsets = [1, 0], sizes = [16, 4], strides = [1, 1]} : vector<18x4xbf16> to vector<16x4xbf16>
    %40 = vector.extract_strided_slice %13 {offsets = [2, 0], sizes = [16, 4], strides = [1, 1]} : vector<18x4xbf16> to vector<16x4xbf16>
    %41 = vector.extract_strided_slice %15 {offsets = [0, 0], sizes = [16, 4], strides = [1, 1]} : vector<18x4xbf16> to vector<16x4xbf16>
    %42 = vector.extract_strided_slice %15 {offsets = [1, 0], sizes = [16, 4], strides = [1, 1]} : vector<18x4xbf16> to vector<16x4xbf16>
    %43 = vector.extract_strided_slice %15 {offsets = [2, 0], sizes = [16, 4], strides = [1, 1]} : vector<18x4xbf16> to vector<16x4xbf16>
    %44 = vector.extract_strided_slice %17 {offsets = [0, 0], sizes = [16, 4], strides = [1, 1]} : vector<18x4xbf16> to vector<16x4xbf16>
    %45 = vector.extract_strided_slice %17 {offsets = [1, 0], sizes = [16, 4], strides = [1, 1]} : vector<18x4xbf16> to vector<16x4xbf16>
    %46 = vector.extract_strided_slice %17 {offsets = [2, 0], sizes = [16, 4], strides = [1, 1]} : vector<18x4xbf16> to vector<16x4xbf16>
    %47 = vector.extract_strided_slice %19 {offsets = [0, 0], sizes = [16, 4], strides = [1, 1]} : vector<18x4xbf16> to vector<16x4xbf16>
    %48 = vector.extract_strided_slice %19 {offsets = [1, 0], sizes = [16, 4], strides = [1, 1]} : vector<18x4xbf16> to vector<16x4xbf16>
    %49 = vector.extract_strided_slice %19 {offsets = [2, 0], sizes = [16, 4], strides = [1, 1]} : vector<18x4xbf16> to vector<16x4xbf16>
    %c0_39 = arith.constant 0 : index
    %c0_40 = arith.constant 0 : index
    %c0_41 = arith.constant 0 : index
    %50 = vector.load %arg12[%c0_39, %c0_40, %c0_41] : memref<9x4x32xbf16, #tpu.memory_space<vmem>>, vector<1x4x32xbf16>
    %51 = vector.shape_cast %50 : vector<1x4x32xbf16> to vector<4x32xbf16>
    %c1 = arith.constant 1 : index
    %c0_42 = arith.constant 0 : index
    %c0_43 = arith.constant 0 : index
    %52 = vector.load %arg12[%c1, %c0_42, %c0_43] : memref<9x4x32xbf16, #tpu.memory_space<vmem>>, vector<1x4x32xbf16>
    %53 = vector.shape_cast %52 : vector<1x4x32xbf16> to vector<4x32xbf16>
    %c2 = arith.constant 2 : index
    %c0_44 = arith.constant 0 : index
    %c0_45 = arith.constant 0 : index
    %54 = vector.load %arg12[%c2, %c0_44, %c0_45] : memref<9x4x32xbf16, #tpu.memory_space<vmem>>, vector<1x4x32xbf16>
    %55 = vector.shape_cast %54 : vector<1x4x32xbf16> to vector<4x32xbf16>
    %c3 = arith.constant 3 : index
    %c0_46 = arith.constant 0 : index
    %c0_47 = arith.constant 0 : index
    %56 = vector.load %arg12[%c3, %c0_46, %c0_47] : memref<9x4x32xbf16, #tpu.memory_space<vmem>>, vector<1x4x32xbf16>
    %57 = vector.shape_cast %56 : vector<1x4x32xbf16> to vector<4x32xbf16>
    %c4 = arith.constant 4 : index
    %c0_48 = arith.constant 0 : index
    %c0_49 = arith.constant 0 : index
    %58 = vector.load %arg12[%c4, %c0_48, %c0_49] : memref<9x4x32xbf16, #tpu.memory_space<vmem>>, vector<1x4x32xbf16>
    %59 = vector.shape_cast %58 : vector<1x4x32xbf16> to vector<4x32xbf16>
    %c5 = arith.constant 5 : index
    %c0_50 = arith.constant 0 : index
    %c0_51 = arith.constant 0 : index
    %60 = vector.load %arg12[%c5, %c0_50, %c0_51] : memref<9x4x32xbf16, #tpu.memory_space<vmem>>, vector<1x4x32xbf16>
    %61 = vector.shape_cast %60 : vector<1x4x32xbf16> to vector<4x32xbf16>
    %c6 = arith.constant 6 : index
    %c0_52 = arith.constant 0 : index
    %c0_53 = arith.constant 0 : index
    %62 = vector.load %arg12[%c6, %c0_52, %c0_53] : memref<9x4x32xbf16, #tpu.memory_space<vmem>>, vector<1x4x32xbf16>
    %63 = vector.shape_cast %62 : vector<1x4x32xbf16> to vector<4x32xbf16>
    %c7 = arith.constant 7 : index
    %c0_54 = arith.constant 0 : index
    %c0_55 = arith.constant 0 : index
    %64 = vector.load %arg12[%c7, %c0_54, %c0_55] : memref<9x4x32xbf16, #tpu.memory_space<vmem>>, vector<1x4x32xbf16>
    %65 = vector.shape_cast %64 : vector<1x4x32xbf16> to vector<4x32xbf16>
    %c8 = arith.constant 8 : index
    %c0_56 = arith.constant 0 : index
    %c0_57 = arith.constant 0 : index
    %66 = vector.load %arg12[%c8, %c0_56, %c0_57] : memref<9x4x32xbf16, #tpu.memory_space<vmem>>, vector<1x4x32xbf16>
    %67 = vector.shape_cast %66 : vector<1x4x32xbf16> to vector<4x32xbf16>
    %c0_58 = arith.constant 0 : index
    %c0_59 = arith.constant 0 : index
    %68 = vector.load %arg13[%c0_58, %c0_59] : memref<1x32xf32, #tpu.memory_space<vmem>>, vector<1x32xf32>
    %c0_60 = arith.constant 0 : index
    %c0_61 = arith.constant 0 : index
    %69 = vector.load %arg14[%c0_60, %c0_61] : memref<1x32xf32, #tpu.memory_space<vmem>>, vector<1x32xf32>
    %cst = arith.constant dense<0.000000e+00> : vector<16x32xf32>
    %70 = tpu.matmul %20, %51, %cst {dimension_numbers = #tpu.dot_dimension_numbers<[1], [0], [0], [1], [0, 0, 1, 1], [], []>} : vector<16x4xbf16>, vector<4x32xbf16>, vector<16x32xf32> -> vector<16x32xf32>
    %cst_62 = arith.constant dense<0.000000e+00> : vector<16x32xf32>
    %71 = tpu.matmul %21, %53, %cst_62 {dimension_numbers = #tpu.dot_dimension_numbers<[1], [0], [0], [1], [0, 0, 1, 1], [], []>} : vector<16x4xbf16>, vector<4x32xbf16>, vector<16x32xf32> -> vector<16x32xf32>
    %72 = arith.addf %70, %71 : vector<16x32xf32>
    %cst_63 = arith.constant dense<0.000000e+00> : vector<16x32xf32>
    %73 = tpu.matmul %22, %55, %cst_63 {dimension_numbers = #tpu.dot_dimension_numbers<[1], [0], [0], [1], [0, 0, 1, 1], [], []>} : vector<16x4xbf16>, vector<4x32xbf16>, vector<16x32xf32> -> vector<16x32xf32>
    %74 = arith.addf %72, %73 : vector<16x32xf32>
    %cst_64 = arith.constant dense<0.000000e+00> : vector<16x32xf32>
    %75 = tpu.matmul %23, %57, %cst_64 {dimension_numbers = #tpu.dot_dimension_numbers<[1], [0], [0], [1], [0, 0, 1, 1], [], []>} : vector<16x4xbf16>, vector<4x32xbf16>, vector<16x32xf32> -> vector<16x32xf32>
    %76 = arith.addf %74, %75 : vector<16x32xf32>
    %cst_65 = arith.constant dense<0.000000e+00> : vector<16x32xf32>
    %77 = tpu.matmul %24, %59, %cst_65 {dimension_numbers = #tpu.dot_dimension_numbers<[1], [0], [0], [1], [0, 0, 1, 1], [], []>} : vector<16x4xbf16>, vector<4x32xbf16>, vector<16x32xf32> -> vector<16x32xf32>
    %78 = arith.addf %76, %77 : vector<16x32xf32>
    %cst_66 = arith.constant dense<0.000000e+00> : vector<16x32xf32>
    %79 = tpu.matmul %25, %61, %cst_66 {dimension_numbers = #tpu.dot_dimension_numbers<[1], [0], [0], [1], [0, 0, 1, 1], [], []>} : vector<16x4xbf16>, vector<4x32xbf16>, vector<16x32xf32> -> vector<16x32xf32>
    %80 = arith.addf %78, %79 : vector<16x32xf32>
    %cst_67 = arith.constant dense<0.000000e+00> : vector<16x32xf32>
    %81 = tpu.matmul %26, %63, %cst_67 {dimension_numbers = #tpu.dot_dimension_numbers<[1], [0], [0], [1], [0, 0, 1, 1], [], []>} : vector<16x4xbf16>, vector<4x32xbf16>, vector<16x32xf32> -> vector<16x32xf32>
    %82 = arith.addf %80, %81 : vector<16x32xf32>
    %cst_68 = arith.constant dense<0.000000e+00> : vector<16x32xf32>
    %83 = tpu.matmul %27, %65, %cst_68 {dimension_numbers = #tpu.dot_dimension_numbers<[1], [0], [0], [1], [0, 0, 1, 1], [], []>} : vector<16x4xbf16>, vector<4x32xbf16>, vector<16x32xf32> -> vector<16x32xf32>
    %84 = arith.addf %82, %83 : vector<16x32xf32>
    %cst_69 = arith.constant dense<0.000000e+00> : vector<16x32xf32>
    %85 = tpu.matmul %28, %67, %cst_69 {dimension_numbers = #tpu.dot_dimension_numbers<[1], [0], [0], [1], [0, 0, 1, 1], [], []>} : vector<16x4xbf16>, vector<4x32xbf16>, vector<16x32xf32> -> vector<16x32xf32>
    %86 = arith.addf %84, %85 : vector<16x32xf32>
    %87 = vector.broadcast %68 : vector<1x32xf32> to vector<16x32xf32>
    %88 = arith.mulf %86, %87 : vector<16x32xf32>
    %89 = vector.broadcast %69 : vector<1x32xf32> to vector<16x32xf32>
    %90 = arith.addf %88, %89 : vector<16x32xf32>
    %cst_70 = arith.constant 0.000000e+00 : f32
    %91 = vector.broadcast %cst_70 : f32 to vector<16x32xf32>
    %92 = arith.maximumf %90, %91 : vector<16x32xf32>
    %c0_71 = arith.constant 0 : index
    %c0_72 = arith.constant 0 : index
    %c0_73 = arith.constant 0 : index
    %c0_74 = arith.constant 0 : index
    %93 = vector.load %arg15[%c0_71, %c0_72, %c0_73, %c0_74] : memref<1x8x16x32xf32, #tpu.memory_space<vmem>>, vector<1x1x16x32xf32>
    %94 = vector.shape_cast %93 : vector<1x1x16x32xf32> to vector<16x32xf32>
    %95 = vector.shape_cast %92 : vector<16x32xf32> to vector<1x1x16x32xf32>
    tpu.vector_store %arg15[%c0_71, %c0_72, %c0_73, %c0_74], %95 {strides = array<i32>} : memref<1x8x16x32xf32, #tpu.memory_space<vmem>>, vector<1x1x16x32xf32>,
    %cst_75 = arith.constant dense<0.000000e+00> : vector<16x32xf32>
    %96 = tpu.matmul %23, %51, %cst_75 {dimension_numbers = #tpu.dot_dimension_numbers<[1], [0], [0], [1], [0, 0, 1, 1], [], []>} : vector<16x4xbf16>, vector<4x32xbf16>, vector<16x32xf32> -> vector<16x32xf32>
    %cst_76 = arith.constant dense<0.000000e+00> : vector<16x32xf32>
    %97 = tpu.matmul %24, %53, %cst_76 {dimension_numbers = #tpu.dot_dimension_numbers<[1], [0], [0], [1], [0, 0, 1, 1], [], []>} : vector<16x4xbf16>, vector<4x32xbf16>, vector<16x32xf32> -> vector<16x32xf32>
    %98 = arith.addf %96, %97 : vector<16x32xf32>
    %cst_77 = arith.constant dense<0.000000e+00> : vector<16x32xf32>
    %99 = tpu.matmul %25, %55, %cst_77 {dimension_numbers = #tpu.dot_dimension_numbers<[1], [0], [0], [1], [0, 0, 1, 1], [], []>} : vector<16x4xbf16>, vector<4x32xbf16>, vector<16x32xf32> -> vector<16x32xf32>
    %100 = arith.addf %98, %99 : vector<16x32xf32>
    %cst_78 = arith.constant dense<0.000000e+00> : vector<16x32xf32>
    %101 = tpu.matmul %26, %57, %cst_78 {dimension_numbers = #tpu.dot_dimension_numbers<[1], [0], [0], [1], [0, 0, 1, 1], [], []>} : vector<16x4xbf16>, vector<4x32xbf16>, vector<16x32xf32> -> vector<16x32xf32>
    %102 = arith.addf %100, %101 : vector<16x32xf32>
    %cst_79 = arith.constant dense<0.000000e+00> : vector<16x32xf32>
    %103 = tpu.matmul %27, %59, %cst_79 {dimension_numbers = #tpu.dot_dimension_numbers<[1], [0], [0], [1], [0, 0, 1, 1], [], []>} : vector<16x4xbf16>, vector<4x32xbf16>, vector<16x32xf32> -> vector<16x32xf32>
    %104 = arith.addf %102, %103 : vector<16x32xf32>
    %cst_80 = arith.constant dense<0.000000e+00> : vector<16x32xf32>
    %105 = tpu.matmul %28, %61, %cst_80 {dimension_numbers = #tpu.dot_dimension_numbers<[1], [0], [0], [1], [0, 0, 1, 1], [], []>} : vector<16x4xbf16>, vector<4x32xbf16>, vector<16x32xf32> -> vector<16x32xf32>
    %106 = arith.addf %104, %105 : vector<16x32xf32>
    %cst_81 = arith.constant dense<0.000000e+00> : vector<16x32xf32>
    %107 = tpu.matmul %29, %63, %cst_81 {dimension_numbers = #tpu.dot_dimension_numbers<[1], [0], [0], [1], [0, 0, 1, 1], [], []>} : vector<16x4xbf16>, vector<4x32xbf16>, vector<16x32xf32> -> vector<16x32xf32>
    %108 = arith.addf %106, %107 : vector<16x32xf32>
    %cst_82 = arith.constant dense<0.000000e+00> : vector<16x32xf32>
    %109 = tpu.matmul %30, %65, %cst_82 {dimension_numbers = #tpu.dot_dimension_numbers<[1], [0], [0], [1], [0, 0, 1, 1], [], []>} : vector<16x4xbf16>, vector<4x32xbf16>, vector<16x32xf32> -> vector<16x32xf32>
    %110 = arith.addf %108, %109 : vector<16x32xf32>
    %cst_83 = arith.constant dense<0.000000e+00> : vector<16x32xf32>
    %111 = tpu.matmul %31, %67, %cst_83 {dimension_numbers = #tpu.dot_dimension_numbers<[1], [0], [0], [1], [0, 0, 1, 1], [], []>} : vector<16x4xbf16>, vector<4x32xbf16>, vector<16x32xf32> -> vector<16x32xf32>
    %112 = arith.addf %110, %111 : vector<16x32xf32>
    %113 = vector.broadcast %68 : vector<1x32xf32> to vector<16x32xf32>
    %114 = arith.mulf %112, %113 : vector<16x32xf32>
    %115 = vector.broadcast %69 : vector<1x32xf32> to vector<16x32xf32>
    %116 = arith.addf %114, %115 : vector<16x32xf32>
    %cst_84 = arith.constant 0.000000e+00 : f32
    %117 = vector.broadcast %cst_84 : f32 to vector<16x32xf32>
    %118 = arith.maximumf %116, %117 : vector<16x32xf32>
    %c0_85 = arith.constant 0 : index
    %c1_86 = arith.constant 1 : index
    %c0_87 = arith.constant 0 : index
    %c0_88 = arith.constant 0 : index
    %119 = vector.load %arg15[%c0_85, %c1_86, %c0_87, %c0_88] : memref<1x8x16x32xf32, #tpu.memory_space<vmem>>, vector<1x1x16x32xf32>
    %120 = vector.shape_cast %119 : vector<1x1x16x32xf32> to vector<16x32xf32>
    %121 = vector.shape_cast %118 : vector<16x32xf32> to vector<1x1x16x32xf32>
    tpu.vector_store %arg15[%c0_85, %c1_86, %c0_87, %c0_88], %121 {strides = array<i32>} : memref<1x8x16x32xf32, #tpu.memory_space<vmem>>, vector<1x1x16x32xf32>,
    %cst_89 = arith.constant dense<0.000000e+00> : vector<16x32xf32>
    %122 = tpu.matmul %26, %51, %cst_89 {dimension_numbers = #tpu.dot_dimension_numbers<[1], [0], [0], [1], [0, 0, 1, 1], [], []>} : vector<16x4xbf16>, vector<4x32xbf16>, vector<16x32xf32> -> vector<16x32xf32>
    %cst_90 = arith.constant dense<0.000000e+00> : vector<16x32xf32>
    %123 = tpu.matmul %27, %53, %cst_90 {dimension_numbers = #tpu.dot_dimension_numbers<[1], [0], [0], [1], [0, 0, 1, 1], [], []>} : vector<16x4xbf16>, vector<4x32xbf16>, vector<16x32xf32> -> vector<16x32xf32>
    %124 = arith.addf %122, %123 : vector<16x32xf32>
    %cst_91 = arith.constant dense<0.000000e+00> : vector<16x32xf32>
    %125 = tpu.matmul %28, %55, %cst_91 {dimension_numbers = #tpu.dot_dimension_numbers<[1], [0], [0], [1], [0, 0, 1, 1], [], []>} : vector<16x4xbf16>, vector<4x32xbf16>, vector<16x32xf32> -> vector<16x32xf32>
    %126 = arith.addf %124, %125 : vector<16x32xf32>
    %cst_92 = arith.constant dense<0.000000e+00> : vector<16x32xf32>
    %127 = tpu.matmul %29, %57, %cst_92 {dimension_numbers = #tpu.dot_dimension_numbers<[1], [0], [0], [1], [0, 0, 1, 1], [], []>} : vector<16x4xbf16>, vector<4x32xbf16>, vector<16x32xf32> -> vector<16x32xf32>
    %128 = arith.addf %126, %127 : vector<16x32xf32>
    %cst_93 = arith.constant dense<0.000000e+00> : vector<16x32xf32>
    %129 = tpu.matmul %30, %59, %cst_93 {dimension_numbers = #tpu.dot_dimension_numbers<[1], [0], [0], [1], [0, 0, 1, 1], [], []>} : vector<16x4xbf16>, vector<4x32xbf16>, vector<16x32xf32> -> vector<16x32xf32>
    %130 = arith.addf %128, %129 : vector<16x32xf32>
    %cst_94 = arith.constant dense<0.000000e+00> : vector<16x32xf32>
    %131 = tpu.matmul %31, %61, %cst_94 {dimension_numbers = #tpu.dot_dimension_numbers<[1], [0], [0], [1], [0, 0, 1, 1], [], []>} : vector<16x4xbf16>, vector<4x32xbf16>, vector<16x32xf32> -> vector<16x32xf32>
    %132 = arith.addf %130, %131 : vector<16x32xf32>
    %cst_95 = arith.constant dense<0.000000e+00> : vector<16x32xf32>
    %133 = tpu.matmul %32, %63, %cst_95 {dimension_numbers = #tpu.dot_dimension_numbers<[1], [0], [0], [1], [0, 0, 1, 1], [], []>} : vector<16x4xbf16>, vector<4x32xbf16>, vector<16x32xf32> -> vector<16x32xf32>
    %134 = arith.addf %132, %133 : vector<16x32xf32>
    %cst_96 = arith.constant dense<0.000000e+00> : vector<16x32xf32>
    %135 = tpu.matmul %33, %65, %cst_96 {dimension_numbers = #tpu.dot_dimension_numbers<[1], [0], [0], [1], [0, 0, 1, 1], [], []>} : vector<16x4xbf16>, vector<4x32xbf16>, vector<16x32xf32> -> vector<16x32xf32>
    %136 = arith.addf %134, %135 : vector<16x32xf32>
    %cst_97 = arith.constant dense<0.000000e+00> : vector<16x32xf32>
    %137 = tpu.matmul %34, %67, %cst_97 {dimension_numbers = #tpu.dot_dimension_numbers<[1], [0], [0], [1], [0, 0, 1, 1], [], []>} : vector<16x4xbf16>, vector<4x32xbf16>, vector<16x32xf32> -> vector<16x32xf32>
    %138 = arith.addf %136, %137 : vector<16x32xf32>
    %139 = vector.broadcast %68 : vector<1x32xf32> to vector<16x32xf32>
    %140 = arith.mulf %138, %139 : vector<16x32xf32>
    %141 = vector.broadcast %69 : vector<1x32xf32> to vector<16x32xf32>
    %142 = arith.addf %140, %141 : vector<16x32xf32>
    %cst_98 = arith.constant 0.000000e+00 : f32
    %143 = vector.broadcast %cst_98 : f32 to vector<16x32xf32>
    %144 = arith.maximumf %142, %143 : vector<16x32xf32>
    %c0_99 = arith.constant 0 : index
    %c2_100 = arith.constant 2 : index
    %c0_101 = arith.constant 0 : index
    %c0_102 = arith.constant 0 : index
    %145 = vector.load %arg15[%c0_99, %c2_100, %c0_101, %c0_102] : memref<1x8x16x32xf32, #tpu.memory_space<vmem>>, vector<1x1x16x32xf32>
    %146 = vector.shape_cast %145 : vector<1x1x16x32xf32> to vector<16x32xf32>
    %147 = vector.shape_cast %144 : vector<16x32xf32> to vector<1x1x16x32xf32>
    tpu.vector_store %arg15[%c0_99, %c2_100, %c0_101, %c0_102], %147 {strides = array<i32>} : memref<1x8x16x32xf32, #tpu.memory_space<vmem>>, vector<1x1x16x32xf32>,
    %cst_103 = arith.constant dense<0.000000e+00> : vector<16x32xf32>
    %148 = tpu.matmul %29, %51, %cst_103 {dimension_numbers = #tpu.dot_dimension_numbers<[1], [0], [0], [1], [0, 0, 1, 1], [], []>} : vector<16x4xbf16>, vector<4x32xbf16>, vector<16x32xf32> -> vector<16x32xf32>
    %cst_104 = arith.constant dense<0.000000e+00> : vector<16x32xf32>
    %149 = tpu.matmul %30, %53, %cst_104 {dimension_numbers = #tpu.dot_dimension_numbers<[1], [0], [0], [1], [0, 0, 1, 1], [], []>} : vector<16x4xbf16>, vector<4x32xbf16>, vector<16x32xf32> -> vector<16x32xf32>
    %150 = arith.addf %148, %149 : vector<16x32xf32>
    %cst_105 = arith.constant dense<0.000000e+00> : vector<16x32xf32>
    %151 = tpu.matmul %31, %55, %cst_105 {dimension_numbers = #tpu.dot_dimension_numbers<[1], [0], [0], [1], [0, 0, 1, 1], [], []>} : vector<16x4xbf16>, vector<4x32xbf16>, vector<16x32xf32> -> vector<16x32xf32>
    %152 = arith.addf %150, %151 : vector<16x32xf32>
    %cst_106 = arith.constant dense<0.000000e+00> : vector<16x32xf32>
    %153 = tpu.matmul %32, %57, %cst_106 {dimension_numbers = #tpu.dot_dimension_numbers<[1], [0], [0], [1], [0, 0, 1, 1], [], []>} : vector<16x4xbf16>, vector<4x32xbf16>, vector<16x32xf32> -> vector<16x32xf32>
    %154 = arith.addf %152, %153 : vector<16x32xf32>
    %cst_107 = arith.constant dense<0.000000e+00> : vector<16x32xf32>
    %155 = tpu.matmul %33, %59, %cst_107 {dimension_numbers = #tpu.dot_dimension_numbers<[1], [0], [0], [1], [0, 0, 1, 1], [], []>} : vector<16x4xbf16>, vector<4x32xbf16>, vector<16x32xf32> -> vector<16x32xf32>
    %156 = arith.addf %154, %155 : vector<16x32xf32>
    %cst_108 = arith.constant dense<0.000000e+00> : vector<16x32xf32>
    %157 = tpu.matmul %34, %61, %cst_108 {dimension_numbers = #tpu.dot_dimension_numbers<[1], [0], [0], [1], [0, 0, 1, 1], [], []>} : vector<16x4xbf16>, vector<4x32xbf16>, vector<16x32xf32> -> vector<16x32xf32>
    %158 = arith.addf %156, %157 : vector<16x32xf32>
    %cst_109 = arith.constant dense<0.000000e+00> : vector<16x32xf32>
    %159 = tpu.matmul %35, %63, %cst_109 {dimension_numbers = #tpu.dot_dimension_numbers<[1], [0], [0], [1], [0, 0, 1, 1], [], []>} : vector<16x4xbf16>, vector<4x32xbf16>, vector<16x32xf32> -> vector<16x32xf32>
    %160 = arith.addf %158, %159 : vector<16x32xf32>
    %cst_110 = arith.constant dense<0.000000e+00> : vector<16x32xf32>
    %161 = tpu.matmul %36, %65, %cst_110 {dimension_numbers = #tpu.dot_dimension_numbers<[1], [0], [0], [1], [0, 0, 1, 1], [], []>} : vector<16x4xbf16>, vector<4x32xbf16>, vector<16x32xf32> -> vector<16x32xf32>
    %162 = arith.addf %160, %161 : vector<16x32xf32>
    %cst_111 = arith.constant dense<0.000000e+00> : vector<16x32xf32>
    %163 = tpu.matmul %37, %67, %cst_111 {dimension_numbers = #tpu.dot_dimension_numbers<[1], [0], [0], [1], [0, 0, 1, 1], [], []>} : vector<16x4xbf16>, vector<4x32xbf16>, vector<16x32xf32> -> vector<16x32xf32>
    %164 = arith.addf %162, %163 : vector<16x32xf32>
    %165 = vector.broadcast %68 : vector<1x32xf32> to vector<16x32xf32>
    %166 = arith.mulf %164, %165 : vector<16x32xf32>
    %167 = vector.broadcast %69 : vector<1x32xf32> to vector<16x32xf32>
    %168 = arith.addf %166, %167 : vector<16x32xf32>
    %cst_112 = arith.constant 0.000000e+00 : f32
    %169 = vector.broadcast %cst_112 : f32 to vector<16x32xf32>
    %170 = arith.maximumf %168, %169 : vector<16x32xf32>
    %c0_113 = arith.constant 0 : index
    %c3_114 = arith.constant 3 : index
    %c0_115 = arith.constant 0 : index
    %c0_116 = arith.constant 0 : index
    %171 = vector.load %arg15[%c0_113, %c3_114, %c0_115, %c0_116] : memref<1x8x16x32xf32, #tpu.memory_space<vmem>>, vector<1x1x16x32xf32>
    %172 = vector.shape_cast %171 : vector<1x1x16x32xf32> to vector<16x32xf32>
    %173 = vector.shape_cast %170 : vector<16x32xf32> to vector<1x1x16x32xf32>
    tpu.vector_store %arg15[%c0_113, %c3_114, %c0_115, %c0_116], %173 {strides = array<i32>} : memref<1x8x16x32xf32, #tpu.memory_space<vmem>>, vector<1x1x16x32xf32>,
    %cst_117 = arith.constant dense<0.000000e+00> : vector<16x32xf32>
    %174 = tpu.matmul %32, %51, %cst_117 {dimension_numbers = #tpu.dot_dimension_numbers<[1], [0], [0], [1], [0, 0, 1, 1], [], []>} : vector<16x4xbf16>, vector<4x32xbf16>, vector<16x32xf32> -> vector<16x32xf32>
    %cst_118 = arith.constant dense<0.000000e+00> : vector<16x32xf32>
    %175 = tpu.matmul %33, %53, %cst_118 {dimension_numbers = #tpu.dot_dimension_numbers<[1], [0], [0], [1], [0, 0, 1, 1], [], []>} : vector<16x4xbf16>, vector<4x32xbf16>, vector<16x32xf32> -> vector<16x32xf32>
    %176 = arith.addf %174, %175 : vector<16x32xf32>
    %cst_119 = arith.constant dense<0.000000e+00> : vector<16x32xf32>
    %177 = tpu.matmul %34, %55, %cst_119 {dimension_numbers = #tpu.dot_dimension_numbers<[1], [0], [0], [1], [0, 0, 1, 1], [], []>} : vector<16x4xbf16>, vector<4x32xbf16>, vector<16x32xf32> -> vector<16x32xf32>
    %178 = arith.addf %176, %177 : vector<16x32xf32>
    %cst_120 = arith.constant dense<0.000000e+00> : vector<16x32xf32>
    %179 = tpu.matmul %35, %57, %cst_120 {dimension_numbers = #tpu.dot_dimension_numbers<[1], [0], [0], [1], [0, 0, 1, 1], [], []>} : vector<16x4xbf16>, vector<4x32xbf16>, vector<16x32xf32> -> vector<16x32xf32>
    %180 = arith.addf %178, %179 : vector<16x32xf32>
    %cst_121 = arith.constant dense<0.000000e+00> : vector<16x32xf32>
    %181 = tpu.matmul %36, %59, %cst_121 {dimension_numbers = #tpu.dot_dimension_numbers<[1], [0], [0], [1], [0, 0, 1, 1], [], []>} : vector<16x4xbf16>, vector<4x32xbf16>, vector<16x32xf32> -> vector<16x32xf32>
    %182 = arith.addf %180, %181 : vector<16x32xf32>
    %cst_122 = arith.constant dense<0.000000e+00> : vector<16x32xf32>
    %183 = tpu.matmul %37, %61, %cst_122 {dimension_numbers = #tpu.dot_dimension_numbers<[1], [0], [0], [1], [0, 0, 1, 1], [], []>} : vector<16x4xbf16>, vector<4x32xbf16>, vector<16x32xf32> -> vector<16x32xf32>
    %184 = arith.addf %182, %183 : vector<16x32xf32>
    %cst_123 = arith.constant dense<0.000000e+00> : vector<16x32xf32>
    %185 = tpu.matmul %38, %63, %cst_123 {dimension_numbers = #tpu.dot_dimension_numbers<[1], [0], [0], [1], [0, 0, 1, 1], [], []>} : vector<16x4xbf16>, vector<4x32xbf16>, vector<16x32xf32> -> vector<16x32xf32>
    %186 = arith.addf %184, %185 : vector<16x32xf32>
    %cst_124 = arith.constant dense<0.000000e+00> : vector<16x32xf32>
    %187 = tpu.matmul %39, %65, %cst_124 {dimension_numbers = #tpu.dot_dimension_numbers<[1], [0], [0], [1], [0, 0, 1, 1], [], []>} : vector<16x4xbf16>, vector<4x32xbf16>, vector<16x32xf32> -> vector<16x32xf32>
    %188 = arith.addf %186, %187 : vector<16x32xf32>
    %cst_125 = arith.constant dense<0.000000e+00> : vector<16x32xf32>
    %189 = tpu.matmul %40, %67, %cst_125 {dimension_numbers = #tpu.dot_dimension_numbers<[1], [0], [0], [1], [0, 0, 1, 1], [], []>} : vector<16x4xbf16>, vector<4x32xbf16>, vector<16x32xf32> -> vector<16x32xf32>
    %190 = arith.addf %188, %189 : vector<16x32xf32>
    %191 = vector.broadcast %68 : vector<1x32xf32> to vector<16x32xf32>
    %192 = arith.mulf %190, %191 : vector<16x32xf32>
    %193 = vector.broadcast %69 : vector<1x32xf32> to vector<16x32xf32>
    %194 = arith.addf %192, %193 : vector<16x32xf32>
    %cst_126 = arith.constant 0.000000e+00 : f32
    %195 = vector.broadcast %cst_126 : f32 to vector<16x32xf32>
    %196 = arith.maximumf %194, %195 : vector<16x32xf32>
    %c0_127 = arith.constant 0 : index
    %c4_128 = arith.constant 4 : index
    %c0_129 = arith.constant 0 : index
    %c0_130 = arith.constant 0 : index
    %197 = vector.load %arg15[%c0_127, %c4_128, %c0_129, %c0_130] : memref<1x8x16x32xf32, #tpu.memory_space<vmem>>, vector<1x1x16x32xf32>
    %198 = vector.shape_cast %197 : vector<1x1x16x32xf32> to vector<16x32xf32>
    %199 = vector.shape_cast %196 : vector<16x32xf32> to vector<1x1x16x32xf32>
    tpu.vector_store %arg15[%c0_127, %c4_128, %c0_129, %c0_130], %199 {strides = array<i32>} : memref<1x8x16x32xf32, #tpu.memory_space<vmem>>, vector<1x1x16x32xf32>,
    %cst_131 = arith.constant dense<0.000000e+00> : vector<16x32xf32>
    %200 = tpu.matmul %35, %51, %cst_131 {dimension_numbers = #tpu.dot_dimension_numbers<[1], [0], [0], [1], [0, 0, 1, 1], [], []>} : vector<16x4xbf16>, vector<4x32xbf16>, vector<16x32xf32> -> vector<16x32xf32>
    %cst_132 = arith.constant dense<0.000000e+00> : vector<16x32xf32>
    %201 = tpu.matmul %36, %53, %cst_132 {dimension_numbers = #tpu.dot_dimension_numbers<[1], [0], [0], [1], [0, 0, 1, 1], [], []>} : vector<16x4xbf16>, vector<4x32xbf16>, vector<16x32xf32> -> vector<16x32xf32>
    %202 = arith.addf %200, %201 : vector<16x32xf32>
    %cst_133 = arith.constant dense<0.000000e+00> : vector<16x32xf32>
    %203 = tpu.matmul %37, %55, %cst_133 {dimension_numbers = #tpu.dot_dimension_numbers<[1], [0], [0], [1], [0, 0, 1, 1], [], []>} : vector<16x4xbf16>, vector<4x32xbf16>, vector<16x32xf32> -> vector<16x32xf32>
    %204 = arith.addf %202, %203 : vector<16x32xf32>
    %cst_134 = arith.constant dense<0.000000e+00> : vector<16x32xf32>
    %205 = tpu.matmul %38, %57, %cst_134 {dimension_numbers = #tpu.dot_dimension_numbers<[1], [0], [0], [1], [0, 0, 1, 1], [], []>} : vector<16x4xbf16>, vector<4x32xbf16>, vector<16x32xf32> -> vector<16x32xf32>
    %206 = arith.addf %204, %205 : vector<16x32xf32>
    %cst_135 = arith.constant dense<0.000000e+00> : vector<16x32xf32>
    %207 = tpu.matmul %39, %59, %cst_135 {dimension_numbers = #tpu.dot_dimension_numbers<[1], [0], [0], [1], [0, 0, 1, 1], [], []>} : vector<16x4xbf16>, vector<4x32xbf16>, vector<16x32xf32> -> vector<16x32xf32>
    %208 = arith.addf %206, %207 : vector<16x32xf32>
    %cst_136 = arith.constant dense<0.000000e+00> : vector<16x32xf32>
    %209 = tpu.matmul %40, %61, %cst_136 {dimension_numbers = #tpu.dot_dimension_numbers<[1], [0], [0], [1], [0, 0, 1, 1], [], []>} : vector<16x4xbf16>, vector<4x32xbf16>, vector<16x32xf32> -> vector<16x32xf32>
    %210 = arith.addf %208, %209 : vector<16x32xf32>
    %cst_137 = arith.constant dense<0.000000e+00> : vector<16x32xf32>
    %211 = tpu.matmul %41, %63, %cst_137 {dimension_numbers = #tpu.dot_dimension_numbers<[1], [0], [0], [1], [0, 0, 1, 1], [], []>} : vector<16x4xbf16>, vector<4x32xbf16>, vector<16x32xf32> -> vector<16x32xf32>
    %212 = arith.addf %210, %211 : vector<16x32xf32>
    %cst_138 = arith.constant dense<0.000000e+00> : vector<16x32xf32>
    %213 = tpu.matmul %42, %65, %cst_138 {dimension_numbers = #tpu.dot_dimension_numbers<[1], [0], [0], [1], [0, 0, 1, 1], [], []>} : vector<16x4xbf16>, vector<4x32xbf16>, vector<16x32xf32> -> vector<16x32xf32>
    %214 = arith.addf %212, %213 : vector<16x32xf32>
    %cst_139 = arith.constant dense<0.000000e+00> : vector<16x32xf32>
    %215 = tpu.matmul %43, %67, %cst_139 {dimension_numbers = #tpu.dot_dimension_numbers<[1], [0], [0], [1], [0, 0, 1, 1], [], []>} : vector<16x4xbf16>, vector<4x32xbf16>, vector<16x32xf32> -> vector<16x32xf32>
    %216 = arith.addf %214, %215 : vector<16x32xf32>
    %217 = vector.broadcast %68 : vector<1x32xf32> to vector<16x32xf32>
    %218 = arith.mulf %216, %217 : vector<16x32xf32>
    %219 = vector.broadcast %69 : vector<1x32xf32> to vector<16x32xf32>
    %220 = arith.addf %218, %219 : vector<16x32xf32>
    %cst_140 = arith.constant 0.000000e+00 : f32
    %221 = vector.broadcast %cst_140 : f32 to vector<16x32xf32>
    %222 = arith.maximumf %220, %221 : vector<16x32xf32>
    %c0_141 = arith.constant 0 : index
    %c5_142 = arith.constant 5 : index
    %c0_143 = arith.constant 0 : index
    %c0_144 = arith.constant 0 : index
    %223 = vector.load %arg15[%c0_141, %c5_142, %c0_143, %c0_144] : memref<1x8x16x32xf32, #tpu.memory_space<vmem>>, vector<1x1x16x32xf32>
    %224 = vector.shape_cast %223 : vector<1x1x16x32xf32> to vector<16x32xf32>
    %225 = vector.shape_cast %222 : vector<16x32xf32> to vector<1x1x16x32xf32>
    tpu.vector_store %arg15[%c0_141, %c5_142, %c0_143, %c0_144], %225 {strides = array<i32>} : memref<1x8x16x32xf32, #tpu.memory_space<vmem>>, vector<1x1x16x32xf32>,
    %cst_145 = arith.constant dense<0.000000e+00> : vector<16x32xf32>
    %226 = tpu.matmul %38, %51, %cst_145 {dimension_numbers = #tpu.dot_dimension_numbers<[1], [0], [0], [1], [0, 0, 1, 1], [], []>} : vector<16x4xbf16>, vector<4x32xbf16>, vector<16x32xf32> -> vector<16x32xf32>
    %cst_146 = arith.constant dense<0.000000e+00> : vector<16x32xf32>
    %227 = tpu.matmul %39, %53, %cst_146 {dimension_numbers = #tpu.dot_dimension_numbers<[1], [0], [0], [1], [0, 0, 1, 1], [], []>} : vector<16x4xbf16>, vector<4x32xbf16>, vector<16x32xf32> -> vector<16x32xf32>
    %228 = arith.addf %226, %227 : vector<16x32xf32>
    %cst_147 = arith.constant dense<0.000000e+00> : vector<16x32xf32>
    %229 = tpu.matmul %40, %55, %cst_147 {dimension_numbers = #tpu.dot_dimension_numbers<[1], [0], [0], [1], [0, 0, 1, 1], [], []>} : vector<16x4xbf16>, vector<4x32xbf16>, vector<16x32xf32> -> vector<16x32xf32>
    %230 = arith.addf %228, %229 : vector<16x32xf32>
    %cst_148 = arith.constant dense<0.000000e+00> : vector<16x32xf32>
    %231 = tpu.matmul %41, %57, %cst_148 {dimension_numbers = #tpu.dot_dimension_numbers<[1], [0], [0], [1], [0, 0, 1, 1], [], []>} : vector<16x4xbf16>, vector<4x32xbf16>, vector<16x32xf32> -> vector<16x32xf32>
    %232 = arith.addf %230, %231 : vector<16x32xf32>
    %cst_149 = arith.constant dense<0.000000e+00> : vector<16x32xf32>
    %233 = tpu.matmul %42, %59, %cst_149 {dimension_numbers = #tpu.dot_dimension_numbers<[1], [0], [0], [1], [0, 0, 1, 1], [], []>} : vector<16x4xbf16>, vector<4x32xbf16>, vector<16x32xf32> -> vector<16x32xf32>
    %234 = arith.addf %232, %233 : vector<16x32xf32>
    %cst_150 = arith.constant dense<0.000000e+00> : vector<16x32xf32>
    %235 = tpu.matmul %43, %61, %cst_150 {dimension_numbers = #tpu.dot_dimension_numbers<[1], [0], [0], [1], [0, 0, 1, 1], [], []>} : vector<16x4xbf16>, vector<4x32xbf16>, vector<16x32xf32> -> vector<16x32xf32>
    %236 = arith.addf %234, %235 : vector<16x32xf32>
    %cst_151 = arith.constant dense<0.000000e+00> : vector<16x32xf32>
    %237 = tpu.matmul %44, %63, %cst_151 {dimension_numbers = #tpu.dot_dimension_numbers<[1], [0], [0], [1], [0, 0, 1, 1], [], []>} : vector<16x4xbf16>, vector<4x32xbf16>, vector<16x32xf32> -> vector<16x32xf32>
    %238 = arith.addf %236, %237 : vector<16x32xf32>
    %cst_152 = arith.constant dense<0.000000e+00> : vector<16x32xf32>
    %239 = tpu.matmul %45, %65, %cst_152 {dimension_numbers = #tpu.dot_dimension_numbers<[1], [0], [0], [1], [0, 0, 1, 1], [], []>} : vector<16x4xbf16>, vector<4x32xbf16>, vector<16x32xf32> -> vector<16x32xf32>
    %240 = arith.addf %238, %239 : vector<16x32xf32>
    %cst_153 = arith.constant dense<0.000000e+00> : vector<16x32xf32>
    %241 = tpu.matmul %46, %67, %cst_153 {dimension_numbers = #tpu.dot_dimension_numbers<[1], [0], [0], [1], [0, 0, 1, 1], [], []>} : vector<16x4xbf16>, vector<4x32xbf16>, vector<16x32xf32> -> vector<16x32xf32>
    %242 = arith.addf %240, %241 : vector<16x32xf32>
    %243 = vector.broadcast %68 : vector<1x32xf32> to vector<16x32xf32>
    %244 = arith.mulf %242, %243 : vector<16x32xf32>
    %245 = vector.broadcast %69 : vector<1x32xf32> to vector<16x32xf32>
    %246 = arith.addf %244, %245 : vector<16x32xf32>
    %cst_154 = arith.constant 0.000000e+00 : f32
    %247 = vector.broadcast %cst_154 : f32 to vector<16x32xf32>
    %248 = arith.maximumf %246, %247 : vector<16x32xf32>
    %c0_155 = arith.constant 0 : index
    %c6_156 = arith.constant 6 : index
    %c0_157 = arith.constant 0 : index
    %c0_158 = arith.constant 0 : index
    %249 = vector.load %arg15[%c0_155, %c6_156, %c0_157, %c0_158] : memref<1x8x16x32xf32, #tpu.memory_space<vmem>>, vector<1x1x16x32xf32>
    %250 = vector.shape_cast %249 : vector<1x1x16x32xf32> to vector<16x32xf32>
    %251 = vector.shape_cast %248 : vector<16x32xf32> to vector<1x1x16x32xf32>
    tpu.vector_store %arg15[%c0_155, %c6_156, %c0_157, %c0_158], %251 {strides = array<i32>} : memref<1x8x16x32xf32, #tpu.memory_space<vmem>>, vector<1x1x16x32xf32>,
    %cst_159 = arith.constant dense<0.000000e+00> : vector<16x32xf32>
    %252 = tpu.matmul %41, %51, %cst_159 {dimension_numbers = #tpu.dot_dimension_numbers<[1], [0], [0], [1], [0, 0, 1, 1], [], []>} : vector<16x4xbf16>, vector<4x32xbf16>, vector<16x32xf32> -> vector<16x32xf32>
    %cst_160 = arith.constant dense<0.000000e+00> : vector<16x32xf32>
    %253 = tpu.matmul %42, %53, %cst_160 {dimension_numbers = #tpu.dot_dimension_numbers<[1], [0], [0], [1], [0, 0, 1, 1], [], []>} : vector<16x4xbf16>, vector<4x32xbf16>, vector<16x32xf32> -> vector<16x32xf32>
    %254 = arith.addf %252, %253 : vector<16x32xf32>
    %cst_161 = arith.constant dense<0.000000e+00> : vector<16x32xf32>
    %255 = tpu.matmul %43, %55, %cst_161 {dimension_numbers = #tpu.dot_dimension_numbers<[1], [0], [0], [1], [0, 0, 1, 1], [], []>} : vector<16x4xbf16>, vector<4x32xbf16>, vector<16x32xf32> -> vector<16x32xf32>
    %256 = arith.addf %254, %255 : vector<16x32xf32>
    %cst_162 = arith.constant dense<0.000000e+00> : vector<16x32xf32>
    %257 = tpu.matmul %44, %57, %cst_162 {dimension_numbers = #tpu.dot_dimension_numbers<[1], [0], [0], [1], [0, 0, 1, 1], [], []>} : vector<16x4xbf16>, vector<4x32xbf16>, vector<16x32xf32> -> vector<16x32xf32>
    %258 = arith.addf %256, %257 : vector<16x32xf32>
    %cst_163 = arith.constant dense<0.000000e+00> : vector<16x32xf32>
    %259 = tpu.matmul %45, %59, %cst_163 {dimension_numbers = #tpu.dot_dimension_numbers<[1], [0], [0], [1], [0, 0, 1, 1], [], []>} : vector<16x4xbf16>, vector<4x32xbf16>, vector<16x32xf32> -> vector<16x32xf32>
    %260 = arith.addf %258, %259 : vector<16x32xf32>
    %cst_164 = arith.constant dense<0.000000e+00> : vector<16x32xf32>
    %261 = tpu.matmul %46, %61, %cst_164 {dimension_numbers = #tpu.dot_dimension_numbers<[1], [0], [0], [1], [0, 0, 1, 1], [], []>} : vector<16x4xbf16>, vector<4x32xbf16>, vector<16x32xf32> -> vector<16x32xf32>
    %262 = arith.addf %260, %261 : vector<16x32xf32>
    %cst_165 = arith.constant dense<0.000000e+00> : vector<16x32xf32>
    %263 = tpu.matmul %47, %63, %cst_165 {dimension_numbers = #tpu.dot_dimension_numbers<[1], [0], [0], [1], [0, 0, 1, 1], [], []>} : vector<16x4xbf16>, vector<4x32xbf16>, vector<16x32xf32> -> vector<16x32xf32>
    %264 = arith.addf %262, %263 : vector<16x32xf32>
    %cst_166 = arith.constant dense<0.000000e+00> : vector<16x32xf32>
    %265 = tpu.matmul %48, %65, %cst_166 {dimension_numbers = #tpu.dot_dimension_numbers<[1], [0], [0], [1], [0, 0, 1, 1], [], []>} : vector<16x4xbf16>, vector<4x32xbf16>, vector<16x32xf32> -> vector<16x32xf32>
    %266 = arith.addf %264, %265 : vector<16x32xf32>
    %cst_167 = arith.constant dense<0.000000e+00> : vector<16x32xf32>
    %267 = tpu.matmul %49, %67, %cst_167 {dimension_numbers = #tpu.dot_dimension_numbers<[1], [0], [0], [1], [0, 0, 1, 1], [], []>} : vector<16x4xbf16>, vector<4x32xbf16>, vector<16x32xf32> -> vector<16x32xf32>
    %268 = arith.addf %266, %267 : vector<16x32xf32>
    %269 = vector.broadcast %68 : vector<1x32xf32> to vector<16x32xf32>
    %270 = arith.mulf %268, %269 : vector<16x32xf32>
    %271 = vector.broadcast %69 : vector<1x32xf32> to vector<16x32xf32>
    %272 = arith.addf %270, %271 : vector<16x32xf32>
    %cst_168 = arith.constant 0.000000e+00 : f32
    %273 = vector.broadcast %cst_168 : f32 to vector<16x32xf32>
    %274 = arith.maximumf %272, %273 : vector<16x32xf32>
    %c0_169 = arith.constant 0 : index
    %c7_170 = arith.constant 7 : index
    %c0_171 = arith.constant 0 : index
    %c0_172 = arith.constant 0 : index
    %275 = vector.load %arg15[%c0_169, %c7_170, %c0_171, %c0_172] : memref<1x8x16x32xf32, #tpu.memory_space<vmem>>, vector<1x1x16x32xf32>
    %276 = vector.shape_cast %275 : vector<1x1x16x32xf32> to vector<16x32xf32>
    %277 = vector.shape_cast %274 : vector<16x32xf32> to vector<1x1x16x32xf32>
    tpu.vector_store %arg15[%c0_169, %c7_170, %c0_171, %c0_172], %277 {strides = array<i32>} : memref<1x8x16x32xf32, #tpu.memory_space<vmem>>, vector<1x1x16x32xf32>,
    return
  }
  func.func @transform_0(%arg0: i32, %arg1: i32) -> (i32, i32, i32, i32) {
    %c8_i32 = arith.constant 8 : i32
    %0 = arith.muli %arg1, %c8_i32 : i32
    %c0_i32 = arith.constant 0 : i32
    %1 = arith.addi %0, %c0_i32 : i32
    %c0_i32_0 = arith.constant 0 : i32
    %c0_i32_1 = arith.constant 0 : i32
    %c0_i32_2 = arith.constant 0 : i32
    return %arg0, %1, %c0_i32_0, %c0_i32_1 : i32, i32, i32, i32
  }
  func.func @transform_1(%arg0: i32, %arg1: i32) -> (i32, i32, i32, i32) {
    %c8_i32 = arith.constant 8 : i32
    %0 = arith.muli %arg1, %c8_i32 : i32
    %c1_i32 = arith.constant 1 : i32
    %1 = arith.addi %0, %c1_i32 : i32
    %c0_i32 = arith.constant 0 : i32
    %c0_i32_0 = arith.constant 0 : i32
    %c0_i32_1 = arith.constant 0 : i32
    return %arg0, %1, %c0_i32, %c0_i32_0 : i32, i32, i32, i32
  }
  func.func @transform_2(%arg0: i32, %arg1: i32) -> (i32, i32, i32, i32) {
    %c8_i32 = arith.constant 8 : i32
    %0 = arith.muli %arg1, %c8_i32 : i32
    %c2_i32 = arith.constant 2 : i32
    %1 = arith.addi %0, %c2_i32 : i32
    %c0_i32 = arith.constant 0 : i32
    %c0_i32_0 = arith.constant 0 : i32
    %c0_i32_1 = arith.constant 0 : i32
    return %arg0, %1, %c0_i32, %c0_i32_0 : i32, i32, i32, i32
  }
  func.func @transform_3(%arg0: i32, %arg1: i32) -> (i32, i32, i32, i32) {
    %c8_i32 = arith.constant 8 : i32
    %0 = arith.muli %arg1, %c8_i32 : i32
    %c3_i32 = arith.constant 3 : i32
    %1 = arith.addi %0, %c3_i32 : i32
    %c0_i32 = arith.constant 0 : i32
    %c0_i32_0 = arith.constant 0 : i32
    %c0_i32_1 = arith.constant 0 : i32
    return %arg0, %1, %c0_i32, %c0_i32_0 : i32, i32, i32, i32
  }
  func.func @transform_4(%arg0: i32, %arg1: i32) -> (i32, i32, i32, i32) {
    %c8_i32 = arith.constant 8 : i32
    %0 = arith.muli %arg1, %c8_i32 : i32
    %c4_i32 = arith.constant 4 : i32
    %1 = arith.addi %0, %c4_i32 : i32
    %c0_i32 = arith.constant 0 : i32
    %c0_i32_0 = arith.constant 0 : i32
    %c0_i32_1 = arith.constant 0 : i32
    return %arg0, %1, %c0_i32, %c0_i32_0 : i32, i32, i32, i32
  }
  func.func @transform_5(%arg0: i32, %arg1: i32) -> (i32, i32, i32, i32) {
    %c8_i32 = arith.constant 8 : i32
    %0 = arith.muli %arg1, %c8_i32 : i32
    %c5_i32 = arith.constant 5 : i32
    %1 = arith.addi %0, %c5_i32 : i32
    %c0_i32 = arith.constant 0 : i32
    %c0_i32_0 = arith.constant 0 : i32
    %c0_i32_1 = arith.constant 0 : i32
    return %arg0, %1, %c0_i32, %c0_i32_0 : i32, i32, i32, i32
  }
  func.func @transform_6(%arg0: i32, %arg1: i32) -> (i32, i32, i32, i32) {
    %c8_i32 = arith.constant 8 : i32
    %0 = arith.muli %arg1, %c8_i32 : i32
    %c6_i32 = arith.constant 6 : i32
    %1 = arith.addi %0, %c6_i32 : i32
    %c0_i32 = arith.constant 0 : i32
    %c0_i32_0 = arith.constant 0 : i32
    %c0_i32_1 = arith.constant 0 : i32
    return %arg0, %1, %c0_i32, %c0_i32_0 : i32, i32, i32, i32
  }
  func.func @transform_7(%arg0: i32, %arg1: i32) -> (i32, i32, i32, i32) {
    %c8_i32 = arith.constant 8 : i32
    %0 = arith.muli %arg1, %c8_i32 : i32
    %c7_i32 = arith.constant 7 : i32
    %1 = arith.addi %0, %c7_i32 : i32
    %c0_i32 = arith.constant 0 : i32
    %c0_i32_0 = arith.constant 0 : i32
    %c0_i32_1 = arith.constant 0 : i32
    return %arg0, %1, %c0_i32, %c0_i32_0 : i32, i32, i32, i32
  }
  func.func @transform_8(%arg0: i32, %arg1: i32) -> (i32, i32, i32, i32) {
    %c8_i32 = arith.constant 8 : i32
    %0 = arith.muli %arg1, %c8_i32 : i32
    %c8_i32_0 = arith.constant 8 : i32
    %1 = arith.addi %0, %c8_i32_0 : i32
    %c0_i32 = arith.constant 0 : i32
    %c0_i32_1 = arith.constant 0 : i32
    %c0_i32_2 = arith.constant 0 : i32
    return %arg0, %1, %c0_i32, %c0_i32_1 : i32, i32, i32, i32
  }
  func.func @transform_9(%arg0: i32, %arg1: i32) -> (i32, i32, i32, i32) {
    %c8_i32 = arith.constant 8 : i32
    %0 = arith.muli %arg1, %c8_i32 : i32
    %c9_i32 = arith.constant 9 : i32
    %1 = arith.addi %0, %c9_i32 : i32
    %c0_i32 = arith.constant 0 : i32
    %c0_i32_0 = arith.constant 0 : i32
    %c0_i32_1 = arith.constant 0 : i32
    return %arg0, %1, %c0_i32, %c0_i32_0 : i32, i32, i32, i32
  }
  func.func @transform_10(%arg0: i32, %arg1: i32) -> (i32, i32, i32) {
    %c0_i32 = arith.constant 0 : i32
    %c0_i32_0 = arith.constant 0 : i32
    %c0_i32_1 = arith.constant 0 : i32
    %c0_i32_2 = arith.constant 0 : i32
    return %c0_i32, %c0_i32_0, %c0_i32_1 : i32, i32, i32
  }
  func.func @transform_11(%arg0: i32, %arg1: i32) -> (i32, i32) {
    %c0_i32 = arith.constant 0 : i32
    %c0_i32_0 = arith.constant 0 : i32
    %c0_i32_1 = arith.constant 0 : i32
    return %c0_i32, %c0_i32_0 : i32, i32
  }
  func.func @transform_12(%arg0: i32, %arg1: i32) -> (i32, i32) {
    %c0_i32 = arith.constant 0 : i32
    %c0_i32_0 = arith.constant 0 : i32
    %c0_i32_1 = arith.constant 0 : i32
    return %c0_i32, %c0_i32_0 : i32, i32
  }
  func.func @transform_13(%arg0: i32, %arg1: i32) -> (i32, i32, i32, i32) {
    %c0_i32 = arith.constant 0 : i32
    %c0_i32_0 = arith.constant 0 : i32
    %c0_i32_1 = arith.constant 0 : i32
    return %arg0, %arg1, %c0_i32, %c0_i32_0 : i32, i32, i32, i32
  }
}

</mosaic_0001>

<bundles_post_ra>
// kernel: tile.18
= control target key start
LH: loop header
LB: loop body
LE: loop exit
PB: predicated region body
PF: predicated region fallthrough
CT: control target
= control target key end

     0   :  { %s22_s0 = inlined_call_operand.vmem [shape: f32[8], index: 0, kind: input, shape index: {}]   ;;  %s23_s1 = inlined_call_operand.vmem [shape: f32[4,8], index: 1, kind: output, shape index: {}]  }
   0x1   :  { %v4_v0 = vld [vmem:[%s22_s0] ss:$0 sm:$0xff] }
   0x2   :  { %5 = vst [vmem:[%s23_s1] sm:$0xf] %v4_v0 }

// kernel: tile.19
= control target key start
LH: loop header
LB: loop body
LE: loop exit
PB: predicated region body
PF: predicated region fallthrough
CT: control target
= control target key end

     0   :  { %s37_s8 = smov 8   ;;  %s38_s9 = smov 16   ;;  %vm7_vm0 = vcmask 64512   ;;  %vm13_vm1 = vcmask 261312   ;;  %vm19_vm2 = vcmask 195712   ;;  %vm25_vm3 = vcmask 130112   ;;  %s55_s0 = inlined_call_operand.vmem [shape: f32[4,8], index: 0, kind: input, shape index: {}]   ;;  %s56_s1 = inlined_call_operand.vmem [shape: f32[1,32], index: 1, kind: output, shape index: {}]  }
   0x1   :  { %v4_v0 = vld [vmem:[%s55_s0] sm:$0xf]  ;;  %s36_s0 = smov 24  }
   0x2   :  { %5 = vst [vmem:[#allocation1] sm:$0xf] %v4_v0 }
   0x9   :  { %v10_v1 = vld [vmem:[#allocation1 + $0x3] sm:$0x1]   ;;  %v22_v2 = vld [vmem:[#allocation1 + $0x1] sm:$0x1]   ;;  %v16_v3 = vld [vmem:[#allocation1 + $0x2] sm:$0x1]  }
   0xa   :  { %11 = vrot.lane.b32.xlu0 %v10_v1, %s36_s0  ;;  %23 = vrot.lane.b32.xlu1 %v22_v2, %s37_s8  ;;  %v6_v4 = vld [vmem:[#allocation1] sm:$0x1]  }
   0xb   :  { %8 = vst.msk [vmem:[#allocation0] sm:$0x1] %vm7_vm0, %v6_v4  }
  0x12   :  { %17 = vrot.lane.b32.xlu0 %v16_v3, %s38_s9 }
  0x7c   :  { %v12_v5 = vpop.permute.xlu0 %11   ;;  %v24_v6 = vpop.permute.xlu1 %23  }
  0x7d   :  { %14 = vst.msk [vmem:[#allocation0] sm:$0x1] %vm13_vm1, %v12_v5  }
  0x84   :  { %v18_v7 = vpop.permute.xlu0 %17  }
  0x85   :  { %20 = vst.msk [vmem:[#allocation0] sm:$0x1] %vm19_vm2, %v18_v7  }
  0x86   :  { %26 = vst.msk [vmem:[#allocation0] sm:$0x1] %vm25_vm3, %v24_v6  }
  0x8d   :  { %v29_v8 = vld [vmem:[#allocation0] sm:$0x1] }
  0x8e   :  { %32 = vst [vmem:[%s56_s1] sm:$0x1] %v29_v8 }

// kernel: up_conv_layer.2
= control target key start
LH: loop header
LB: loop body
LE: loop exit
PB: predicated region body
PF: predicated region fallthrough
CT: control target
= control target key end

     0   :  { %s3256_s21 = smov 0   ;;  %s3258_s22 = smov 0   ;;  %s3839_s0 = inlined_call_operand.vmem [shape: bf16[2,18,18,4], index: 0, kind: input, shape index: {}, may-alias: {0,1,2,3,4,5,6,7,8,9}]   ;;  %s3840_s1 = inlined_call_operand.vmem [shape: bf16[2,18,18,4], index: 1, kind: input, shape index: {}, may-alias: {0,1,2,3,4,5,6,7,8,9}]   ;;  %s3841_s2 = inlined_call_operand.vmem [shape: bf16[2,18,18,4], index: 2, kind: input, shape index: {}, may-alias: {0,1,2,3,4,5,6,7,8,9}]   ;;  %s3842_s3 = inlined_call_operand.vmem [shape: bf16[2,18,18,4], index: 3, kind: input, shape index: {}, may-alias: {0,1,2,3,4,5,6,7,8,9}]   ;;  %s3843_s4 = inlined_call_operand.vmem [shape: bf16[2,18,18,4], index: 4, kind: input, shape index: {}, may-alias: {0,1,2,3,4,5,6,7,8,9}]   ;;  %s3844_s5 = inlined_call_operand.vmem [shape: bf16[2,18,18,4], index: 5, kind: input, shape index: {}, may-alias: {0,1,2,3,4,5,6,7,8,9}]   ;;  %s3845_s6 = inlined_call_operand.vmem [shape: bf16[2,18,18,4], index: 6, kind: input, shape index: {}, may-alias: {0,1,2,3,4,5,6,7,8,9}]   ;;  %s3846_s7 = inlined_call_operand.vmem [shape: bf16[2,18,18,4], index: 7, kind: input, shape index: {}, may-alias: {0,1,2,3,4,5,6,7,8,9}]   ;;  %s3847_s8 = inlined_call_operand.vmem [shape: bf16[2,18,18,4], index: 8, kind: input, shape index: {}, may-alias: {0,1,2,3,4,5,6,7,8,9}]   ;;  %s3848_s9 = inlined_call_operand.vmem [shape: bf16[2,18,18,4], index: 9, kind: input, shape index: {}, may-alias: {0,1,2,3,4,5,6,7,8,9}]   ;;  %s3849_s10 = inlined_call_operand.vmem [shape: bf16[9,4,32], index: 10, kind: input, shape index: {}]   ;;  %s3850_s11 = inlined_call_operand.vmem [shape: f32[2,2,1,32], index: 11, kind: output, shape index: {0}]   ;;  %s3851_s12 = inlined_call_operand.vmem [shape: f32[2,2,1,32], index: 12, kind: output, shape index: {1}]  }
   0x1   :  { %s3260_s23 = smov 0   ;;  %s3262_s24 = smov 0  }
   0x2   :  { %s3264_s25 = smov 0  }
   0x3 LB: > { %3853 = sst [smem:[#allocation2_spill]] %s3185_s24  ;;  %s32_s26 = sadd.s32 1, %s3181_s23  ;;  %s3189_s25 = sphi %s3264_s25, %s23_s25   ;;  %s3185_s24 = sphi %s3262_s24, %s3859_s24   ;;  %s3181_s23 = sphi %s3260_s23, %s3861_s23   ;;  %s3177_s22 = sphi %s3258_s22, %s3857_s22   ;;  %s3173_s21 = sphi %s3256_s21, %s3860_s21  }
   0x4   : > { %s35_s27 = sadd.s32 1, %s3185_s24  ;;  %p33_p0 = scmp.ge.s32.totalorder %s32_s26, 2 }
   0x5   : > { %p2945_p1 = scmp.ge.s32.totalorder %s3189_s25, 1  ;;  %p607_p2 = scmp.lt.s32.totalorder %s3189_s25, 5 }
   0x6   : > { %s3863_s26 = smov (%p33_p0, %s32_s26), 0  ;;  %s3865_s27 = smov (!%p33_p0, %s35_s27), %s3185_s24 }
   0x7   : > { %3854 = sst [smem:[#allocation3_spill]] %s3863_s26  ;;  %p608_p3 = pnand %p2945_p1, %p607_p2 }
   0x8   : > { %p37_p4 = scmp.ge.s32.totalorder %s3865_s27, 2  ;;  %s3295_s14 = sshll.u32 (!%p608_p3), %s3173_s21, 3 }
   0x9   : > { %611 = sbr.rel (%p608_p3) target bundleno = 508 (0x1fc), region = 64  ;;  %p763_p5 = scmp.lt.s32.totalorder (!%p608_p3), %s3177_s22, 1 }
   0xa   : > { %s3867_s27 = smov (%p37_p4, %s3865_s27), 0  ;;  %p765_p6 = scmp.lt.s32.totalorder (!%p608_p3), %s3295_s14, 17 }
   0xb   : > { %3855 = sst [smem:[#allocation4_spill]] %s3867_s27  ;;  %s774_s15 = sadd.s32 (!%p608_p3), 1, %s3295_s14 }
   0xc   : > { %p777_p7 = scmp.lt.s32.totalorder (!%p608_p3), %s774_s15, 17  ;;  %s787_s30 = sadd.s32 (!%p608_p3), 2, %s3295_s14 }
   0xd   : > { %p3360_p8 = scmp.lt.s32.totalorder (!%p608_p3), %s787_s30, 17  ;;  %p892_p2 = scmp.lt.s32.totalorder (!%p608_p3), %s3173_s21, 1 }
   0xe   : > { %v935_v0 = vld [vmem:[%s3849_s10] sm:$0x3]  ;;  %vm977_vm0 = vcmask 1041408   ;;  %v2970_v1 = vld [vmem:[%s3849_s10 + $0x6] sm:$0x3]  ;;  %s3869_s22 = smov (!%p763_p5, %s3177_s22), 1 }
   0xf   : > { %v3298_v2 = vsel %vm977_vm0, %v935_v0, 0  ;;  %v3301_v3 = vsel %vm977_vm0, %v2970_v1, 0  ;;  %v2969_v4 = vld [vmem:[%s3849_s10 + $0x4] sm:$0x3]  ;;  %v2968_v5 = vld [vmem:[%s3849_s10 + $0x2] sm:$0x3] }
  0x10   : > { %1007 = vmatpush.bf16.msra.mxu1 %v3298_v2  ;;  %1058 = vmatpush.bf16.msra.mxu3 %v3301_v3  ;;  %v3316_v6 = vsel %vm977_vm0, %v2969_v4, 0  ;;  %v3319_v7 = vsel %vm977_vm0, %v2968_v5, 0  ;;  %v2973_v8 = vld [vmem:[%s3849_s10 + $0xc] sm:$0x3]  ;;  %s766_s29 = scalar_select %p765_p6, %s3295_s14, 17  ;;  %vm973_vm1 = vcmask 31744  }
  0x11   : > { %1031 = vmatpush.bf16.msra.mxu2 %v3316_v6  ;;  %988 = vmatpush.bf16.msra.mxu0 %v3319_v7  ;;  %v3328_v9 = vsel %vm977_vm0, %v2973_v8, 0  ;;  %v2971_v10 = vld [vmem:[%s3849_s10 + $0x8] sm:$0x3]  ;;  %s3334_s16 = smul.u32 54, %s3869_s22  ;;  %v2974_v12 = vld [vmem:[%s3849_s10 + $0xe] sm:$0x3] }
  0x12   : > { %v3338_v11 = vsel %vm977_vm0, %v2971_v10, 0  ;;  %s3100_s19 = smul.u32 3, %s766_s29  ;;  %v3345_v13 = vsel %vm977_vm0, %v2974_v12, 0  ;;  %v2972_v14 = vld [vmem:[%s3849_s10 + $0xa] sm:$0x3]  ;;  %s3871_s15 = smov (!%p777_p7, %s774_s15), 17 }
  0x13   : > { %v3353_v15 = vsel %vm977_vm0, %v2972_v14, 0  ;;  %s3102_s17 = smul.u32 3, %s3871_s15  ;;  %s3873_s30 = smov (!%p3360_p8, %s787_s30), 17  ;;  %vm1014_vm2 = vcmask 1046528   ;;  %v2975_v29 = vld [vmem:[%s3849_s10 + $0x10] sm:$0x3] }
  0x14   : > { %1182 = vmatpush.bf16.msrb.mxu3 %v3345_v13  ;;  %s769_s13 = sadd.s32 %s3334_s16, %s3100_s19  ;;  %1119 = vmatpush.bf16.msrb.mxu1 %v3353_v15  ;;  %vm960_vm3 = vsmask.f32 7424  ;;  %v3384_v34 = vsel %vm977_vm0, %v2975_v29, 0  ;;  %vm2413_vm4 = vcmask 261120   ;;  %s3889_s21 = smov (!%p892_p2, %s3173_s21), 1  ;;  %vm2605_vm5 = vcmask 253952  }
  0x15   : > { %1146 = vmatpush.bf16.msrb.mxu2 %v3328_v9  ;;  %1094 = vmatpush.bf16.msrb.mxu0 %v3338_v11  ;;  %s2947_s29 = sshll.u32 %s769_s13, 2  ;;  %s781_s28 = sadd.s32 %s3102_s17, %s3334_s16 }
  0x16   : > { %s771_s26 = scalar_lea.vmem %s3839_s0, %s2947_s29  ;;  %s2949_s24 = sshll.u32 %s781_s28, 2 }
  0x17   : > { %v3090_v16 = vld [vmem:[%s771_s26] sm:$0xff]  ;;  %v907_v17 = vld [vmem:[%s771_s26 + $0x8] sm:$0x1]  ;;  %s783_s15 = scalar_lea.vmem %s3840_s1, %s2949_s24  ;;  %s3103_s24 = smul.u32 3, %s3873_s30 }
  0x18   : > { %v957_v18 = vunpack.c.l.b16 %v907_v17  ;;  %2981 = vmatmul.msk.bf16.vlgmr.msra.gmra.mxu1 %vm973_vm1, %v3090_v16  ;;  %v962_v19 = vshrl.u32 %v3090_v16, 16  ;;  %v964_v20 = vshll.u32 %v3090_v16, 16  ;;  %v3369_v21 = vld [vmem:[%s783_s15] sm:$0xff]  ;;  %v1015_v23 = vrot.slane %v3090_v16, 1  ;;  %v910_v24 = vld [vmem:[%s783_s15 + $0x8] sm:$0x1] }
  0x19   : > { %1223 = vmatpush.bf16.msra.mxu1 %v3319_v7  ;;  %v1068_v26 = vunpack.c.l.b16 %v910_v24  ;;  %2987 = vmatmul.msk.bf16.vlgmr.msra.gmra.mxu3 %vm973_vm1, %v3369_v21  ;;  %s794_s29 = sadd.s32 %s3103_s24, %s3334_s16  ;;  %v1103_v38 = vrot.slane %v3369_v21, 1  ;;  %v1072_v41 = vshll.u32 %v3369_v21, 16  ;;  %v1070_v46 = vshrl.u32 %v3369_v21, 16  ;;  %s800_s28 = sadd.s32 3, %s3295_s14 }
  0x1a   : > { %v959_v22 = vpack.c.b16 %v957_v18, %v957_v18  ;;  %v966_v25 = vrot.slane %v964_v20, 1  ;;  %1251 = vmatpush.bf16.msra.mxu3 %v3316_v6  ;;  %s2951_s17 = sshll.u32 %s794_s29, 2  ;;  %p803_p9 = scmp.lt.s32.totalorder %s800_s28, 17 }
  0x1b   : > { %v1069_v33 = vpack.c.b16 %v1068_v26, %v1068_v26  ;;  %s796_s20 = scalar_lea.vmem %s3841_s2, %s2951_s17  ;;  %v1074_v49 = vrot.slane %v1072_v41, 1  ;;  %s813_s29 = sadd.s32 4, %s3295_s14 }
  0x1c   : > { %v1016_v27 = vrot.slane %v959_v22, 1  ;;  %v969_v28 = vshll.u32 %v959_v22, 16  ;;  %v967_v30 = vor.u32 %v966_v25, %v962_v19  ;;  %v3392_v36 = vld [vmem:[%s796_s20] sm:$0xff]  ;;  %v913_v37 = vld [vmem:[%s796_s20 + $0x8] sm:$0x1]  ;;  %s3875_s28 = smov (!%p803_p9, %s800_s28), 17 }
  0x1d   : > { %v1104_v39 = vrot.slane %v1069_v33, 1  ;;  %v1156_v40 = vunpack.c.l.b16 %v913_v37  ;;  %v1158_v42 = vshrl.u32 %v3392_v36, 16  ;;  %v1160_v43 = vshll.u32 %v3392_v36, 16  ;;  %s3104_s19 = smul.u32 3, %s3875_s28  ;;  %p816_p10 = scmp.lt.s32.totalorder %s813_s29, 17 }
  0x1e   : > { %v1017_v31 = vsel %vm1014_vm2, %v1015_v23, %v1016_v27  ;;  %v971_v32 = vrot.slane %v969_v28, 1  ;;  %v1077_v50 = vshll.u32 %v1069_v33, 16  ;;  %v1075_v54 = vor.u32 %v1074_v49, %v1070_v46 }
  0x1f   : > { %2982 = vmatmul.msk.bf16.vlgmr.msra.gmra.mxu2 %vm973_vm1, %v1017_v31  ;;  %v1157_v44 = vpack.c.b16 %v1156_v40, %v1156_v40  ;;  %v1162_v45 = vrot.slane %v1160_v43, 1  ;;  %v1105_v47 = vsel %vm1014_vm2, %v1103_v38, %v1104_v39  ;;  %v1191_v57 = vrot.slane %v3392_v36, 1  ;;  %s807_s13 = sadd.s32 %s3104_s19, %s3334_s16  ;;  %s3877_s29 = smov (!%p816_p10, %s813_s29), 17 }
  0x20   : > { %v972_v35 = vsel %vm960_vm3, %v967_v30, %v971_v32  ;;  %1237 = vmatpush.bf16.msra.mxu2 %v3298_v2  ;;  %v1079_v55 = vrot.slane %v1077_v50, 1  ;;  %s2953_s15 = sshll.u32 %s807_s13, 2  ;;  %s3105_s17 = smul.u32 3, %s3877_s29 }
  0x21   : > { %2980 = vmatmul.msk.bf16.vlgmr.msra.gmra.mxu0 %vm973_vm1, %v972_v35  ;;  %v1165_v48 = vshll.u32 %v1157_v44, 16  ;;  %v1163_v51 = vor.u32 %v1162_v45, %v1158_v42  ;;  %v1192_v58 = vrot.slane %v1157_v44, 1  ;;  %s809_s27 = scalar_lea.vmem %s3842_s3, %s2953_s15  ;;  %s826_s13 = sadd.s32 5, %s3295_s14 }
  0x22   : > { %1207 = vmatpush.bf16.msra.mxu0 %v3384_v34  ;;  %v1080_v56 = vsel %vm960_vm3, %v1075_v54, %v1079_v55  ;;  %v916_v60 = vld [vmem:[%s809_s27 + $0x8] sm:$0x1]  ;;  %v3428_v61 = vld [vmem:[%s809_s27] sm:$0xff]  ;;  %s820_s30 = sadd.s32 %s3105_s17, %s3334_s16  ;;  %p829_p11 = scmp.lt.s32.totalorder %s826_s13, 17 }
  0x23   : > { %v1167_v52 = vrot.slane %v1165_v48, 1  ;;  %v1193_v59 = vsel %vm1014_vm2, %v1191_v57, %v1192_v58  ;;  %v1333_v62 = vunpack.c.l.b16 %v916_v60  ;;  %v1365_v0 = vrot.slane %v3428_v61, 1  ;;  %s2955_s18 = sshll.u32 %s820_s30, 2  ;;  %s839_s30 = sadd.s32 6, %s3295_s14 }
  0x24   : > { %v1337_v4 = vshll.u32 %v3428_v61, 16  ;;  %v1335_v8 = vshrl.u32 %v3428_v61, 16  ;;  %s822_s19 = scalar_lea.vmem %s3843_s4, %s2955_s18  ;;  %s3879_s13 = smov (!%p829_p11, %s826_s13), 17 }
  0x25   : > { %v1168_v53 = vsel %vm960_vm3, %v1163_v51, %v1167_v52  ;;  %v1334_v63 = vpack.c.b16 %v1333_v62, %v1333_v62  ;;  %v919_v18 = vld [vmem:[%s822_s19 + $0x8] sm:$0x1]  ;;  %v3459_v19 = vld [vmem:[%s822_s19] sm:$0xff]  ;;  %s3106_s15 = smul.u32 3, %s3879_s13  ;;  %p842_p12 = scmp.lt.s32.totalorder %s839_s30, 17 }
  0x26   : > { %v1339_v10 = vrot.slane %v1337_v4, 1  ;;  %v1504_v20 = vunpack.c.l.b16 %v919_v18  ;;  %v1508_v22 = vshll.u32 %v3459_v19, 16  ;;  %v1506_v23 = vshrl.u32 %v3459_v19, 16 }
  0x27   : > { %v1366_v1 = vrot.slane %v1334_v63, 1  ;;  %v1342_v12 = vshll.u32 %v1334_v63, 16  ;;  %v1536_v29 = vrot.slane %v3459_v19, 1  ;;  %s833_s24 = sadd.s32 %s3106_s15, %s3334_s16  ;;  %s3881_s30 = smov (!%p842_p12, %s839_s30), 17 }
  0x28   : > { %2989 = vmatmul.msk.bf16.vlgmr.msrb.gmra.mxu1 %vm973_vm1, %v1105_v47  ;;  %v1340_v14 = vor.u32 %v1339_v10, %v1335_v8  ;;  %v1510_v24 = vrot.slane %v1508_v22, 1  ;;  %s2957_s26 = sshll.u32 %s833_s24, 2  ;;  %s3107_s18 = smul.u32 3, %s3881_s30 }
  0x29   : > { %1283 = vmatpush.bf16.msrb.mxu1 %v3338_v11  ;;  %2995 = vmatmul.msk.bf16.vlgmr.msrb.gmra.mxu3 %vm973_vm1, %v1168_v53  ;;  %v1367_v5 = vsel %vm1014_vm2, %v1365_v0, %v1366_v1  ;;  %v1344_v16 = vrot.slane %v1342_v12, 1  ;;  %s835_s17 = scalar_lea.vmem %s3844_s5, %s2957_s26  ;;  %s852_s24 = sadd.s32 7, %s3295_s14 }
  0x2a   : > { %1323 = vmatpush.bf16.msrb.mxu3 %v3328_v9  ;;  %v1511_v26 = vor.u32 %v1510_v24, %v1506_v23  ;;  %v922_v32 = vld [vmem:[%s835_s17 + $0x8] sm:$0x1]  ;;  %v3499_v33 = vld [vmem:[%s835_s17] sm:$0xff]  ;;  %s846_s20 = sadd.s32 %s3107_s18, %s3334_s16  ;;  %p855_p13 = scmp.lt.s32.totalorder %s852_s24, 17 }
  0x2b   : > { %v1345_v17 = vsel %vm960_vm3, %v1340_v14, %v1344_v16  ;;  %v1675_v35 = vunpack.c.l.b16 %v922_v32  ;;  %v1677_v38 = vshrl.u32 %v3499_v33, 16  ;;  %v1707_v41 = vrot.slane %v3499_v33, 1  ;;  %s2959_s28 = sshll.u32 %s846_s20, 2  ;;  %s865_s20 = sadd.s32 8, %s3295_s14 }
  0x2c   : > { %s848_s15 = scalar_lea.vmem %s3845_s6, %s2959_s28  ;;  %s3883_s24 = smov (!%p855_p13, %s852_s24), 17 }
  0x2d   : > { %v1676_v37 = vpack.c.b16 %v1675_v35, %v1675_v35  ;;  %v925_v57 = vld [vmem:[%s848_s15 + $0x8] sm:$0x1]  ;;  %v3536_v60 = vld [vmem:[%s848_s15] sm:$0xff]  ;;  %s3108_s26 = smul.u32 3, %s3883_s24  ;;  %p868_p0 = scmp.lt.s32.totalorder %s865_s20, 17 }
  0x2e   : > { %v1850_v4 = vshll.u32 %v3536_v60, 16  ;;  %v1848_v16 = vshrl.u32 %v3536_v60, 16 }
  0x2f   : > { %2994 = vmatmul.msk.bf16.vlgmr.msrb.gmra.mxu2 %vm973_vm1, %v3392_v36  ;;  %v1684_v40 = vshll.u32 %v1676_v37, 16  ;;  %v1708_v42 = vrot.slane %v1676_v37, 1  ;;  %s859_s27 = sadd.s32 %s3108_s26, %s3334_s16  ;;  %s3885_s20 = smov (!%p868_p0, %s865_s20), 17 }
  0x30   : > { %1299 = vmatpush.bf16.msrb.mxu2 %v3353_v15  ;;  %s2961_s29 = sshll.u32 %s859_s27, 2  ;;  %s3109_s28 = smul.u32 3, %s3885_s20 }
  0x31   : > { %2988 = vmatmul.msk.bf16.vlgmr.msrb.gmra.mxu0 %vm973_vm1, %v1080_v56  ;;  %v1686_v45 = vrot.slane %v1684_v40, 1  ;;  %v3515_v46 = vsel %vm1014_vm2, %v1707_v41, %v1708_v42  ;;  %s861_s18 = scalar_lea.vmem %s3846_s7, %s2961_s29  ;;  %s878_s27 = sadd.s32 9, %s3295_s14 }
  0x32   : > { %1267 = vmatpush.bf16.msrb.mxu0 %v3301_v3  ;;  %s872_s19 = sadd.s32 %s3109_s28, %s3334_s16  ;;  %p881_p1 = scmp.lt.s32.totalorder %s878_s27, 17 }
  0x33   : > { %s2963_s13 = sshll.u32 %s872_s19, 2 }
  0x34   : > { %s874_s26 = scalar_lea.vmem %s3847_s8, %s2963_s13  ;;  %s3887_s27 = smov (!%p881_p1, %s878_s27), 17 }
  0x35   : > { %s3110_s14 = smul.u32 3, %s3887_s27 }
  0x37   : > { %s885_s29 = sadd.s32 %s3110_s14, %s3334_s16  ;;  %s2966_s16 = sshll.u32 %s3869_s22, 1 }
  0x38   : > { %2997 = vmatmul.msk.bf16.vlgmr.msra.gmra.mxu1 %vm973_vm1, %v1080_v56  ;;  %s2965_s17 = sshll.u32 %s885_s29, 2  ;;  %s3761_s28 = sadd.s32 %s2966_s16, %s3889_s21 }
  0x39   : > { %1378 = vmatpush.bf16.msra.mxu1 %v3384_v34  ;;  %2999 = vmatmul.msk.bf16.vlgmr.msra.gmra.mxu3 %vm973_vm1, %v1105_v47  ;;  %s887_s20 = scalar_lea.vmem %s3848_s9, %s2965_s17  ;;  %s896_s15 = scalar_lea.vmem %s3850_s11, %s3761_s28 }
  0x3a   : > { %1408 = vmatpush.bf16.msra.mxu3 %v3298_v2  ;;  %s903_s24 = scalar_lea.vmem %s3851_s12, %s3761_s28 }
  0x3f   : > { %2998 = vmatmul.msk.bf16.vlgmr.msra.gmra.mxu2 %vm973_vm1, %v3369_v21  ;;  %v1505_v21 = vpack.c.b16 %v1504_v20, %v1504_v20 }
  0x40   : > { %1394 = vmatpush.bf16.msra.mxu2 %v3319_v7 }
  0x41   : > { %2996 = vmatmul.msk.bf16.vlgmr.msra.gmra.mxu0 %vm973_vm1, %v1193_v59  ;;  %v1513_v25 = vshll.u32 %v1505_v21, 16  ;;  %v1537_v30 = vrot.slane %v1505_v21, 1 }
  0x42   : > { %1356 = vmatpush.bf16.msra.mxu0 %v3345_v13 }
  0x43   : > { %v1515_v27 = vrot.slane %v1513_v25, 1  ;;  %v3482_v31 = vsel %vm1014_vm2, %v1536_v29, %v1537_v30 }
  0x45   : > { %v3474_v28 = vsel %vm960_vm3, %v1511_v26, %v1515_v27 }
  0x48   : > { %3001 = vmatmul.msk.bf16.vlgmr.msrb.gmra.mxu1 %vm973_vm1, %v1168_v53 }
  0x49   : > { %1438 = vmatpush.bf16.msrb.mxu1 %v3301_v3  ;;  %3007 = vmatmul.msk.bf16.vlgmr.msrb.gmra.mxu3 %vm973_vm1, %v3428_v61 }
  0x4a   : > { %1470 = vmatpush.bf16.msrb.mxu3 %v3353_v15 }
  0x4f   : > { %3002 = vmatmul.msk.bf16.vlgmr.msrb.gmra.mxu2 %vm973_vm1, %v1193_v59 }
  0x50   : > { %1454 = vmatpush.bf16.msrb.mxu2 %v3338_v11 }
  0x51   : > { %3000 = vmatmul.msk.bf16.vlgmr.msrb.gmra.mxu0 %vm973_vm1, %v3392_v36 }
  0x52   : > { %1422 = vmatpush.bf16.msrb.mxu0 %v3316_v6 }
  0x58   : > { %3009 = vmatmul.msk.bf16.vlgmr.msra.gmra.mxu1 %vm973_vm1, %v1367_v5 }
  0x59   : > { %1527 = vmatpush.bf16.msra.mxu1 %v3345_v13  ;;  %3011 = vmatmul.msk.bf16.vlgmr.msra.gmra.mxu3 %vm973_vm1, %v3392_v36  ;;  %v1679_v36 = vshll.u32 %v3499_v33, 16 }
  0x5a   : > { %1565 = vmatpush.bf16.msra.mxu3 %v3319_v7 }
  0x5b   : > { %v1681_v39 = vrot.slane %v1679_v36, 1 }
  0x5d   : > { %v1682_v44 = vor.u32 %v1681_v39, %v1677_v38 }
  0x5f   : > { %3010 = vmatmul.msk.bf16.vlgmr.msra.gmra.mxu2 %vm973_vm1, %v1168_v53  ;;  %v3521_v47 = vsel %vm960_vm3, %v1682_v44, %v1686_v45 }
  0x60   : > { %1549 = vmatpush.bf16.msra.mxu2 %v3384_v34 }
  0x61   : > { %3008 = vmatmul.msk.bf16.vlgmr.msra.gmra.mxu0 %vm973_vm1, %v1345_v17 }
  0x62   : > { %1494 = vmatpush.bf16.msra.mxu0 %v3328_v9 }
  0x68   : > { %3013 = vmatmul.msk.bf16.vlgmr.msrb.gmra.mxu1 %vm973_vm1, %v3428_v61 }
  0x69   : > { %1593 = vmatpush.bf16.msrb.mxu1 %v3316_v6  ;;  %3015 = vmatmul.msk.bf16.vlgmr.msrb.gmra.mxu3 %vm973_vm1, %v1367_v5 }
  0x6a   : > { %1625 = vmatpush.bf16.msrb.mxu3 %v3338_v11 }
  0x6f   : > { %3014 = vmatmul.msk.bf16.vlgmr.msrb.gmra.mxu2 %vm973_vm1, %v1345_v17 }
  0x70   : > { %1609 = vmatpush.bf16.msrb.mxu2 %v3301_v3 }
  0x71   : > { %3012 = vmatmul.msk.bf16.vlgmr.msrb.gmra.mxu0 %vm973_vm1, %v1193_v59 }
  0x72   : > { %1579 = vmatpush.bf16.msrb.mxu0 %v3298_v2 }
  0x78   : > { %3021 = vmatmul.msk.bf16.vlgmr.msra.gmra.mxu1 %vm973_vm1, %v3474_v28 }
  0x79   : > { %1665 = vmatpush.bf16.msra.mxu1 %v3328_v9  ;;  %3023 = vmatmul.msk.bf16.vlgmr.msra.gmra.mxu3 %vm973_vm1, %v1345_v17  ;;  %v1852_v17 = vrot.slane %v1850_v4, 1 }
  0x7a   : > { %1720 = vmatpush.bf16.msra.mxu3 %v3384_v34 }
  0x7b   : > { %v1853_v21 = vor.u32 %v1852_v17, %v1848_v16 }
  0x7f   : > { %3022 = vmatmul.msk.bf16.vlgmr.msra.gmra.mxu2 %vm973_vm1, %v3482_v31 }
  0x80   : > { %1698 = vmatpush.bf16.msra.mxu2 %v3345_v13 }
  0x81   : > { %3020 = vmatmul.msk.bf16.vlgmr.msra.gmra.mxu0 %vm973_vm1, %v3459_v19 }
  0x82   : > { %1641 = vmatpush.bf16.msra.mxu0 %v3353_v15 }
  0x88   : > { %3025 = vmatmul.msk.bf16.vlgmr.msrb.gmra.mxu1 %vm973_vm1, %v1367_v5 }
  0x89   : > { %1750 = vmatpush.bf16.msrb.mxu1 %v3298_v2  ;;  %3027 = vmatmul.msk.bf16.vlgmr.msrb.gmra.mxu3 %vm973_vm1, %v3474_v28 }
  0x8a   : > { %1780 = vmatpush.bf16.msrb.mxu3 %v3301_v3 }
  0x8f   : > { %3026 = vmatmul.msk.bf16.vlgmr.msrb.gmra.mxu2 %vm973_vm1, %v3459_v19 }
  0x90   : > { %1764 = vmatpush.bf16.msrb.mxu2 %v3316_v6 }
  0x91   : > { %3024 = vmatmul.msk.bf16.vlgmr.msrb.gmra.mxu0 %vm973_vm1, %v3428_v61  ;;  %v1846_v61 = vunpack.c.l.b16 %v925_v57 }
  0x92   : > { %1736 = vmatpush.bf16.msrb.mxu0 %v3319_v7 }
  0x93   : > { %v3541_v1 = vpack.c.b16 %v1846_v61, %v1846_v61 }
  0x95   : > { %v1009_v43 = vpop.f32.mrf.mxu1  ;;  %v1855_v18 = vshll.u32 %v3541_v1, 16 }
  0x97   : > { %v1857_v22 = vrot.slane %v1855_v18, 1 }
  0x98   : > { %3033 = vmatmul.msk.bf16.vlgmr.msra.gmra.mxu1 %vm973_vm1, %v3499_v33 }
  0x99   : > { %1812 = vmatpush.bf16.msra.mxu1 %v3353_v15  ;;  %3035 = vmatmul.msk.bf16.vlgmr.msra.gmra.mxu3 %vm973_vm1, %v3515_v46 }
  0x9a   : > { %1869 = vmatpush.bf16.msra.mxu3 %v3345_v13 }
  0x9c   : > { %v1060_v51 = vpop.f32.mrf.mxu3 }
  0x9d   : > { %v1011_v49 = vpop.f32.mrf.mxu1 }
  0x9e   : > { %v990_v48 = vpop.f32.mrf.mxu0 }
  0x9f   : > { %v1010_v50 = vadd.f32 %v1009_v43, %v990_v48  ;;  %3034 = vmatmul.msk.bf16.vlgmr.msra.gmra.mxu2 %vm973_vm1, %v3521_v47 }
  0xa0   : > { %1836 = vmatpush.bf16.msra.mxu2 %v3328_v9 }
  0xa1   : > { %3028 = vmatmul.msk.bf16.vlgmr.msra.gmra.mxu0 %vm973_vm1, %v3482_v31 }
  0xa2   : > { %v1033_v52 = vpop.f32.mrf.mxu2  ;;  %1796 = vmatpush.bf16.msra.mxu0 %v3338_v11 }
  0xa3   : > { %v1038_v53 = vadd.f32 %v1033_v52, %v1010_v50  ;;  %v1878_v52 = vrot.slane %v3536_v60, 1 }
  0xa4   : > { %v1062_v59 = vpop.f32.mrf.mxu3 }
  0xa5   : > { %v1065_v54 = vadd.f32 %v1060_v51, %v1038_v53  ;;  %v1121_v56 = vpop.f32.mrf.mxu1  ;;  %v1879_v53 = vrot.slane %v3541_v1, 1 }
  0xa6   : > { %v992_v55 = vpop.f32.mrf.mxu0 }
  0xa7   : > { %v1012_v58 = vadd.f32 %v1011_v49, %v992_v55  ;;  %v3588_v57 = vsel %vm1014_vm2, %v1878_v52, %v1879_v53 }
  0xa8   : > { %3037 = vmatmul.msk.bf16.vlgmr.msrb.gmra.mxu1 %vm973_vm1, %v3459_v19 }
  0xa9   : > { %1907 = vmatpush.bf16.msrb.mxu1 %v3319_v7  ;;  %3039 = vmatmul.msk.bf16.vlgmr.msrb.gmra.mxu3 %vm973_vm1, %v3499_v33 }
  0xaa   : > { %v1035_v62 = vpop.f32.mrf.mxu2  ;;  %1935 = vmatpush.bf16.msrb.mxu3 %v3316_v6 }
  0xab   : > { %v1039_v63 = vadd.f32 %v1035_v62, %v1012_v58 }
  0xac   : > { %v1184_v12 = vpop.f32.mrf.mxu3 }
  0xad   : > { %v1066_v0 = vadd.f32 %v1062_v59, %v1039_v63  ;;  %v1123_v8 = vpop.f32.mrf.mxu1 }
  0xae   : > { %v1096_v5 = vpop.f32.mrf.mxu0 }
  0xaf   : > { %v1101_v10 = vadd.f32 %v1096_v5, %v1065_v54  ;;  %3038 = vmatmul.msk.bf16.vlgmr.msrb.gmra.mxu2 %vm973_vm1, %v3482_v31  ;;  %v928_v5 = vld [vmem:[%s861_s18 + $0x8] sm:$0x1] }
  0xb0   : > { %1921 = vmatpush.bf16.msrb.mxu2 %v3298_v2 }
  0xb1   : > { %3036 = vmatmul.msk.bf16.vlgmr.msrb.gmra.mxu0 %vm973_vm1, %v3474_v28  ;;  %v1126_v14 = vadd.f32 %v1121_v56, %v1101_v10  ;;  %v3556_v28 = vsel %vm960_vm3, %v1853_v21, %v1857_v22 }
  0xb2   : > { %v1148_v19 = vpop.f32.mrf.mxu2  ;;  %1891 = vmatpush.bf16.msrb.mxu0 %v3384_v34 }
  0xb3   : > { %v1153_v20 = vadd.f32 %v1148_v19, %v1126_v14  ;;  %v2017_v14 = vunpack.c.l.b16 %v928_v5 }
  0xb4   : > { %v1186_v27 = vpop.f32.mrf.mxu3 }
  0xb5   : > { %v1189_v23 = vadd.f32 %v1184_v12, %v1153_v20  ;;  %v1225_v25 = vpop.f32.mrf.mxu1  ;;  %v2018_v20 = vpack.c.b16 %v2017_v14, %v2017_v14  ;;  %v3650_v14 = vld [vmem:[%s874_s26] sm:$0xff] }
  0xb6   : > { %v1098_v24 = vpop.f32.mrf.mxu0 }
  0xb7   : > { %v1102_v26 = vadd.f32 %v1098_v24, %v1066_v0 }
  0xb8   : > { %3041 = vmatmul.msk.bf16.vlgmr.msra.gmra.mxu1 %vm973_vm1, %v3515_v46 }
  0xb9   : > { %v1127_v29 = vadd.f32 %v1123_v8, %v1102_v26  ;;  %1967 = vmatpush.bf16.msra.mxu1 %v3338_v11  ;;  %3047 = vmatmul.msk.bf16.vlgmr.msra.gmra.mxu3 %vm973_vm1, %v3556_v28  ;;  %v3600_v8 = vld [vmem:[%s861_s18] sm:$0xff]  ;;  %v2050_v26 = vrot.slane %v2018_v20, 1 }
  0xba   : > { %v1150_v30 = vpop.f32.mrf.mxu2  ;;  %2007 = vmatpush.bf16.msra.mxu3 %v3328_v9 }
  0xbb   : > { %v1154_v31 = vadd.f32 %v1150_v30, %v1127_v29 }
  0xbc   : > { %v1253_v38 = vpop.f32.mrf.mxu3 }
  0xbd   : > { %v1190_v32 = vadd.f32 %v1186_v27, %v1154_v31  ;;  %v1227_v36 = vpop.f32.mrf.mxu1  ;;  %v2021_v27 = vshll.u32 %v3600_v8, 16 }
  0xbe   : > { %v1209_v35 = vpop.f32.mrf.mxu0 }
  0xbf   : > { %v3562_v37 = vadd.f32 %v1209_v35, %v1189_v23  ;;  %3046 = vmatmul.msk.bf16.vlgmr.msra.gmra.mxu2 %vm973_vm1, %v3536_v60 }
  0xc0   : > { %1983 = vmatpush.bf16.msra.mxu2 %v3353_v15 }
  0xc1   : > { %3040 = vmatmul.msk.bf16.vlgmr.msra.gmra.mxu0 %vm973_vm1, %v3521_v47  ;;  %v2414_v48 = vsel %vm2413_vm4, %v3562_v37, 0.0 }
  0xc2   : > { %v1239_v39 = vpop.f32.mrf.mxu2  ;;  %1951 = vmatpush.bf16.msra.mxu0 %v3301_v3 }
  0xc3   : > { %v1240_v40 = vadd.f32 %v1239_v39, %v1225_v25  ;;  %v2049_v25 = vrot.slane %v3600_v8, 1  ;;  %v2026_v39 = vshll.u32 %v2018_v20, 16 }
  0xc4   : > { %v1255_v45 = vpop.f32.mrf.mxu3 }
  0xc5   : > { %v1258_v41 = vadd.f32 %v1253_v38, %v1240_v40  ;;  %v1285_v43 = vpop.f32.mrf.mxu1  ;;  %v3621_v35 = vsel %vm1014_vm2, %v2049_v25, %v2050_v26  ;;  %v2023_v38 = vrot.slane %v2021_v27, 1  ;;  %v2192_v26 = vshll.u32 %v3650_v14, 16 }
  0xc6   : > { %v1211_v42 = vpop.f32.mrf.mxu0 }
  0xc7   : > { %v3571_v44 = vadd.f32 %v1211_v42, %v1190_v32 }
  0xc8   : > { %3049 = vmatmul.msk.bf16.vlgmr.msrb.gmra.mxu1 %vm973_vm1, %v3521_v47 }
  0xc9   : > { %v2415_v49 = vsel %vm2413_vm4, %v3571_v44, 0.0  ;;  %2062 = vmatpush.bf16.msrb.mxu1 %v3384_v34  ;;  %3051 = vmatmul.msk.bf16.vlgmr.msrb.gmra.mxu3 %vm973_vm1, %v3515_v46 }
  0xca   : > { %v3579_v50 = vadd.f32 %v2415_v49, %v2414_v48  ;;  %v1241_v51 = vpop.f32.mrf.mxu2  ;;  %2092 = vmatpush.bf16.msrb.mxu3 %v3298_v2  ;;  %v2028_v49 = vrot.slane %v2026_v39, 1 }
  0xcb   : > { %v1242_v54 = vadd.f32 %v1241_v51, %v1227_v36  ;;  %v2019_v36 = vshrl.u32 %v3600_v8, 16 }
  0xcc   : > { %v1325_v59 = vpop.f32.mrf.mxu3  ;;  %v2417_v30 = vrot.slane %v3579_v50, 4 }
  0xcd   : > { %v1259_v55 = vadd.f32 %v1255_v45, %v1242_v54  ;;  %v1287_v47 = vpop.f32.mrf.mxu1  ;;  %v2024_v48 = vor.u32 %v2023_v38, %v2019_v36  ;;  %v2194_v36 = vrot.slane %v2192_v26, 1 }
  0xce   : > { %v1269_v56 = vpop.f32.mrf.mxu0  ;;  %v2418_v42 = vadd.f32 %v2417_v30, %v3579_v50 }
  0xcf   : > { %v1274_v58 = vadd.f32 %v1269_v56, %v1258_v41  ;;  %3050 = vmatmul.msk.bf16.vlgmr.msrb.gmra.mxu2 %vm973_vm1, %v3499_v33 }
  0xd0   : > { %2078 = vmatpush.bf16.msrb.mxu2 %v3319_v7  ;;  %v2419_v54 = vrot.slane %v2418_v42, 2 }
  0xd1   : > { %3048 = vmatmul.msk.bf16.vlgmr.msrb.gmra.mxu0 %vm973_vm1, %v3588_v57  ;;  %v1290_v46 = vadd.f32 %v1285_v43, %v1274_v58  ;;  %v3639_v58 = vsel %vm960_vm3, %v2024_v48, %v2028_v49 }
  0xd2   : > { %v1301_v61 = vpop.f32.mrf.mxu2  ;;  %2040 = vmatpush.bf16.msrb.mxu0 %v3345_v13 }
  0xd3   : > { %v1306_v62 = vadd.f32 %v1301_v61, %v1290_v46  ;;  %v2420_v61 = vadd.f32 %v2419_v54, %v2418_v42 }
  0xd4   : > { %v1327_v4 = vpop.f32.mrf.mxu3 }
  0xd5   : > { %v1330_v63 = vadd.f32 %v1325_v59, %v1306_v62  ;;  %v1380_v33 = vpop.f32.mrf.mxu1 }
  0xd6   : > { %v1271_v0 = vpop.f32.mrf.mxu0 }
  0xd7   : > { %v1275_v1 = vadd.f32 %v1271_v0, %v1259_v55 }
  0xd8   : > { %3053 = vmatmul.msk.bf16.vlgmr.msra.gmra.mxu1 %vm973_vm1, %v3556_v28 }
  0xd9   : > { %v1291_v10 = vadd.f32 %v1287_v47, %v1275_v1  ;;  %2122 = vmatpush.bf16.msra.mxu1 %v3301_v3  ;;  %3059 = vmatmul.msk.bf16.vlgmr.msra.gmra.mxu3 %vm973_vm1, %v3600_v8  ;;  %v2421_v1 = vrot.slane %v2420_v61, 1 }
  0xda   : > { %v1303_v12 = vpop.f32.mrf.mxu2  ;;  %2154 = vmatpush.bf16.msra.mxu3 %v3353_v15 }
  0xdb   : > { %v1307_v16 = vadd.f32 %v1303_v12, %v1291_v10 }
  0xdc   : > { %v1410_v22 = vpop.f32.mrf.mxu3 }
  0xdd   : > { %v1331_v17 = vadd.f32 %v1327_v4, %v1307_v16  ;;  %v1382_v19 = vpop.f32.mrf.mxu1 }
  0xde   : > { %v1358_v18 = vpop.f32.mrf.mxu0 }
  0xdf   : > { %v1363_v21 = vadd.f32 %v1358_v18, %v1330_v63  ;;  %3054 = vmatmul.msk.bf16.vlgmr.msra.gmra.mxu2 %vm973_vm1, %v3588_v57 }
  0xe0   : > { %2138 = vmatpush.bf16.msra.mxu2 %v3338_v11 }
  0xe1   : > { %v3612_v23 = vadd.f32 %v1380_v33, %v1363_v21  ;;  %3052 = vmatmul.msk.bf16.vlgmr.msra.gmra.mxu0 %vm973_vm1, %v3536_v60  ;;  %v931_v33 = vld [vmem:[%s874_s26 + $0x8] sm:$0x1] }
  0xe2   : > { %v1396_v24 = vpop.f32.mrf.mxu2  ;;  %2106 = vmatpush.bf16.msra.mxu0 %v3316_v6  ;;  %v2188_v16 = vunpack.c.l.b16 %v931_v33 }
  0xe3   : > { %v1411_v29 = vadd.f32 %v1410_v22, %v1396_v24  ;;  %v2423_v51 = vsel %vm2413_vm4, %v3612_v23, 0.0 }
  0xe4   : > { %v1412_v41 = vpop.f32.mrf.mxu3  ;;  %v2189_v25 = vpack.c.b16 %v2188_v16, %v2188_v16 }
  0xe5   : > { %v1440_v32 = vpop.f32.mrf.mxu1 }
  0xe6   : > { %v1360_v31 = vpop.f32.mrf.mxu0  ;;  %v2197_v38 = vshll.u32 %v2189_v25, 16  ;;  %v2221_v54 = vrot.slane %v2189_v25, 1 }
  0xe7   : > { %v1364_v40 = vadd.f32 %v1360_v31, %v1331_v17 }
  0xe8   : > { %3061 = vmatmul.msk.bf16.vlgmr.msrb.gmra.mxu1 %vm973_vm1, %v3621_v35  ;;  %v2199_v42 = vrot.slane %v2197_v38, 1 }
  0xe9   : > { %v3625_v43 = vadd.f32 %v1382_v19, %v1364_v40  ;;  %2211 = vmatpush.bf16.msrb.mxu1 %v3345_v13  ;;  %3063 = vmatmul.msk.bf16.vlgmr.msrb.gmra.mxu3 %vm973_vm1, %v3536_v60  ;;  %v2422_v19 = vadd.f32 %v2421_v1, %v2420_v61 }
  0xea   : > { %v1398_v45 = vpop.f32.mrf.mxu2  ;;  %2249 = vmatpush.bf16.msrb.mxu3 %v3319_v7 }
  0xeb   : > { %v2424_v52 = vsel %vm2413_vm4, %v3625_v43, 0.0  ;;  %v1413_v53 = vadd.f32 %v1412_v41, %v1398_v45 }
  0xec   : > { %v2425_v50 = vadd.f32 %v2424_v52, %v2423_v51  ;;  %v1472_v46 = vpop.f32.mrf.mxu3 }
  0xed   : > { %v1442_v47 = vpop.f32.mrf.mxu1 }
  0xee   : > { %v2426_v55 = vrot.slane %v2425_v50, 4  ;;  %v1424_v56 = vpop.f32.mrf.mxu0 }
  0xef   : > { %v1429_v59 = vadd.f32 %v1424_v56, %v1411_v29  ;;  %3062 = vmatmul.msk.bf16.vlgmr.msrb.gmra.mxu2 %vm973_vm1, %v3556_v28 }
  0xf0   : > { %v2427_v62 = vadd.f32 %v2426_v55, %v2425_v50  ;;  %2233 = vmatpush.bf16.msrb.mxu2 %v3384_v34 }
  0xf1   : > { %3060 = vmatmul.msk.bf16.vlgmr.msrb.gmra.mxu0 %vm973_vm1, %v3639_v58  ;;  %v1445_v7 = vadd.f32 %v1440_v32, %v1429_v59  ;;  %v2190_v32 = vshrl.u32 %v3650_v14, 16 }
  0xf2   : > { %v2428_v60 = vrot.slane %v2427_v62, 2  ;;  %v1456_v63 = vpop.f32.mrf.mxu2  ;;  %2178 = vmatpush.bf16.msrb.mxu0 %v3328_v9 }
  0xf3   : > { %v1461_v0 = vadd.f32 %v1456_v63, %v1445_v7 }
  0xf4   : > { %v2429_v28 = vadd.f32 %v2428_v60, %v2427_v62  ;;  %v1474_v18 = vpop.f32.mrf.mxu3 }
  0xf5   : > { %v1477_v4 = vadd.f32 %v1472_v46, %v1461_v0  ;;  %v1529_v12 = vpop.f32.mrf.mxu1 }
  0xf6   : > { %v2430_v5 = vrot.slane %v2429_v28, 1  ;;  %v1426_v10 = vpop.f32.mrf.mxu0 }
  0xf7   : > { %v1430_v17 = vadd.f32 %v1426_v10, %v1413_v53 }
  0xf8   : > { %v2431_v20 = vadd.f32 %v2430_v5, %v2429_v28  ;;  %3065 = vmatmul.msk.bf16.vlgmr.msra.gmra.mxu1 %vm973_vm1, %v3600_v8 }
  0xf9   : > { %v1446_v21 = vadd.f32 %v1442_v47, %v1430_v17  ;;  %2277 = vmatpush.bf16.msra.mxu1 %v3316_v6  ;;  %3067 = vmatmul.msk.bf16.vlgmr.msra.gmra.mxu3 %vm973_vm1, %v3621_v35  ;;  %v934_v17 = vld [vmem:[%s887_s20 + $0x8] sm:$0x1] }
  0xfa   : > { %v1458_v22 = vpop.f32.mrf.mxu2  ;;  %v3654_v24 = vadd.f32 %v2431_v20, %v2422_v19  ;;  %2309 = vmatpush.bf16.msra.mxu3 %v3338_v11  ;;  %v2195_v11 = vor.u32 %v2194_v36, %v2190_v32  ;;  %v3099_v20 = vld [vmem:[%s887_s20] sm:$0xff] }
  0xfb   : > { %v1462_v27 = vadd.f32 %v1458_v22, %v1446_v21  ;;  %v2359_v22 = vunpack.c.l.b16 %v934_v17  ;;  %v2361_v36 = vshrl.u32 %v3099_v20, 16 }
  0xfc   : > { %v1567_v40 = vpop.f32.mrf.mxu3  ;;  %v2200_v51 = vsel %vm960_vm3, %v2195_v11, %v2199_v42 }
  0xfd   : > { %v1478_v29 = vadd.f32 %v1474_v18, %v1462_v27  ;;  %v1531_v31 = vpop.f32.mrf.mxu1 }
  0xfe   : > { %v1496_v30 = vpop.f32.mrf.mxu0 }
  0xff   : > { %v1501_v39 = vadd.f32 %v1496_v30, %v1477_v4  ;;  %3066 = vmatmul.msk.bf16.vlgmr.msra.gmra.mxu2 %vm973_vm1, %v3639_v58 }
 0x100   : > { %2293 = vmatpush.bf16.msra.mxu2 %v3301_v3  ;;  %v2220_v3 = vrot.slane %v3650_v14, 1 }
 0x101   : > { %3064 = vmatmul.msk.bf16.vlgmr.msra.gmra.mxu0 %vm973_vm1, %v3588_v57  ;;  %v1534_v6 = vadd.f32 %v1529_v12, %v1501_v39 }
 0x102   : > { %v1551_v41 = vpop.f32.mrf.mxu2  ;;  %2263 = vmatpush.bf16.msra.mxu0 %v3298_v2  ;;  %v3680_v55 = vsel %vm1014_vm2, %v2220_v3, %v2221_v54 }
 0x103   : > { %v3669_v45 = vadd.f32 %v1551_v41, %v1534_v6  ;;  %v2391_v6 = vrot.slane %v3099_v20, 1 }
 0x104   : > { %v1569_v53 = vpop.f32.mrf.mxu3 }
 0x105   : > { %v1595_v49 = vpop.f32.mrf.mxu1  ;;  %v2433_v56 = vsel %vm2413_vm4, %v3669_v45, 0.0 }
 0x106   : > { %v1498_v48 = vpop.f32.mrf.mxu0 }
 0x107   : > { %v1502_v52 = vadd.f32 %v1498_v48, %v1478_v29 }
 0x108   : > { %3073 = vmatmul.msk.bf16.vlgmr.msrb.gmra.mxu1 %vm973_vm1, %v2200_v51 }
 0x109   : > { %v1535_v57 = vadd.f32 %v1531_v31, %v1502_v52  ;;  %2349 = vmatpush.bf16.msrb.mxu1 %v3328_v9  ;;  %3075 = vmatmul.msk.bf16.vlgmr.msrb.gmra.mxu3 %vm973_vm1, %v3639_v58  ;;  %v2360_v31 = vpack.c.b16 %v2359_v22, %v2359_v22 }
 0x10a   : > { %v1553_v50 = vpop.f32.mrf.mxu2  ;;  %2404 = vmatpush.bf16.msrb.mxu3 %v3384_v34 }
 0x10b   : > { %v3675_v2 = vadd.f32 %v1553_v50, %v1535_v57  ;;  %v2368_v39 = vshll.u32 %v2360_v31, 16  ;;  %v2392_v41 = vrot.slane %v2360_v31, 1 }
 0x10c   : > { %v1627_v62 = vpop.f32.mrf.mxu3 }
 0x10d   : > { %v2434_v47 = vsel %vm2413_vm4, %v3675_v2, 0.0  ;;  %v1597_v46 = vpop.f32.mrf.mxu1 }
 0x10e   : > { %v2435_v59 = vadd.f32 %v2434_v47, %v2433_v56  ;;  %v1581_v9 = vpop.f32.mrf.mxu0 }
 0x10f   : > { %v1582_v61 = vadd.f32 %v1581_v9, %v1567_v40  ;;  %3074 = vmatmul.msk.bf16.vlgmr.msrb.gmra.mxu2 %vm973_vm1, %v3680_v55 }
 0x110   : > { %v2436_v58 = vrot.slane %v2435_v59, 4  ;;  %2382 = vmatpush.bf16.msrb.mxu2 %v3345_v13 }
 0x111   : > { %3072 = vmatmul.msk.bf16.vlgmr.msrb.gmra.mxu0 %vm973_vm1, %v3650_v14  ;;  %v1600_v7 = vadd.f32 %v1595_v49, %v1582_v61 }
 0x112   : > { %v2437_v60 = vadd.f32 %v2436_v58, %v2435_v59  ;;  %v1611_v63 = vpop.f32.mrf.mxu2  ;;  %2325 = vmatpush.bf16.msrb.mxu0 %v3353_v15 }
 0x113   : > { %v1616_v34 = vadd.f32 %v1611_v63, %v1600_v7 }
 0x114   : > { %v2438_v0 = vrot.slane %v2437_v60, 2  ;;  %v1629_v10 = vpop.f32.mrf.mxu3 }
 0x115   : > { %v1632_v33 = vadd.f32 %v1627_v62, %v1616_v34  ;;  %v1667_v4 = vpop.f32.mrf.mxu1 }
 0x116   : > { %v2439_v1 = vadd.f32 %v2438_v0, %v2437_v60  ;;  %v1583_v28 = vpop.f32.mrf.mxu0 }
 0x117   : > { %v1584_v5 = vadd.f32 %v1583_v28, %v1569_v53 }
 0x118   : > { %v2440_v13 = vrot.slane %v2439_v1, 1  ;;  %3077 = vmatmul.msk.bf16.vlgmr.msra.gmra.mxu1 %vm973_vm1, %v3621_v35  ;;  %v2363_v35 = vshll.u32 %v3099_v20, 16 }
 0x119   : > { %v1601_v12 = vadd.f32 %v1597_v46, %v1584_v5  ;;  %3079 = vmatmul.msk.bf16.vlgmr.msra.gmra.mxu3 %vm973_vm1, %v2200_v51  ;;  %v2370_v51 = vrot.slane %v2368_v39, 1 }
 0x11a   : > { %v2441_v16 = vadd.f32 %v2440_v13, %v2439_v1  ;;  %v1613_v15 = vpop.f32.mrf.mxu2  ;;  %v2365_v38 = vrot.slane %v2363_v35, 1 }
 0x11b   : > { %v1617_v18 = vadd.f32 %v1613_v15, %v1601_v12 }
 0x11c   : > { %v3700_v19 = vadd.f32 %v2441_v16, %v3654_v24  ;;  %v1722_v29 = vpop.f32.mrf.mxu3 }
 0x11d   : > { %v1633_v21 = vadd.f32 %v1629_v10, %v1617_v18  ;;  %v1669_v26 = vpop.f32.mrf.mxu1 }
 0x11e   : > { %v1643_v25 = vpop.f32.mrf.mxu0 }
 0x11f   : > { %v1648_v27 = vadd.f32 %v1643_v25, %v1632_v33  ;;  %3078 = vmatmul.msk.bf16.vlgmr.msra.gmra.mxu2 %vm973_vm1, %v3650_v14  ;;  %v2366_v14 = vor.u32 %v2365_v38, %v2361_v36 }
 0x121   : > { %3076 = vmatmul.msk.bf16.vlgmr.msra.gmra.mxu0 %vm973_vm1, %v3600_v8  ;;  %v1672_v30 = vadd.f32 %v1667_v4, %v1648_v27  ;;  %v2393_v8 = vsel %vm1014_vm2, %v2391_v6, %v2392_v41  ;;  %v2371_v54 = vsel %vm960_vm3, %v2366_v14, %v2370_v51 }
 0x122   : > { %v1700_v24 = vpop.f32.mrf.mxu2 }
 0x123   : > { %v1705_v32 = vadd.f32 %v1700_v24, %v1672_v30 }
 0x124   : > { %v1724_v49 = vpop.f32.mrf.mxu3 }
 0x125   : > { %v3707_v40 = vadd.f32 %v1722_v29, %v1705_v32  ;;  %v1752_v42 = vpop.f32.mrf.mxu1 }
 0x126   : > { %v1645_v11 = vpop.f32.mrf.mxu0 }
 0x127   : > { %v1649_v48 = vadd.f32 %v1645_v11, %v1633_v21  ;;  %v2443_v47 = vsel %vm2413_vm4, %v3707_v40, 0.0 }
 0x128   : > { %3085 = vmatmul.msk.bf16.vlgmr.msrb.gmra.mxu1 %vm973_vm1, %v3099_v20 }
 0x129   : > { %v1673_v52 = vadd.f32 %v1669_v26, %v1649_v48  ;;  %3087 = vmatmul.msk.bf16.vlgmr.msrb.gmra.mxu3 %vm973_vm1, %v2393_v8 }
 0x12a   : > { %v1702_v53 = vpop.f32.mrf.mxu2 }
 0x12b   : > { %v1706_v3 = vadd.f32 %v1702_v53, %v1673_v52 }
 0x12c   : > { %v1782_v46 = vpop.f32.mrf.mxu3 }
 0x12d   : > { %v3713_v57 = vadd.f32 %v1724_v49, %v1706_v3  ;;  %v1754_v56 = vpop.f32.mrf.mxu1 }
 0x12e   : > { %v1738_v50 = vpop.f32.mrf.mxu0 }
 0x12f   : > { %v2444_v59 = vsel %vm2413_vm4, %v3713_v57, 0.0  ;;  %v1753_v9 = vadd.f32 %v1752_v42, %v1738_v50  ;;  %3086 = vmatmul.msk.bf16.vlgmr.msrb.gmra.mxu2 %vm973_vm1, %v2371_v54 }
 0x130   : > { %v2445_v61 = vadd.f32 %v2444_v59, %v2443_v47 }
 0x131   : > { %3080 = vmatmul.msk.bf16.vlgmr.msrb.gmra.mxu0 %vm973_vm1, %v3680_v55 }
 0x132   : > { %v2446_v62 = vrot.slane %v2445_v61, 4  ;;  %v1766_v58 = vpop.f32.mrf.mxu2 }
 0x133   : > { %v1771_v7 = vadd.f32 %v1766_v58, %v1753_v9 }
 0x134   : > { %v2447_v60 = vadd.f32 %v2446_v62, %v2445_v61  ;;  %v1784_v28 = vpop.f32.mrf.mxu3 }
 0x135   : > { %v1787_v63 = vadd.f32 %v1782_v46, %v1771_v7  ;;  %v1814_v33 = vpop.f32.mrf.mxu1 }
 0x136   : > { %v2448_v34 = vrot.slane %v2447_v60, 2  ;;  %v1740_v0 = vpop.f32.mrf.mxu0 }
 0x137   : > { %v1755_v1 = vadd.f32 %v1754_v56, %v1740_v0 }
 0x138   : > { %v2449_v4 = vadd.f32 %v2448_v34, %v2447_v60 }
 0x13a   : > { %v2450_v5 = vrot.slane %v2449_v4, 1  ;;  %v1768_v10 = vpop.f32.mrf.mxu2 }
 0x13b   : > { %v1772_v13 = vadd.f32 %v1768_v10, %v1755_v1 }
 0x13c   : > { %v2451_v12 = vadd.f32 %v2450_v5, %v2449_v4  ;;  %v1871_v20 = vpop.f32.mrf.mxu3 }
 0x13d   : > { %v1788_v16 = vadd.f32 %v1784_v28, %v1772_v13  ;;  %v1816_v17 = vpop.f32.mrf.mxu1 }
 0x13e   : > { %v1798_v15 = vpop.f32.mrf.mxu0  ;;  %v2452_v55 = vadd.f32 %v2451_v12, %v3700_v19 }
 0x13f   : > { %v1803_v18 = vadd.f32 %v1798_v15, %v1787_v63 }
 0x141   : > { %v1819_v21 = vadd.f32 %v1814_v33, %v1803_v18 }
 0x142   : > { %v1838_v22 = vpop.f32.mrf.mxu2 }
 0x143   : > { %v1843_v25 = vadd.f32 %v1838_v22, %v1819_v21 }
 0x144   : > { %v1873_v30 = vpop.f32.mrf.mxu3 }
 0x145   : > { %v1876_v26 = vadd.f32 %v1871_v20, %v1843_v25  ;;  %v1909_v29 = vpop.f32.mrf.mxu1 }
 0x146   : > { %v1800_v27 = vpop.f32.mrf.mxu0 }
 0x147   : > { %v1804_v35 = vadd.f32 %v1800_v27, %v1788_v16 }
 0x149   : > { %v1820_v31 = vadd.f32 %v1816_v17, %v1804_v35 }
 0x14a   : > { %v1840_v24 = vpop.f32.mrf.mxu2 }
 0x14b   : > { %v1844_v32 = vadd.f32 %v1840_v24, %v1820_v31 }
 0x14c   : > { %v1937_v41 = vpop.f32.mrf.mxu3 }
 0x14d   : > { %v1877_v36 = vadd.f32 %v1873_v30, %v1844_v32  ;;  %v1911_v39 = vpop.f32.mrf.mxu1 }
 0x14e   : > { %v1893_v38 = vpop.f32.mrf.mxu0 }
 0x14f   : > { %v3723_v6 = vadd.f32 %v1893_v38, %v1876_v26 }
 0x151   : > { %v2453_v52 = vsel %vm2413_vm4, %v3723_v6, 0.0 }
 0x152   : > { %v1923_v19 = vpop.f32.mrf.mxu2 }
 0x153   : > { %v1924_v11 = vadd.f32 %v1923_v19, %v1909_v29 }
 0x154   : > { %v1939_v51 = vpop.f32.mrf.mxu3 }
 0x155   : > { %v1942_v42 = vadd.f32 %v1937_v41, %v1924_v11  ;;  %v1969_v49 = vpop.f32.mrf.mxu1 }
 0x156   : > { %v1895_v48 = vpop.f32.mrf.mxu0 }
 0x157   : > { %v3725_v14 = vadd.f32 %v1895_v48, %v1877_v36 }
 0x159   : > { %v2454_v8 = vsel %vm2413_vm4, %v3725_v14, 0.0 }
 0x15a   : > { %v2455_v53 = vadd.f32 %v2454_v8, %v2453_v52  ;;  %v1925_v3 = vpop.f32.mrf.mxu2 }
 0x15b   : > { %v1926_v54 = vadd.f32 %v1925_v3, %v1911_v39 }
 0x15c   : > { %v2456_v50 = vrot.slane %v2455_v53, 4  ;;  %v2009_v61 = vpop.f32.mrf.mxu3 }
 0x15d   : > { %v1943_v56 = vadd.f32 %v1939_v51, %v1926_v54  ;;  %v1971_v9 = vpop.f32.mrf.mxu1 }
 0x15e   : > { %v2457_v47 = vadd.f32 %v2456_v50, %v2455_v53  ;;  %v1953_v59 = vpop.f32.mrf.mxu0 }
 0x15f   : > { %v1958_v46 = vadd.f32 %v1953_v59, %v1942_v42 }
 0x160   : > { %v2458_v62 = vrot.slane %v2457_v47, 2 }
 0x161   : > { %v1974_v58 = vadd.f32 %v1969_v49, %v1958_v46 }
 0x162   : > { %v2459_v7 = vadd.f32 %v2458_v62, %v2457_v47  ;;  %v1985_v60 = vpop.f32.mrf.mxu2 }
 0x163   : > { %v1990_v63 = vadd.f32 %v1985_v60, %v1974_v58 }
 0x164   : > { %v2460_v34 = vrot.slane %v2459_v7, 1  ;;  %v2011_v5 = vpop.f32.mrf.mxu3 }
 0x165   : > { %v2014_v0 = vadd.f32 %v2009_v61, %v1990_v63  ;;  %v2064_v28 = vpop.f32.mrf.mxu1 }
 0x166   : > { %v2461_v33 = vadd.f32 %v2460_v34, %v2459_v7  ;;  %v1955_v1 = vpop.f32.mrf.mxu0 }
 0x167   : > { %v1959_v4 = vadd.f32 %v1955_v1, %v1943_v56 }
 0x168   : > { %v2462_v10 = vadd.f32 %v2461_v33, %v2452_v55 }
 0x169   : > { %v1975_v13 = vadd.f32 %v1971_v9, %v1959_v4 }
 0x16a   : > { %v1987_v12 = vpop.f32.mrf.mxu2 }
 0x16b   : > { %v1991_v16 = vadd.f32 %v1987_v12, %v1975_v13 }
 0x16c   : > { %v2094_v21 = vpop.f32.mrf.mxu3 }
 0x16d   : > { %v2015_v15 = vadd.f32 %v2011_v5, %v1991_v16  ;;  %v2066_v18 = vpop.f32.mrf.mxu1 }
 0x16e   : > { %v2042_v17 = vpop.f32.mrf.mxu0 }
 0x16f   : > { %v2047_v20 = vadd.f32 %v2042_v17, %v2014_v0 }
 0x171   : > { %v3731_v22 = vadd.f32 %v2064_v28, %v2047_v20 }
 0x172   : > { %v2080_v25 = vpop.f32.mrf.mxu2 }
 0x173   : > { %v2463_v55 = vsel %vm2413_vm4, %v3731_v22, 0.0  ;;  %v2095_v46 = vadd.f32 %v2094_v21, %v2080_v25 }
 0x174   : > { %v2096_v35 = vpop.f32.mrf.mxu3 }
 0x175   : > { %v2124_v27 = vpop.f32.mrf.mxu1 }
 0x176   : > { %v2044_v26 = vpop.f32.mrf.mxu0 }
 0x177   : > { %v2048_v29 = vadd.f32 %v2044_v26, %v2015_v15 }
 0x179   : > { %v3733_v30 = vadd.f32 %v2066_v18, %v2048_v29 }
 0x17a   : > { %v2082_v31 = vpop.f32.mrf.mxu2 }
 0x17b   : > { %v2464_v24 = vsel %vm2413_vm4, %v3733_v30, 0.0  ;;  %v2097_v59 = vadd.f32 %v2096_v35, %v2082_v31 }
 0x17c   : > { %v2465_v32 = vadd.f32 %v2464_v24, %v2463_v55  ;;  %v2156_v41 = vpop.f32.mrf.mxu3 }
 0x17d   : > { %v2126_v39 = vpop.f32.mrf.mxu1 }
 0x17e   : > { %v2466_v36 = vrot.slane %v2465_v32, 4  ;;  %v2108_v38 = vpop.f32.mrf.mxu0 }
 0x17f   : > { %v2113_v62 = vadd.f32 %v2108_v38, %v2095_v46 }
 0x180   : > { %v2467_v19 = vadd.f32 %v2466_v36, %v2465_v32 }
 0x181   : > { %v2129_v63 = vadd.f32 %v2124_v27, %v2113_v62 }
 0x182   : > { %v2468_v11 = vrot.slane %v2467_v19, 2  ;;  %v2140_v42 = vpop.f32.mrf.mxu2 }
 0x183   : > { %v2145_v1 = vadd.f32 %v2140_v42, %v2129_v63 }
 0x184   : > { %v2469_v48 = vadd.f32 %v2468_v11, %v2467_v19  ;;  %v2158_v8 = vpop.f32.mrf.mxu3 }
 0x185   : > { %v2213_v52 = vpop.f32.mrf.mxu1 }
 0x186   : > { %v2470_v49 = vrot.slane %v2469_v48, 1  ;;  %v2110_v51 = vpop.f32.mrf.mxu0 }
 0x187   : > { %v2114_v61 = vadd.f32 %v2110_v51, %v2097_v59 }
 0x188   : > { %v2471_v53 = vadd.f32 %v2470_v49, %v2469_v48 }
 0x189   : > { %v2130_v7 = vadd.f32 %v2126_v39, %v2114_v61 }
 0x18a   : > { %v2142_v3 = vpop.f32.mrf.mxu2  ;;  %v3739_v54 = vadd.f32 %v2471_v53, %v2462_v10  ;;  %v2161_v10 = vadd.f32 %v2156_v41, %v2145_v1 }
 0x18b   : > { %v2146_v33 = vadd.f32 %v2142_v3, %v2130_v7 }
 0x18c   : > { %v2251_v56 = vpop.f32.mrf.mxu3 }
 0x18d   : > { %v2215_v47 = vpop.f32.mrf.mxu1  ;;  %v2162_v4 = vadd.f32 %v2158_v8, %v2146_v33 }
 0x18e   : > { %v2180_v50 = vpop.f32.mrf.mxu0 }
 0x18f   : > { %v2185_v15 = vadd.f32 %v2180_v50, %v2161_v10 }
 0x191   : > { %v2218_v25 = vadd.f32 %v2213_v52, %v2185_v15 }
 0x192   : > { %v2235_v9 = vpop.f32.mrf.mxu2 }
 0x193   : > { %v3743_v55 = vadd.f32 %v2235_v9, %v2218_v25 }
 0x194   : > { %v2253_v60 = vpop.f32.mrf.mxu3 }
 0x195   : > { %v2279_v34 = vpop.f32.mrf.mxu1  ;;  %v2473_v41 = vsel %vm2413_vm4, %v3743_v55, 0.0 }
 0x196   : > { %v2182_v58 = vpop.f32.mrf.mxu0 }
 0x197   : > { %v2186_v13 = vadd.f32 %v2182_v58, %v2162_v4 }
 0x199   : > { %v2219_v18 = vadd.f32 %v2215_v47, %v2186_v13 }
 0x19a   : > { %v2237_v0 = vpop.f32.mrf.mxu2 }
 0x19b   : > { %v3741_v29 = vadd.f32 %v2237_v0, %v2219_v18 }
 0x19c   : > { %v2311_v5 = vpop.f32.mrf.mxu3 }
 0x19d   : > { %v2281_v17 = vpop.f32.mrf.mxu1  ;;  %v2474_v24 = vsel %vm2413_vm4, %v3741_v29, 0.0 }
 0x19e   : > { %v2265_v28 = vpop.f32.mrf.mxu0  ;;  %v2475_v11 = vadd.f32 %v2474_v24, %v2473_v41 }
 0x19f   : > { %v2266_v12 = vadd.f32 %v2265_v28, %v2251_v56 }
 0x1a0   : > { %v2476_v52 = vrot.slane %v2475_v11, 4 }
 0x1a1   : > { %v2284_v20 = vadd.f32 %v2279_v34, %v2266_v12 }
 0x1a2   : > { %v2295_v16 = vpop.f32.mrf.mxu2  ;;  %v2477_v56 = vadd.f32 %v2476_v52, %v2475_v11 }
 0x1a3   : > { %v2300_v27 = vadd.f32 %v2295_v16, %v2284_v20 }
 0x1a4   : > { %v2313_v26 = vpop.f32.mrf.mxu3  ;;  %v2478_v62 = vrot.slane %v2477_v56, 2 }
 0x1a5   : > { %v2316_v36 = vadd.f32 %v2311_v5, %v2300_v27  ;;  %v2351_v38 = vpop.f32.mrf.mxu1 }
 0x1a6   : > { %v2267_v21 = vpop.f32.mrf.mxu0  ;;  %v2479_v34 = vadd.f32 %v2478_v62, %v2477_v56 }
 0x1a7   : > { %v2268_v35 = vadd.f32 %v2267_v21, %v2253_v60 }
 0x1a8   : > { %v2480_v1 = vrot.slane %v2479_v34, 1 }
 0x1a9   : > { %v2285_v32 = vadd.f32 %v2281_v17, %v2268_v35 }
 0x1aa   : > { %v2297_v31 = vpop.f32.mrf.mxu2  ;;  %v2481_v5 = vadd.f32 %v2480_v1, %v2479_v34 }
 0x1ab   : > { %v2301_v42 = vadd.f32 %v2297_v31, %v2285_v32 }
 0x1ac   : > { %v2406_v48 = vpop.f32.mrf.mxu3  ;;  %v2482_v12 = vadd.f32 %v2481_v5, %v3739_v54 }
 0x1ad   : > { %v2317_v8 = vadd.f32 %v2313_v26, %v2301_v42  ;;  %v2353_v47 = vpop.f32.mrf.mxu1 }
 0x1ae   : > { %v2327_v39 = vpop.f32.mrf.mxu0 }
 0x1af   : > { %v2332_v19 = vadd.f32 %v2327_v39, %v2316_v36 }
 0x1b1   : > { %v2356_v51 = vadd.f32 %v2351_v38, %v2332_v19 }
 0x1b2   : > { %v2384_v49 = vpop.f32.mrf.mxu2 }
 0x1b3   : > { %v2389_v3 = vadd.f32 %v2384_v49, %v2356_v51 }
 0x1b4   : > { %v2408_v58 = vpop.f32.mrf.mxu3 }
 0x1b5   : > { %v3749_v46 = vadd.f32 %v2406_v48, %v2389_v3 }
 0x1b6   : > { %v2329_v53 = vpop.f32.mrf.mxu0 }
 0x1b7   : > { %v2333_v50 = vadd.f32 %v2329_v53, %v2317_v8  ;;  %v2483_v60 = vsel %vm2413_vm4, %v3749_v46, 0.0 }
 0x1b9   : > { %v2357_v59 = vadd.f32 %v2353_v47, %v2333_v50 }
 0x1ba   : > { %v2386_v9 = vpop.f32.mrf.mxu2 }
 0x1bb   : > { %v2390_v61 = vadd.f32 %v2386_v9, %v2357_v59 }
 0x1bd   : > { %v3751_v7 = vadd.f32 %v2408_v58, %v2390_v61 }
 0x1bf   : > { %v2484_v63 = vsel %vm2413_vm4, %v3751_v7, 0.0 }
 0x1c0   : > { %v2485_v0 = vadd.f32 %v2484_v63, %v2483_v60 }
 0x1c2   : > { %v2486_v33 = vrot.slane %v2485_v0, 4 }
 0x1c4   : > { %v2487_v28 = vadd.f32 %v2486_v33, %v2485_v0 }
 0x1c6   : > { %v2488_v4 = vrot.slane %v2487_v28, 2 }
 0x1c8   : > { %v2489_v10 = vadd.f32 %v2488_v4, %v2487_v28 }
 0x1ca   : > { %v2490_v13 = vrot.slane %v2489_v10, 1 }
 0x1cc   : > { %v2491_v16 = vadd.f32 %v2490_v13, %v2489_v10 }
 0x1ce   : > { %v2492_v15 = vadd.f32 %v2491_v16, %v2482_v12 }
 0x1d0   : > { %v3767_v17 = vmul.f32 0.0078125, %v2492_v15 }
 0x1d2   : > { %v2494_v18 = vsub.f32 %v3562_v37, %v3767_v17  ;;  %v2495_v20 = vsub.f32 %v3571_v44, %v3767_v17  ;;  %v2507_v54 = vsub.f32 %v3612_v23, %v3767_v17  ;;  %v2508_v21 = vsub.f32 %v3625_v43, %v3767_v17  ;;  %2606 = vst.msk [vmem:[%s896_s15] sm:$0x1] %vm2605_vm5, %v3767_v17 }
 0x1d3   : > { %v2521_v25 = vsub.f32 %v3669_v45, %v3767_v17  ;;  %v2522_v26 = vsub.f32 %v3675_v2, %v3767_v17  ;;  %v2535_v37 = vsub.f32 %v3707_v40, %v3767_v17  ;;  %v2536_v44 = vsub.f32 %v3713_v57, %v3767_v17 }
 0x1d4   : > { %v2496_v27 = vmul.f32 %v2494_v18, %v2494_v18  ;;  %v2497_v23 = vmul.f32 %v2495_v20, %v2495_v20  ;;  %v2509_v35 = vmul.f32 %v2507_v54, %v2507_v54  ;;  %v2510_v31 = vmul.f32 %v2508_v21, %v2508_v21 }
 0x1d5   : > { %v2523_v43 = vmul.f32 %v2521_v25, %v2521_v25  ;;  %v2524_v24 = vmul.f32 %v2522_v26, %v2522_v26  ;;  %v2537_v32 = vmul.f32 %v2535_v37, %v2535_v37  ;;  %v2538_v36 = vmul.f32 %v2536_v44, %v2536_v44 }
 0x1d6   : > { %v2498_v38 = vsel %vm2413_vm4, %v2496_v27, 0.0  ;;  %v2499_v45 = vsel %vm2413_vm4, %v2497_v23, 0.0  ;;  %v2511_v2 = vsel %vm2413_vm4, %v2509_v35, 0.0  ;;  %v2512_v39 = vsel %vm2413_vm4, %v2510_v31, 0.0 }
 0x1d7   : > { %v2500_v40 = vadd.f32 %v2499_v45, %v2498_v38  ;;  %v2513_v41 = vadd.f32 %v2512_v39, %v2511_v2  ;;  %v2525_v57 = vsel %vm2413_vm4, %v2523_v43, 0.0  ;;  %v2526_v19 = vsel %vm2413_vm4, %v2524_v24, 0.0 }
 0x1d8   : > { %v2527_v11 = vadd.f32 %v2526_v19, %v2525_v57  ;;  %v2539_v42 = vsel %vm2413_vm4, %v2537_v32, 0.0  ;;  %v2540_v48 = vsel %vm2413_vm4, %v2538_v36, 0.0  ;;  %v2549_v49 = vsub.f32 %v3723_v6, %v3767_v17 }
 0x1d9   : > { %v2501_v51 = vrot.slane %v2500_v40, 4  ;;  %v2514_v52 = vrot.slane %v2513_v41, 4  ;;  %v2541_v8 = vadd.f32 %v2540_v48, %v2539_v42  ;;  %v2550_v53 = vsub.f32 %v3725_v14, %v3767_v17 }
 0x1da   : > { %v2528_v3 = vrot.slane %v2527_v11, 4  ;;  %v2551_v50 = vmul.f32 %v2549_v49, %v2549_v49  ;;  %v2563_v56 = vsub.f32 %v3731_v22, %v3767_v17  ;;  %v2564_v47 = vsub.f32 %v3733_v30, %v3767_v17 }
 0x1db   : > { %v2502_v59 = vadd.f32 %v2501_v51, %v2500_v40  ;;  %v2515_v9 = vadd.f32 %v2514_v52, %v2513_v41  ;;  %v2542_v61 = vrot.slane %v2541_v8, 4  ;;  %v2552_v62 = vmul.f32 %v2550_v53, %v2550_v53 }
 0x1dc   : > { %v2529_v58 = vadd.f32 %v2528_v3, %v2527_v11  ;;  %v2553_v6 = vsel %vm2413_vm4, %v2551_v50, 0.0  ;;  %v2565_v60 = vmul.f32 %v2563_v56, %v2563_v56  ;;  %v2566_v63 = vmul.f32 %v2564_v47, %v2564_v47 }
 0x1dd   : > { %v2503_v34 = vrot.slane %v2502_v59, 2  ;;  %v2516_v0 = vrot.slane %v2515_v9, 2  ;;  %v2543_v14 = vadd.f32 %v2542_v61, %v2541_v8  ;;  %v2554_v33 = vsel %vm2413_vm4, %v2552_v62, 0.0 }
 0x1de   : > { %v2530_v1 = vrot.slane %v2529_v58, 2  ;;  %v2555_v28 = vadd.f32 %v2554_v33, %v2553_v6  ;;  %v2567_v22 = vsel %vm2413_vm4, %v2565_v60, 0.0  ;;  %v2568_v30 = vsel %vm2413_vm4, %v2566_v63, 0.0 }
 0x1df   : > { %v2504_v4 = vadd.f32 %v2503_v34, %v2502_v59  ;;  %v2517_v5 = vadd.f32 %v2516_v0, %v2515_v9  ;;  %v2544_v10 = vrot.slane %v2543_v14, 2  ;;  %v2569_v13 = vadd.f32 %v2568_v30, %v2567_v22 }
 0x1e0   : > { %v2531_v12 = vadd.f32 %v2530_v1, %v2529_v58  ;;  %v2556_v16 = vrot.slane %v2555_v28, 4  ;;  %v2577_v15 = vsub.f32 %v3743_v55, %v3767_v17  ;;  %v2578_v18 = vsub.f32 %v3741_v29, %v3767_v17 }
 0x1e1   : > { %v2505_v20 = vrot.slane %v2504_v4, 1  ;;  %v2518_v54 = vrot.slane %v2517_v5, 1  ;;  %v2545_v21 = vadd.f32 %v2544_v10, %v2543_v14  ;;  %v2570_v25 = vrot.slane %v2569_v13, 4 }
 0x1e2   : > { %v2532_v26 = vrot.slane %v2531_v12, 1  ;;  %v2557_v37 = vadd.f32 %v2556_v16, %v2555_v28  ;;  %v2579_v44 = vmul.f32 %v2577_v15, %v2577_v15  ;;  %v2580_v27 = vmul.f32 %v2578_v18, %v2578_v18 }
 0x1e3   : > { %v2506_v23 = vadd.f32 %v2505_v20, %v2504_v4  ;;  %v2519_v35 = vadd.f32 %v2518_v54, %v2517_v5  ;;  %v2546_v31 = vrot.slane %v2545_v21, 1  ;;  %v2571_v43 = vadd.f32 %v2570_v25, %v2569_v13 }
 0x1e4   : > { %v2558_v24 = vrot.slane %v2557_v37, 2  ;;  %v2581_v32 = vsel %vm2413_vm4, %v2579_v44, 0.0  ;;  %v2582_v55 = vsel %vm2413_vm4, %v2580_v27, 0.0  ;;  %v2533_v38 = vadd.f32 %v2532_v26, %v2531_v12 }
 0x1e5   : > { %v2520_v36 = vadd.f32 %v2519_v35, %v2506_v23  ;;  %v2572_v29 = vrot.slane %v2571_v43, 2  ;;  %v2583_v45 = vadd.f32 %v2582_v55, %v2581_v32  ;;  %v2591_v39 = vsub.f32 %v3749_v46, %v3767_v17 }
 0x1e6   : > { %v2559_v2 = vadd.f32 %v2558_v24, %v2557_v37  ;;  %v2592_v40 = vsub.f32 %v3751_v7, %v3767_v17  ;;  %v2547_v57 = vadd.f32 %v2546_v31, %v2545_v21 }
 0x1e7   : > { %v2534_v41 = vadd.f32 %v2533_v38, %v2520_v36  ;;  %v2573_v19 = vadd.f32 %v2572_v29, %v2571_v43  ;;  %v2584_v11 = vrot.slane %v2583_v45, 4  ;;  %v2593_v48 = vmul.f32 %v2591_v39, %v2591_v39 }
 0x1e8   : > { %v2560_v42 = vrot.slane %v2559_v2, 1  ;;  %v2594_v49 = vmul.f32 %v2592_v40, %v2592_v40 }
 0x1e9   : > { %v2548_v51 = vadd.f32 %v2547_v57, %v2534_v41  ;;  %v2574_v52 = vrot.slane %v2573_v19, 1  ;;  %v2585_v8 = vadd.f32 %v2584_v11, %v2583_v45  ;;  %v2595_v3 = vsel %vm2413_vm4, %v2593_v48, 0.0 }
 0x1ea   : > { %v2561_v53 = vadd.f32 %v2560_v42, %v2559_v2  ;;  %v2596_v50 = vsel %vm2413_vm4, %v2594_v49, 0.0 }
 0x1eb   : > { %v2586_v46 = vrot.slane %v2585_v8, 2  ;;  %v2597_v56 = vadd.f32 %v2596_v50, %v2595_v3  ;;  %v2575_v7 = vadd.f32 %v2574_v52, %v2573_v19 }
 0x1ec   : > { %v2562_v47 = vadd.f32 %v2561_v53, %v2548_v51 }
 0x1ed   : > { %v2587_v17 = vadd.f32 %v2586_v46, %v2585_v8  ;;  %v2598_v59 = vrot.slane %v2597_v56, 4 }
 0x1ee   : > { %v2576_v9 = vadd.f32 %v2575_v7, %v2562_v47 }
 0x1ef   : > { %v2588_v61 = vrot.slane %v2587_v17, 1  ;;  %v2599_v62 = vadd.f32 %v2598_v59, %v2597_v56 }
 0x1f1   : > { %v2589_v58 = vadd.f32 %v2588_v61, %v2587_v17  ;;  %v2600_v6 = vrot.slane %v2599_v62, 2 }
 0x1f3   : > { %v2590_v60 = vadd.f32 %v2589_v58, %v2576_v9  ;;  %v2601_v63 = vadd.f32 %v2600_v6, %v2599_v62 }
 0x1f5   : > { %v2602_v34 = vrot.slane %v2601_v63, 1 }
 0x1f7   : > { %v2603_v0 = vadd.f32 %v2602_v34, %v2601_v63 }
 0x1f9   : > { %v2604_v14 = vadd.f32 %v2603_v0, %v2590_v60 }
 0x1fb   : > { %2607 = vst.msk [vmem:[%s903_s24] sm:$0x1] %vm2605_vm5, %v2604_v14 }
 0x1fc PF: > { %s23_s25 = sadd.s32 1, %s3189_s25   ;;  %s3857_s22 = sld [smem:[#allocation2_spill]] }
 0x1fd   : > { %p20_p3 = scmp.ge.s32.totalorder %s23_s25, 6   ;;  %s3858_s26 = sld [smem:[#allocation3_spill]] }
 0x1fe   : > { %s3859_s24 = sld [smem:[#allocation4_spill]]  ;;  %s3860_s21 = smov %s3181_s23 }
 0x1ff   :  { %22 = sbr.rel (!%p20_p3) target bundleno = 3 (0x3), region = 141 }
 0x203   : > { %s3861_s23 = smov %s3858_s26 }

// kernel: up_conv_layer.3
= control target key start
LH: loop header
LB: loop body
LE: loop exit
PB: predicated region body
PF: predicated region fallthrough
CT: control target
= control target key end

     0   :  { %s3154_s25 = smov 0   ;;  %s3156_s26 = smov 0   ;;  %s3660_s0 = inlined_call_operand.vmem [shape: bf16[2,18,18,4], index: 0, kind: input, shape index: {}, may-alias: {0,1,2,3,4,5,6,7,8,9}]   ;;  %s3661_s1 = inlined_call_operand.vmem [shape: bf16[2,18,18,4], index: 1, kind: input, shape index: {}, may-alias: {0,1,2,3,4,5,6,7,8,9}]   ;;  %s3662_s2 = inlined_call_operand.vmem [shape: bf16[2,18,18,4], index: 2, kind: input, shape index: {}, may-alias: {0,1,2,3,4,5,6,7,8,9}]   ;;  %s3663_s3 = inlined_call_operand.vmem [shape: bf16[2,18,18,4], index: 3, kind: input, shape index: {}, may-alias: {0,1,2,3,4,5,6,7,8,9}]   ;;  %s3664_s4 = inlined_call_operand.vmem [shape: bf16[2,18,18,4], index: 4, kind: input, shape index: {}, may-alias: {0,1,2,3,4,5,6,7,8,9}]   ;;  %s3665_s5 = inlined_call_operand.vmem [shape: bf16[2,18,18,4], index: 5, kind: input, shape index: {}, may-alias: {0,1,2,3,4,5,6,7,8,9}]   ;;  %s3666_s6 = inlined_call_operand.vmem [shape: bf16[2,18,18,4], index: 6, kind: input, shape index: {}, may-alias: {0,1,2,3,4,5,6,7,8,9}]   ;;  %s3667_s7 = inlined_call_operand.vmem [shape: bf16[2,18,18,4], index: 7, kind: input, shape index: {}, may-alias: {0,1,2,3,4,5,6,7,8,9}]   ;;  %s3668_s8 = inlined_call_operand.vmem [shape: bf16[2,18,18,4], index: 8, kind: input, shape index: {}, may-alias: {0,1,2,3,4,5,6,7,8,9}]   ;;  %s3669_s9 = inlined_call_operand.vmem [shape: bf16[2,18,18,4], index: 9, kind: input, shape index: {}, may-alias: {0,1,2,3,4,5,6,7,8,9}]   ;;  %s3670_s10 = inlined_call_operand.vmem [shape: bf16[9,4,32], index: 10, kind: input, shape index: {}]   ;;  %s3671_s11 = inlined_call_operand.vmem [shape: f32[1,32], index: 11, kind: input, shape index: {}]   ;;  %s3672_s12 = inlined_call_operand.vmem [shape: f32[1,32], index: 12, kind: input, shape index: {}]   ;;  %s3673_s13 = inlined_call_operand.vmem [shape: f32[2,16,16,32], index: 13, kind: output, shape index: {}]  }
   0x1   :  { %3674 = sst [smem:[#allocation4_spill]] %s3660_s0  ;;  %s3158_s27 = smov 0  }
   0x2   :  { %s3160_s28 = smov 0   ;;  %s3162_s29 = smov 0  }
   0x3 LB: > { %s32_s30 = sadd.s32 1, %s3074_s27  ;;  %s35_s14 = sadd.s32 1, %s3078_s28  ;;  %s3082_s29 = sphi %s3162_s29, %s23_s29   ;;  %s3078_s28 = sphi %s3160_s28, %s3683_s28   ;;  %s3074_s27 = sphi %s3158_s27, %s3682_s27   ;;  %s3070_s26 = sphi %s3156_s26, %s3681_s26   ;;  %s3066_s25 = sphi %s3154_s25, %s3680_s25  }
   0x4   : > { %p33_p0 = scmp.ge.s32.totalorder %s32_s30, 2  ;;  %p2820_p1 = scmp.ge.s32.totalorder %s3082_s29, 1 }
   0x5   : > { %p627_p2 = scmp.lt.s32.totalorder %s3082_s29, 5 }
   0x6   : > { %s3685_s30 = smov (%p33_p0, %s32_s30), 0  ;;  %s3687_s14 = smov (!%p33_p0, %s35_s14), %s3078_s28 }
   0x7   : > { %3675 = sst [smem:[#allocation2_spill]] %s3685_s30  ;;  %p628_p3 = pnand %p2820_p1, %p627_p2 }
   0x8   : > { %p37_p4 = scmp.ge.s32.totalorder %s3687_s14, 2  ;;  %s3190_s19 = sshll.u32 (!%p628_p3), %s3066_s25, 3 }
   0x9   : > { %631 = sbr.rel (%p628_p3) target bundleno = 454 (0x1c6), region = 72  ;;  %p781_p5 = scmp.lt.s32.totalorder (!%p628_p3), %s3070_s26, 1 }
   0xa   : > { %s3689_s14 = smov (%p37_p4, %s3687_s14), 0  ;;  %p783_p6 = scmp.lt.s32.totalorder (!%p628_p3), %s3190_s19, 17 }
   0xb   : > { %3676 = sst [smem:[#allocation3_spill]] %s3689_s14  ;;  %s792_s23 = sadd.s32 (!%p628_p3), 1, %s3190_s19 }
   0xc   : > { %s805_s17 = sadd.s32 (!%p628_p3), 2, %s3190_s19  ;;  %p795_p7 = scmp.lt.s32.totalorder (!%p628_p3), %s792_s23, 17 }
   0xd   : > { %s3677_s0 = sld [smem:[#allocation4_spill]] (!%p628_p3)  ;;  %p808_p8 = scmp.lt.s32.totalorder (!%p628_p3), %s805_s17, 17 }
   0xe   : > { %v950_v0 = vld [vmem:[%s3670_s10] sm:$0x3]  ;;  %vm994_vm0 = vcmask 1041408   ;;  %v2847_v1 = vld [vmem:[%s3670_s10 + $0x6] sm:$0x3]  ;;  %s3691_s26 = smov (!%p781_p5, %s3070_s26), 1 }
   0xf   : > { %v3193_v2 = vsel %vm994_vm0, %v950_v0, 0  ;;  %v3196_v3 = vsel %vm994_vm0, %v2847_v1, 0  ;;  %v2846_v4 = vld [vmem:[%s3670_s10 + $0x4] sm:$0x3]  ;;  %v2845_v5 = vld [vmem:[%s3670_s10 + $0x2] sm:$0x3] }
  0x10   : > { %1024 = vmatpush.bf16.msra.mxu1 %v3193_v2  ;;  %1075 = vmatpush.bf16.msra.mxu3 %v3196_v3  ;;  %v3210_v6 = vsel %vm994_vm0, %v2846_v4, 0  ;;  %v3213_v7 = vsel %vm994_vm0, %v2845_v5, 0  ;;  %v2850_v8 = vld [vmem:[%s3670_s10 + $0xc] sm:$0x3]  ;;  %s784_s15 = scalar_select %p783_p6, %s3190_s19, 17  ;;  %vm990_vm1 = vcmask 31744  }
  0x11   : > { %1048 = vmatpush.bf16.msra.mxu2 %v3210_v6  ;;  %1005 = vmatpush.bf16.msra.mxu0 %v3213_v7  ;;  %v3222_v9 = vsel %vm994_vm0, %v2850_v8, 0  ;;  %v2848_v10 = vld [vmem:[%s3670_s10 + $0x8] sm:$0x3]  ;;  %s3228_s18 = smul.u32 54, %s3691_s26  ;;  %v2851_v12 = vld [vmem:[%s3670_s10 + $0xe] sm:$0x3] }
  0x12   : > { %v3232_v11 = vsel %vm994_vm0, %v2848_v10, 0  ;;  %s2991_s22 = smul.u32 3, %s784_s15  ;;  %v3240_v13 = vsel %vm994_vm0, %v2851_v12, 0  ;;  %v2849_v14 = vld [vmem:[%s3670_s10 + $0xa] sm:$0x3]  ;;  %s3693_s23 = smov (!%p795_p7, %s792_s23), 17 }
  0x13   : > { %v3247_v15 = vsel %vm994_vm0, %v2849_v14, 0  ;;  %s3695_s17 = smov (!%p808_p8, %s805_s17), 17  ;;  %vm1031_vm2 = vcmask 1046528   ;;  %v2852_v26 = vld [vmem:[%s3670_s10 + $0x10] sm:$0x3]  ;;  %s831_s21 = sadd.s32 4, %s3190_s19 }
  0x14   : > { %1199 = vmatpush.bf16.msrb.mxu3 %v3240_v13  ;;  %s787_s16 = sadd.s32 %s3228_s18, %s2991_s22  ;;  %1136 = vmatpush.bf16.msrb.mxu1 %v3247_v15  ;;  %s2993_s22 = smul.u32 3, %s3693_s23  ;;  %vm977_vm3 = vsmask.f32 7424  ;;  %v3268_v30 = vsel %vm994_vm0, %v2852_v26, 0  ;;  %vm1245_vm4 = vcmask 261120  }
  0x15   : > { %1163 = vmatpush.bf16.msrb.mxu2 %v3222_v9  ;;  %1111 = vmatpush.bf16.msrb.mxu0 %v3232_v11  ;;  %s2822_s15 = sshll.u32 %s787_s16, 2  ;;  %p834_p10 = scmp.lt.s32.totalorder %s831_s21, 17 }
  0x16   : > { %s789_s14 = scalar_lea.vmem %s3677_s0, %s2822_s15  ;;  %s799_s16 = sadd.s32 %s2993_s22, %s3228_s18 }
  0x17   : > { %v2981_v16 = vld [vmem:[%s789_s14] sm:$0xff]  ;;  %v922_v17 = vld [vmem:[%s789_s14 + $0x8] sm:$0x1]  ;;  %s2994_s14 = smul.u32 3, %s3695_s17  ;;  %s2824_s15 = sshll.u32 %s799_s16, 2 }
  0x18   : > { %v974_v18 = vunpack.c.l.b16 %v922_v17  ;;  %2858 = vmatmul.msk.bf16.vlgmr.msra.gmra.mxu1 %vm990_vm1, %v2981_v16  ;;  %v979_v19 = vshrl.u32 %v2981_v16, 16  ;;  %v981_v20 = vshll.u32 %v2981_v16, 16  ;;  %v1032_v22 = vrot.slane %v2981_v16, 1  ;;  %s801_s23 = scalar_lea.vmem %s3661_s1, %s2824_s15  ;;  %s818_s0 = sadd.s32 3, %s3190_s19 }
  0x19   : > { %1255 = vmatpush.bf16.msra.mxu1 %v3213_v7  ;;  %s812_s20 = sadd.s32 %s2994_s14, %s3228_s18  ;;  %v2982_v31 = vld [vmem:[%s801_s23] sm:$0xff]  ;;  %v925_v33 = vld [vmem:[%s801_s23 + $0x8] sm:$0x1]  ;;  %p821_p9 = scmp.lt.s32.totalorder %s818_s0, 17 }
  0x1a   : > { %v976_v21 = vpack.c.b16 %v974_v18, %v974_v18  ;;  %v983_v23 = vrot.slane %v981_v20, 1  ;;  %s2826_s30 = sshll.u32 %s812_s20, 2  ;;  %v1085_v34 = vunpack.c.l.b16 %v925_v33  ;;  %2864 = vmatmul.msk.bf16.vlgmr.msra.gmra.mxu3 %vm990_vm1, %v2982_v31  ;;  %v1089_v38 = vshll.u32 %v2982_v31, 16  ;;  %s3699_s21 = smov (!%p834_p10, %s831_s21), 17 }
  0x1b   : > { %s814_s24 = scalar_lea.vmem %s3662_s2, %s2826_s30  ;;  %v1120_v40 = vrot.slane %v2982_v31, 1  ;;  %1283 = vmatpush.bf16.msra.mxu3 %v3210_v6  ;;  %v1087_v44 = vshrl.u32 %v2982_v31, 16  ;;  %s3697_s0 = smov (!%p821_p9, %s818_s0), 17 }
  0x1c   : > { %v1033_v24 = vrot.slane %v976_v21, 1  ;;  %v986_v25 = vshll.u32 %v976_v21, 16  ;;  %v984_v27 = vor.u32 %v983_v23, %v979_v19  ;;  %v3276_v35 = vld [vmem:[%s814_s24] sm:$0xff]  ;;  %v928_v36 = vld [vmem:[%s814_s24 + $0x8] sm:$0x1]  ;;  %v1086_v39 = vpack.c.b16 %v1085_v34, %v1085_v34  ;;  %s2995_s30 = smul.u32 3, %s3697_s0 }
  0x1d   : > { %v1173_v37 = vunpack.c.l.b16 %v928_v36  ;;  %v1177_v41 = vshll.u32 %v3276_v35, 16  ;;  %v1091_v45 = vrot.slane %v1089_v38, 1  ;;  %v1175_v48 = vshrl.u32 %v3276_v35, 16  ;;  %s2996_s23 = smul.u32 3, %s3699_s21  ;;  %p911_p13 = scmp.lt.s32.totalorder %s3190_s19, 15 }
  0x1e   : > { %v1034_v28 = vsel %vm1031_vm2, %v1032_v22, %v1033_v24  ;;  %v988_v29 = vrot.slane %v986_v25, 1  ;;  %v1121_v43 = vrot.slane %v1086_v39, 1  ;;  %v1094_v46 = vshll.u32 %v1086_v39, 16  ;;  %s825_s14 = sadd.s32 %s2995_s30, %s3228_s18 }
  0x1f   : > { %2859 = vmatmul.msk.bf16.vlgmr.msra.gmra.mxu2 %vm990_vm1, %v1034_v28  ;;  %v1174_v42 = vpack.c.b16 %v1173_v37, %v1173_v37  ;;  %v1179_v49 = vrot.slane %v1177_v41, 1  ;;  %v1092_v51 = vor.u32 %v1091_v45, %v1087_v44  ;;  %v1208_v57 = vrot.slane %v3276_v35, 1  ;;  %s2828_s25 = sshll.u32 %s825_s14, 2  ;;  %s838_s17 = sadd.s32 %s2996_s23, %s3228_s18 }
  0x20   : > { %v989_v32 = vsel %vm977_vm3, %v984_v27, %v988_v29  ;;  %1269 = vmatpush.bf16.msra.mxu2 %v3193_v2  ;;  %v1122_v47 = vsel %vm1031_vm2, %v1120_v40, %v1121_v43  ;;  %v1096_v52 = vrot.slane %v1094_v46, 1  ;;  %s827_s20 = scalar_lea.vmem %s3663_s3, %s2828_s25  ;;  %s2830_s22 = sshll.u32 %s838_s17, 2 }
  0x21   : > { %2857 = vmatmul.msk.bf16.vlgmr.msra.gmra.mxu0 %vm990_vm1, %v989_v32  ;;  %v1182_v50 = vshll.u32 %v1174_v42, 16  ;;  %v1180_v53 = vor.u32 %v1179_v49, %v1175_v48  ;;  %v1209_v58 = vrot.slane %v1174_v42, 1  ;;  %v931_v60 = vld [vmem:[%s827_s20 + $0x8] sm:$0x1]  ;;  %v3313_v62 = vld [vmem:[%s827_s20] sm:$0xff]  ;;  %s840_s30 = scalar_lea.vmem %s3664_s4, %s2830_s22  ;;  %s844_s14 = sadd.s32 5, %s3190_s19 }
  0x22   : > { %1224 = vmatpush.bf16.msra.mxu0 %v3268_v30  ;;  %v1097_v55 = vsel %vm977_vm3, %v1092_v51, %v1096_v52  ;;  %v1365_v61 = vunpack.c.l.b16 %v931_v60  ;;  %v1397_v0 = vrot.slane %v3313_v62, 1  ;;  %v1369_v4 = vshll.u32 %v3313_v62, 16  ;;  %v934_v18 = vld [vmem:[%s840_s30 + $0x8] sm:$0x1]  ;;  %v3341_v19 = vld [vmem:[%s840_s30] sm:$0xff]  ;;  %p847_p11 = scmp.lt.s32.totalorder %s844_s14, 17 }
  0x23   : > { %v1184_v54 = vrot.slane %v1182_v50, 1  ;;  %v1210_v59 = vsel %vm1031_vm2, %v1208_v57, %v1209_v58  ;;  %v1367_v8 = vshrl.u32 %v3313_v62, 16  ;;  %v1545_v20 = vunpack.c.l.b16 %v934_v18  ;;  %s857_s17 = sadd.s32 6, %s3190_s19  ;;  %s2843_s20 = sshll.u32 %s3691_s26, 5 }
  0x24   : > { %v1366_v63 = vpack.c.b16 %v1365_v61, %v1365_v61  ;;  %v1371_v10 = vrot.slane %v1369_v4, 1  ;;  %v1549_v22 = vshll.u32 %v3341_v19, 16  ;;  %v1547_v23 = vshrl.u32 %v3341_v19, 16  ;;  %s3701_s14 = smov (!%p847_p11, %s844_s14), 17  ;;  %p860_p12 = scmp.lt.s32.totalorder %s857_s17, 17 }
  0x25   : > { %v1185_v56 = vsel %vm977_vm3, %v1180_v53, %v1184_v54  ;;  %v1546_v21 = vpack.c.b16 %v1545_v20, %v1545_v20  ;;  %v1577_v29 = vrot.slane %v3341_v19, 1  ;;  %s2997_s25 = smul.u32 3, %s3701_s14 }
  0x26   : > { %v1398_v1 = vrot.slane %v1366_v63, 1  ;;  %v1374_v12 = vshll.u32 %v1366_v63, 16  ;;  %v1372_v14 = vor.u32 %v1371_v10, %v1367_v8  ;;  %v1551_v24 = vrot.slane %v1549_v22, 1  ;;  %s3703_s17 = smov (!%p860_p12, %s857_s17), 17 }
  0x27   : > { %v1554_v25 = vshll.u32 %v1546_v21, 16  ;;  %s851_s16 = sadd.s32 %s2997_s25, %s3228_s18  ;;  %s2998_s22 = smul.u32 3, %s3703_s17 }
  0x28   : > { %2866 = vmatmul.msk.bf16.vlgmr.msrb.gmra.mxu1 %vm990_vm1, %v1122_v47  ;;  %v1399_v5 = vsel %vm1031_vm2, %v1397_v0, %v1398_v1  ;;  %v1376_v16 = vrot.slane %v1374_v12, 1  ;;  %v1552_v26 = vor.u32 %v1551_v24, %v1547_v23  ;;  %s2832_s15 = sshll.u32 %s851_s16, 2 }
  0x29   : > { %1315 = vmatpush.bf16.msrb.mxu1 %v3232_v11  ;;  %v1556_v27 = vrot.slane %v1554_v25, 1  ;;  %s853_s23 = scalar_lea.vmem %s3665_s5, %s2832_s15  ;;  %s864_s24 = sadd.s32 %s2998_s22, %s3228_s18 }
  0x2a   : > { %2872 = vmatmul.msk.bf16.vlgmr.msrb.gmra.mxu3 %vm990_vm1, %v1185_v56  ;;  %v1377_v17 = vsel %vm977_vm3, %v1372_v14, %v1376_v16  ;;  %v937_v33 = vld [vmem:[%s853_s23 + $0x8] sm:$0x1]  ;;  %v3379_v34 = vld [vmem:[%s853_s23] sm:$0xff]  ;;  %s2834_s0 = sshll.u32 %s864_s24, 2  ;;  %s883_s22 = sadd.s32 8, %s3190_s19 }
  0x2b   : > { %1355 = vmatpush.bf16.msrb.mxu3 %v3222_v9  ;;  %v3356_v28 = vsel %vm977_vm3, %v1552_v26, %v1556_v27  ;;  %v1729_v36 = vshll.u32 %v3379_v34, 16  ;;  %v1727_v38 = vshrl.u32 %v3379_v34, 16  ;;  %v1757_v44 = vrot.slane %v3379_v34, 1  ;;  %s866_s25 = scalar_lea.vmem %s3666_s6, %s2834_s0  ;;  %s870_s0 = sadd.s32 7, %s3190_s19 }
  0x2c   : > { %v940_v57 = vld [vmem:[%s866_s25 + $0x8] sm:$0x1]  ;;  %s912_s16 = scalar_select %p911_p13, %s3190_s19, 15 }
  0x2d   : > { %v1731_v39 = vrot.slane %v1729_v36, 1  ;;  %v1905_v63 = vunpack.c.l.b16 %v940_v57  ;;  %p873_p0 = scmp.lt.s32.totalorder %s870_s0, 17  ;;  %p886_p1 = scmp.lt.s32.totalorder %s883_s22, 17 }
  0x2e   : > { %s2842_s15 = sshll.u32 %s912_s16, 1 }
  0x2f   : > { %2871 = vmatmul.msk.bf16.vlgmr.msrb.gmra.mxu2 %vm990_vm1, %v3276_v35  ;;  %v1732_v42 = vor.u32 %v1731_v39, %v1727_v38  ;;  %v3430_v8 = vpack.c.b16 %v1905_v63, %v1905_v63  ;;  %s915_s17 = sadd.s32 %s2843_s20, %s2842_s15  ;;  %s3705_s0 = smov (!%p873_p0, %s870_s0), 17 }
  0x30   : > { %1331 = vmatpush.bf16.msrb.mxu2 %v3247_v15  ;;  %s2844_s24 = sshll.u32 %s915_s17, 3  ;;  %s2999_s16 = smul.u32 3, %s3705_s0 }
  0x31   : > { %2865 = vmatmul.msk.bf16.vlgmr.msrb.gmra.mxu0 %vm990_vm1, %v1097_v55  ;;  %s3707_s22 = smov (!%p886_p1, %s883_s22), 17 }
  0x32   : > { %1299 = vmatpush.bf16.msrb.mxu0 %v3196_v3  ;;  %s877_s15 = sadd.s32 %s2999_s16, %s3228_s18  ;;  %s3000_s26 = smul.u32 3, %s3707_s22 }
  0x33   : > { %s2836_s20 = sshll.u32 %s877_s15, 2  ;;  %s896_s15 = sadd.s32 9, %s3190_s19 }
  0x34   : > { %s879_s17 = scalar_lea.vmem %s3667_s7, %s2836_s20  ;;  %p899_p2 = scmp.lt.s32.totalorder %s896_s15, 17 }
  0x36   : > { %s3709_s15 = smov (!%p899_p2, %s896_s15), 17 }
  0x37   : > { %s3001_s19 = smul.u32 3, %s3709_s15 }
  0x38   : > { %2874 = vmatmul.msk.bf16.vlgmr.msra.gmra.mxu1 %vm990_vm1, %v1097_v55 }
  0x39   : > { %1410 = vmatpush.bf16.msra.mxu1 %v3268_v30  ;;  %s903_s20 = sadd.s32 %s3001_s19, %s3228_s18 }
  0x3a   : > { %2876 = vmatmul.msk.bf16.vlgmr.msra.gmra.mxu3 %vm990_vm1, %v1122_v47  ;;  %s2840_s21 = sshll.u32 %s903_s20, 2 }
  0x3b   : > { %1449 = vmatpush.bf16.msra.mxu3 %v3193_v2  ;;  %s905_s22 = scalar_lea.vmem %s3669_s9, %s2840_s21 }
  0x3f   : > { %2875 = vmatmul.msk.bf16.vlgmr.msra.gmra.mxu2 %vm990_vm1, %v2982_v31  ;;  %v1578_v31 = vrot.slane %v1546_v21, 1  ;;  %v1914_v21 = vshll.u32 %v3430_v8, 16 }
  0x40   : > { %1435 = vmatpush.bf16.msra.mxu2 %v3213_v7 }
  0x41   : > { %2873 = vmatmul.msk.bf16.vlgmr.msra.gmra.mxu0 %vm990_vm1, %v1210_v59  ;;  %v3363_v32 = vsel %vm1031_vm2, %v1577_v29, %v1578_v31  ;;  %v1916_v26 = vrot.slane %v1914_v21, 1  ;;  %v3444_v31 = vld [vmem:[%s3671_s11] ss:$0 sm:$0xff] }
  0x42   : > { %1388 = vmatpush.bf16.msra.mxu0 %v3240_v13 }
  0x48   : > { %2878 = vmatmul.msk.bf16.vlgmr.msrb.gmra.mxu1 %vm990_vm1, %v1185_v56 }
  0x49   : > { %1479 = vmatpush.bf16.msrb.mxu1 %v3196_v3 }
  0x4a   : > { %2884 = vmatmul.msk.bf16.vlgmr.msrb.gmra.mxu3 %vm990_vm1, %v3313_v62 }
  0x4b   : > { %1511 = vmatpush.bf16.msrb.mxu3 %v3247_v15 }
  0x4f   : > { %2879 = vmatmul.msk.bf16.vlgmr.msrb.gmra.mxu2 %vm990_vm1, %v1210_v59 }
  0x50   : > { %1495 = vmatpush.bf16.msrb.mxu2 %v3232_v11 }
  0x51   : > { %2877 = vmatmul.msk.bf16.vlgmr.msrb.gmra.mxu0 %vm990_vm1, %v3276_v35 }
  0x52   : > { %1463 = vmatpush.bf16.msrb.mxu0 %v3210_v6 }
  0x58   : > { %2886 = vmatmul.msk.bf16.vlgmr.msra.gmra.mxu1 %vm990_vm1, %v1399_v5 }
  0x59   : > { %1568 = vmatpush.bf16.msra.mxu1 %v3240_v13 }
  0x5a   : > { %2890 = vmatmul.msk.bf16.vlgmr.msra.gmra.mxu3 %vm990_vm1, %v3276_v35  ;;  %v1725_v35 = vunpack.c.l.b16 %v937_v33 }
  0x5b   : > { %1615 = vmatpush.bf16.msra.mxu3 %v3213_v7 }
  0x5c   : > { %v1726_v37 = vpack.c.b16 %v1725_v35, %v1725_v35 }
  0x5e   : > { %v1734_v40 = vshll.u32 %v1726_v37, 16  ;;  %v1758_v45 = vrot.slane %v1726_v37, 1  ;;  %v3452_v37 = vld [vmem:[%s3672_s12] ss:$0 sm:$0xff] }
  0x5f   : > { %2889 = vmatmul.msk.bf16.vlgmr.msra.gmra.mxu2 %vm990_vm1, %v1185_v56 }
  0x60   : > { %1590 = vmatpush.bf16.msra.mxu2 %v3268_v30  ;;  %v1736_v43 = vrot.slane %v1734_v40, 1  ;;  %v3401_v49 = vsel %vm1031_vm2, %v1757_v44, %v1758_v45 }
  0x61   : > { %2885 = vmatmul.msk.bf16.vlgmr.msra.gmra.mxu0 %vm990_vm1, %v1377_v17 }
  0x62   : > { %1535 = vmatpush.bf16.msra.mxu0 %v3222_v9  ;;  %v3398_v46 = vsel %vm977_vm3, %v1732_v42, %v1736_v43 }
  0x68   : > { %2892 = vmatmul.msk.bf16.vlgmr.msrb.gmra.mxu1 %vm990_vm1, %v3313_v62 }
  0x69   : > { %1643 = vmatpush.bf16.msrb.mxu1 %v3210_v6 }
  0x6a   : > { %2894 = vmatmul.msk.bf16.vlgmr.msrb.gmra.mxu3 %vm990_vm1, %v1399_v5 }
  0x6b   : > { %1675 = vmatpush.bf16.msrb.mxu3 %v3232_v11 }
  0x6f   : > { %2893 = vmatmul.msk.bf16.vlgmr.msrb.gmra.mxu2 %vm990_vm1, %v1377_v17 }
  0x70   : > { %1659 = vmatpush.bf16.msrb.mxu2 %v3196_v3 }
  0x71   : > { %2891 = vmatmul.msk.bf16.vlgmr.msrb.gmra.mxu0 %vm990_vm1, %v1210_v59 }
  0x72   : > { %1629 = vmatpush.bf16.msrb.mxu0 %v3193_v2 }
  0x78   : > { %2900 = vmatmul.msk.bf16.vlgmr.msra.gmra.mxu1 %vm990_vm1, %v3356_v28 }
  0x79   : > { %1715 = vmatpush.bf16.msra.mxu1 %v3222_v9 }
  0x7a   : > { %2904 = vmatmul.msk.bf16.vlgmr.msra.gmra.mxu3 %vm990_vm1, %v1377_v17 }
  0x7b   : > { %1770 = vmatpush.bf16.msra.mxu3 %v3268_v30 }
  0x7f   : > { %2901 = vmatmul.msk.bf16.vlgmr.msra.gmra.mxu2 %vm990_vm1, %v3363_v32 }
  0x80   : > { %1748 = vmatpush.bf16.msra.mxu2 %v3240_v13 }
  0x81   : > { %2899 = vmatmul.msk.bf16.vlgmr.msra.gmra.mxu0 %vm990_vm1, %v3341_v19 }
  0x82   : > { %1691 = vmatpush.bf16.msra.mxu0 %v3247_v15 }
  0x88   : > { %2906 = vmatmul.msk.bf16.vlgmr.msrb.gmra.mxu1 %vm990_vm1, %v1399_v5 }
  0x89   : > { %1809 = vmatpush.bf16.msrb.mxu1 %v3193_v2 }
  0x8a   : > { %2908 = vmatmul.msk.bf16.vlgmr.msrb.gmra.mxu3 %vm990_vm1, %v3356_v28 }
  0x8b   : > { %1839 = vmatpush.bf16.msrb.mxu3 %v3196_v3 }
  0x8f   : > { %2907 = vmatmul.msk.bf16.vlgmr.msrb.gmra.mxu2 %vm990_vm1, %v3341_v19 }
  0x90   : > { %1823 = vmatpush.bf16.msrb.mxu2 %v3210_v6 }
  0x91   : > { %2905 = vmatmul.msk.bf16.vlgmr.msrb.gmra.mxu0 %vm990_vm1, %v3313_v62  ;;  %v3421_v62 = vld [vmem:[%s866_s25] sm:$0xff]  ;;  %s3469_s25 = scalar_lea.vmem %s3673_s13, %s2844_s24  ;;  %s890_s24 = sadd.s32 %s3000_s26, %s3228_s18 }
  0x92   : > { %1795 = vmatpush.bf16.msrb.mxu0 %v3213_v7  ;;  %v1909_v10 = vshll.u32 %v3421_v62, 16  ;;  %s2838_s0 = sshll.u32 %s890_s24, 2 }
  0x93   : > { %s892_s16 = scalar_lea.vmem %s3668_s8, %s2838_s0 }
  0x94   : > { %v1911_v20 = vrot.slane %v1909_v10, 1  ;;  %v943_v10 = vld [vmem:[%s879_s17 + $0x8] sm:$0x1] }
  0x95   : > { %v1026_v41 = vpop.f32.mrf.mxu1 }
  0x98   : > { %2914 = vmatmul.msk.bf16.vlgmr.msra.gmra.mxu1 %vm990_vm1, %v3379_v34 }
  0x99   : > { %1871 = vmatpush.bf16.msra.mxu1 %v3247_v15 }
  0x9a   : > { %2916 = vmatmul.msk.bf16.vlgmr.msra.gmra.mxu3 %vm990_vm1, %v3401_v49 }
  0x9b   : > { %1928 = vmatpush.bf16.msra.mxu3 %v3240_v13 }
  0x9d   : > { %v1028_v48 = vpop.f32.mrf.mxu1  ;;  %v1077_v51 = vpop.f32.mrf.mxu3 }
  0x9e   : > { %v1007_v47 = vpop.f32.mrf.mxu0 }
  0x9f   : > { %2915 = vmatmul.msk.bf16.vlgmr.msra.gmra.mxu2 %vm990_vm1, %v3398_v46  ;;  %v1027_v54 = vadd.f32 %v1026_v41, %v1007_v47 }
  0xa0   : > { %1895 = vmatpush.bf16.msra.mxu2 %v3222_v9 }
  0xa1   : > { %2909 = vmatmul.msk.bf16.vlgmr.msra.gmra.mxu0 %vm990_vm1, %v3363_v32 }
  0xa2   : > { %v1050_v50 = vpop.f32.mrf.mxu2  ;;  %1855 = vmatpush.bf16.msra.mxu0 %v3232_v11 }
  0xa3   : > { %v1055_v56 = vadd.f32 %v1050_v50, %v1027_v54 }
  0xa5   : > { %v1138_v53 = vpop.f32.mrf.mxu1  ;;  %v1079_v58 = vpop.f32.mrf.mxu3  ;;  %v1082_v61 = vadd.f32 %v1077_v51, %v1055_v56 }
  0xa6   : > { %v1009_v52 = vpop.f32.mrf.mxu0 }
  0xa7   : > { %v1029_v0 = vadd.f32 %v1028_v48, %v1009_v52  ;;  %v1937_v52 = vrot.slane %v3421_v62, 1 }
  0xa8   : > { %2920 = vmatmul.msk.bf16.vlgmr.msrb.gmra.mxu1 %vm990_vm1, %v3341_v19  ;;  %v1907_v19 = vshrl.u32 %v3421_v62, 16 }
  0xa9   : > { %1975 = vmatpush.bf16.msrb.mxu1 %v3213_v7 }
  0xaa   : > { %v1052_v55 = vpop.f32.mrf.mxu2  ;;  %2922 = vmatmul.msk.bf16.vlgmr.msrb.gmra.mxu3 %vm990_vm1, %v3379_v34  ;;  %v1912_v25 = vor.u32 %v1911_v20, %v1907_v19  ;;  %v3502_v20 = vld [vmem:[%s879_s17] sm:$0xff] }
  0xab   : > { %v1056_v5 = vadd.f32 %v1052_v55, %v1029_v0  ;;  %2003 = vmatpush.bf16.msrb.mxu3 %v3210_v6 }
  0xac   : > { %v3447_v35 = vsel %vm977_vm3, %v1912_v25, %v1916_v26 }
  0xad   : > { %v1140_v60 = vpop.f32.mrf.mxu1  ;;  %v1201_v12 = vpop.f32.mrf.mxu3  ;;  %v1083_v18 = vadd.f32 %v1079_v58, %v1056_v5 }
  0xae   : > { %v1113_v59 = vpop.f32.mrf.mxu0 }
  0xaf   : > { %2921 = vmatmul.msk.bf16.vlgmr.msrb.gmra.mxu2 %vm990_vm1, %v3363_v32  ;;  %v1118_v1 = vadd.f32 %v1113_v59, %v1082_v61 }
  0xb0   : > { %1989 = vmatpush.bf16.msrb.mxu2 %v3193_v2 }
  0xb1   : > { %2919 = vmatmul.msk.bf16.vlgmr.msrb.gmra.mxu0 %vm990_vm1, %v3356_v28  ;;  %v1143_v14 = vadd.f32 %v1138_v53, %v1118_v1  ;;  %v1938_v53 = vrot.slane %v3430_v8, 1 }
  0xb2   : > { %v1165_v4 = vpop.f32.mrf.mxu2  ;;  %1950 = vmatpush.bf16.msrb.mxu0 %v3268_v30 }
  0xb3   : > { %v1170_v22 = vadd.f32 %v1165_v4, %v1143_v14 }
  0xb5   : > { %v1257_v17 = vpop.f32.mrf.mxu1  ;;  %v1203_v27 = vpop.f32.mrf.mxu3  ;;  %v1206_v29 = vadd.f32 %v1201_v12, %v1170_v22 }
  0xb6   : > { %v1115_v16 = vpop.f32.mrf.mxu0 }
  0xb7   : > { %v1119_v23 = vadd.f32 %v1115_v16, %v1083_v18  ;;  %v2085_v16 = vunpack.c.l.b16 %v943_v10 }
  0xb8   : > { %2924 = vmatmul.msk.bf16.vlgmr.msra.gmra.mxu1 %vm990_vm1, %v3401_v49 }
  0xb9   : > { %2035 = vmatpush.bf16.msra.mxu1 %v3232_v11  ;;  %v1144_v28 = vadd.f32 %v1140_v60, %v1119_v23  ;;  %v3481_v60 = vsel %vm1031_vm2, %v1937_v52, %v1938_v53  ;;  %v2086_v23 = vpack.c.b16 %v2085_v16, %v2085_v16 }
  0xba   : > { %v1167_v24 = vpop.f32.mrf.mxu2  ;;  %2930 = vmatmul.msk.bf16.vlgmr.msra.gmra.mxu3 %vm990_vm1, %v3447_v35 }
  0xbb   : > { %v1171_v38 = vadd.f32 %v1167_v24, %v1144_v28  ;;  %2075 = vmatpush.bf16.msra.mxu3 %v3222_v9  ;;  %v2117_v28 = vrot.slane %v3502_v20, 1 }
  0xbd   : > { %v1259_v33 = vpop.f32.mrf.mxu1  ;;  %v1285_v43 = vpop.f32.mrf.mxu3  ;;  %v1207_v44 = vadd.f32 %v1203_v27, %v1171_v38 }
  0xbe   : > { %v1226_v32 = vpop.f32.mrf.mxu0 }
  0xbf   : > { %v1231_v36 = vadd.f32 %v1226_v32, %v1206_v29  ;;  %2929 = vmatmul.msk.bf16.vlgmr.msra.gmra.mxu2 %vm990_vm1, %v3421_v62  ;;  %v2118_v29 = vrot.slane %v2086_v23, 1  ;;  %v2089_v32 = vshll.u32 %v3502_v20, 16 }
  0xc0   : > { %2051 = vmatpush.bf16.msra.mxu2 %v3247_v15 }
  0xc1   : > { %v1236_v39 = vmul.f32 %v3444_v31, %v1231_v36  ;;  %2923 = vmatmul.msk.bf16.vlgmr.msra.gmra.mxu0 %vm990_vm1, %v3398_v46 }
  0xc2   : > { %v1271_v40 = vpop.f32.mrf.mxu2  ;;  %2019 = vmatpush.bf16.msra.mxu0 %v3196_v3 }
  0xc3   : > { %v1241_v41 = vadd.f32 %v3452_v37, %v1236_v39  ;;  %v1272_v54 = vadd.f32 %v1271_v40, %v1257_v17 }
  0xc5   : > { %v1243_v42 = vmax.f32 %v1241_v41, 0.0  ;;  %v1317_v47 = vpop.f32.mrf.mxu1  ;;  %v1287_v57 = vpop.f32.mrf.mxu3 }
  0xc6   : > { %v1228_v45 = vpop.f32.mrf.mxu0 }
  0xc7   : > { %1246 = vst.msk [vmem:[%s3469_s25] sm:$0xff] %vm1245_vm4, %v1243_v42  ;;  %v1232_v48 = vadd.f32 %v1228_v45, %v1207_v44  ;;  %v3518_v42 = vsel %vm1031_vm2, %v2117_v28, %v2118_v29  ;;  %v2091_v44 = vrot.slane %v2089_v32, 1  ;;  %v2094_v45 = vshll.u32 %v2086_v23, 16 }
  0xc8   : > { %2934 = vmatmul.msk.bf16.vlgmr.msrb.gmra.mxu1 %vm990_vm1, %v3398_v46  ;;  %v1290_v46 = vadd.f32 %v1285_v43, %v1272_v54  ;;  %v2087_v43 = vshrl.u32 %v3502_v20, 16 }
  0xc9   : > { %v1237_v50 = vmul.f32 %v3444_v31, %v1232_v48  ;;  %2130 = vmatpush.bf16.msrb.mxu1 %v3268_v30  ;;  %v2096_v53 = vrot.slane %v2094_v45, 1 }
  0xca   : > { %v1273_v51 = vpop.f32.mrf.mxu2  ;;  %2936 = vmatmul.msk.bf16.vlgmr.msrb.gmra.mxu3 %vm990_vm1, %v3401_v49  ;;  %v2092_v52 = vor.u32 %v2091_v44, %v2087_v43 }
  0xcb   : > { %v1242_v55 = vadd.f32 %v3452_v37, %v1237_v50  ;;  %v1274_v0 = vadd.f32 %v1273_v51, %v1259_v33  ;;  %2169 = vmatpush.bf16.msrb.mxu3 %v3193_v2 }
  0xcd   : > { %v1244_v56 = vmax.f32 %v1242_v55, 0.0  ;;  %v1319_v59 = vpop.f32.mrf.mxu1  ;;  %v1357_v1 = vpop.f32.mrf.mxu3  ;;  %v1291_v8 = vadd.f32 %v1287_v57, %v1274_v0 }
  0xce   : > { %v1301_v58 = vpop.f32.mrf.mxu0 }
  0xcf   : > { %1247 = vst.msk [vmem:[%s3469_s25 + $0x8] sm:$0xff] %vm1245_vm4, %v1244_v56  ;;  %2935 = vmatmul.msk.bf16.vlgmr.msrb.gmra.mxu2 %vm990_vm1, %v3379_v34  ;;  %v1306_v61 = vadd.f32 %v1301_v58, %v1290_v46 }
  0xd0   : > { %2155 = vmatpush.bf16.msrb.mxu2 %v3213_v7 }
  0xd1   : > { %2931 = vmatmul.msk.bf16.vlgmr.msrb.gmra.mxu0 %vm990_vm1, %v3481_v60  ;;  %v1322_v34 = vadd.f32 %v1317_v47, %v1306_v61 }
  0xd2   : > { %v1333_v63 = vpop.f32.mrf.mxu2  ;;  %2108 = vmatpush.bf16.msrb.mxu0 %v3240_v13 }
  0xd3   : > { %v1338_v12 = vadd.f32 %v1333_v63, %v1322_v34 }
  0xd5   : > { %v1412_v5 = vpop.f32.mrf.mxu1  ;;  %v1359_v17 = vpop.f32.mrf.mxu3  ;;  %v1362_v19 = vadd.f32 %v1357_v1, %v1338_v12 }
  0xd6   : > { %v1303_v4 = vpop.f32.mrf.mxu0 }
  0xd7   : > { %v1307_v49 = vadd.f32 %v1303_v4, %v1291_v8  ;;  %v3546_v8 = vld [vmem:[%s892_s16] sm:$0xff] }
  0xd8   : > { %2938 = vmatmul.msk.bf16.vlgmr.msra.gmra.mxu1 %vm990_vm1, %v3447_v35  ;;  %v2267_v23 = vshrl.u32 %v3546_v8, 16  ;;  %v2297_v44 = vrot.slane %v3546_v8, 1 }
  0xd9   : > { %2199 = vmatpush.bf16.msra.mxu1 %v3196_v3  ;;  %v1323_v18 = vadd.f32 %v1319_v59, %v1307_v49  ;;  %v3530_v59 = vsel %vm977_vm3, %v2092_v52, %v2096_v53 }
  0xda   : > { %v1335_v14 = vpop.f32.mrf.mxu2  ;;  %2944 = vmatmul.msk.bf16.vlgmr.msra.gmra.mxu3 %vm990_vm1, %v3502_v20 }
  0xdb   : > { %v1339_v25 = vadd.f32 %v1335_v14, %v1323_v18  ;;  %2231 = vmatpush.bf16.msra.mxu3 %v3247_v15 }
  0xdd   : > { %v1414_v22 = vpop.f32.mrf.mxu1  ;;  %v1451_v38 = vpop.f32.mrf.mxu3  ;;  %v1363_v39 = vadd.f32 %v1359_v17, %v1339_v25  ;;  %v2269_v17 = vshll.u32 %v3546_v8, 16 }
  0xde   : > { %v1390_v21 = vpop.f32.mrf.mxu0 }
  0xdf   : > { %v1395_v24 = vadd.f32 %v1390_v21, %v1362_v19  ;;  %2939 = vmatmul.msk.bf16.vlgmr.msra.gmra.mxu2 %vm990_vm1, %v3481_v60 }
  0xe0   : > { %2215 = vmatpush.bf16.msra.mxu2 %v3232_v11 }
  0xe1   : > { %v1417_v26 = vadd.f32 %v1412_v5, %v1395_v24  ;;  %2937 = vmatmul.msk.bf16.vlgmr.msra.gmra.mxu0 %vm990_vm1, %v3421_v62  ;;  %v2271_v24 = vrot.slane %v2269_v17, 1 }
  0xe2   : > { %v1437_v27 = vpop.f32.mrf.mxu2  ;;  %2183 = vmatpush.bf16.msra.mxu0 %v3210_v6 }
  0xe3   : > { %v1419_v33 = vmul.f32 %v3444_v31, %v1417_v26  ;;  %v1452_v46 = vadd.f32 %v1451_v38, %v1437_v27  ;;  %v2272_v29 = vor.u32 %v2271_v24, %v2267_v23 }
  0xe5   : > { %v1421_v36 = vadd.f32 %v3452_v37, %v1419_v33  ;;  %v1481_v41 = vpop.f32.mrf.mxu1  ;;  %v1453_v56 = vpop.f32.mrf.mxu3 }
  0xe6   : > { %v1392_v40 = vpop.f32.mrf.mxu0 }
  0xe7   : > { %v1423_v47 = vmax.f32 %v1421_v36, 0.0  ;;  %v1396_v48 = vadd.f32 %v1392_v40, %v1363_v39 }
  0xe8   : > { %2946 = vmatmul.msk.bf16.vlgmr.msrb.gmra.mxu1 %vm990_vm1, %v3518_v42 }
  0xe9   : > { %2887 = vst.msk [vmem:[%s3469_s25 + $0x10] sm:$0xff] %vm1245_vm4, %v1423_v47  ;;  %v1418_v50 = vadd.f32 %v1414_v22, %v1396_v48  ;;  %2288 = vmatpush.bf16.msrb.mxu1 %v3240_v13 }
  0xea   : > { %v1439_v51 = vpop.f32.mrf.mxu2  ;;  %2950 = vmatmul.msk.bf16.vlgmr.msrb.gmra.mxu3 %vm990_vm1, %v3421_v62 }
  0xeb   : > { %v1420_v54 = vmul.f32 %v3444_v31, %v1418_v50  ;;  %2335 = vmatpush.bf16.msrb.mxu3 %v3213_v7  ;;  %v1454_v12 = vadd.f32 %v1453_v56, %v1439_v51 }
  0xed   : > { %v1422_v55 = vadd.f32 %v3452_v37, %v1420_v54  ;;  %v1483_v58 = vpop.f32.mrf.mxu1  ;;  %v1513_v1 = vpop.f32.mrf.mxu3 }
  0xee   : > { %v1465_v57 = vpop.f32.mrf.mxu0 }
  0xef   : > { %v1424_v61 = vmax.f32 %v1422_v55, 0.0  ;;  %2949 = vmatmul.msk.bf16.vlgmr.msrb.gmra.mxu2 %vm990_vm1, %v3447_v35  ;;  %v1470_v63 = vadd.f32 %v1465_v57, %v1452_v46  ;;  %v946_v35 = vld [vmem:[%s892_s16 + $0x8] sm:$0x1] }
  0xf0   : > { %2310 = vmatpush.bf16.msrb.mxu2 %v3268_v30  ;;  %v2265_v10 = vunpack.c.l.b16 %v946_v35  ;;  %v2990_v35 = vld [vmem:[%s905_s22] sm:$0xff] }
  0xf1   : > { %2888 = vst.msk [vmem:[%s3469_s25 + $0x18] sm:$0xff] %vm1245_vm4, %v1424_v61  ;;  %2945 = vmatmul.msk.bf16.vlgmr.msrb.gmra.mxu0 %vm990_vm1, %v3530_v59  ;;  %v1486_v34 = vadd.f32 %v1481_v41, %v1470_v63 }
  0xf2   : > { %v1497_v0 = vpop.f32.mrf.mxu2  ;;  %2255 = vmatpush.bf16.msrb.mxu0 %v3222_v9  ;;  %v2266_v16 = vpack.c.b16 %v2265_v10, %v2265_v10 }
  0xf3   : > { %v1502_v49 = vadd.f32 %v1497_v0, %v1486_v34 }
  0xf4   : > { %v2274_v25 = vshll.u32 %v2266_v16, 16 }
  0xf5   : > { %v1570_v5 = vpop.f32.mrf.mxu1  ;;  %v1515_v7 = vpop.f32.mrf.mxu3  ;;  %v1518_v19 = vadd.f32 %v1513_v1, %v1502_v49  ;;  %v2449_v49 = vshll.u32 %v2990_v35, 16 }
  0xf6   : > { %v1467_v4 = vpop.f32.mrf.mxu0  ;;  %v2276_v32 = vrot.slane %v2274_v25, 1 }
  0xf7   : > { %v1471_v14 = vadd.f32 %v1467_v4, %v1454_v12 }
  0xf8   : > { %2952 = vmatmul.msk.bf16.vlgmr.msra.gmra.mxu1 %vm990_vm1, %v3502_v20  ;;  %v2277_v40 = vsel %vm977_vm3, %v2272_v29, %v2276_v32 }
  0xf9   : > { %2363 = vmatpush.bf16.msra.mxu1 %v3210_v6  ;;  %v1487_v18 = vadd.f32 %v1483_v58, %v1471_v14 }
  0xfa   : > { %v1499_v62 = vpop.f32.mrf.mxu2  ;;  %2954 = vmatmul.msk.bf16.vlgmr.msra.gmra.mxu3 %vm990_vm1, %v3518_v42 }
  0xfb   : > { %v1503_v27 = vadd.f32 %v1499_v62, %v1487_v18  ;;  %2395 = vmatpush.bf16.msra.mxu3 %v3232_v11  ;;  %v2451_v18 = vrot.slane %v2449_v49, 1 }
  0xfd   : > { %v1572_v22 = vpop.f32.mrf.mxu1  ;;  %v1617_v36 = vpop.f32.mrf.mxu3  ;;  %v1519_v38 = vadd.f32 %v1515_v7, %v1503_v27  ;;  %v2447_v7 = vshrl.u32 %v2990_v35, 16 }
  0xfe   : > { %v1537_v21 = vpop.f32.mrf.mxu0 }
  0xff   : > { %v1542_v26 = vadd.f32 %v1537_v21, %v1518_v19  ;;  %2953 = vmatmul.msk.bf16.vlgmr.msra.gmra.mxu2 %vm990_vm1, %v3530_v59  ;;  %v2452_v27 = vor.u32 %v2451_v18, %v2447_v7 }
 0x100   : > { %2379 = vmatpush.bf16.msra.mxu2 %v3196_v3 }
 0x101   : > { %2951 = vmatmul.msk.bf16.vlgmr.msra.gmra.mxu0 %vm990_vm1, %v3481_v60  ;;  %v1575_v6 = vadd.f32 %v1570_v5, %v1542_v26 }
 0x102   : > { %v1592_v28 = vpop.f32.mrf.mxu2  ;;  %2349 = vmatpush.bf16.msra.mxu0 %v3193_v2  ;;  %v2298_v2 = vrot.slane %v2266_v16, 1 }
 0x103   : > { %v1597_v33 = vadd.f32 %v1592_v28, %v1575_v6 }
 0x104   : > { %v3572_v50 = vsel %vm1031_vm2, %v2297_v44, %v2298_v2 }
 0x105   : > { %v1599_v3 = vmul.f32 %v3444_v31, %v1597_v33  ;;  %v1645_v60 = vpop.f32.mrf.mxu1  ;;  %v1619_v51 = vpop.f32.mrf.mxu3  ;;  %v2477_v33 = vrot.slane %v2990_v35, 1 }
 0x106   : > { %v1539_v39 = vpop.f32.mrf.mxu0 }
 0x107   : > { %v1601_v41 = vadd.f32 %v3452_v37, %v1599_v3  ;;  %v1543_v43 = vadd.f32 %v1539_v39, %v1519_v38 }
 0x108   : > { %2960 = vmatmul.msk.bf16.vlgmr.msrb.gmra.mxu1 %vm990_vm1, %v2277_v40 }
 0x109   : > { %v1603_v45 = vmax.f32 %v1601_v41, 0.0  ;;  %v1576_v47 = vadd.f32 %v1572_v22, %v1543_v43  ;;  %2435 = vmatpush.bf16.msrb.mxu1 %v3222_v9 }
 0x10a   : > { %v1594_v11 = vpop.f32.mrf.mxu2  ;;  %2964 = vmatmul.msk.bf16.vlgmr.msrb.gmra.mxu3 %vm990_vm1, %v3530_v59  ;;  %v949_v59 = vld [vmem:[%s905_s22 + $0x8] sm:$0x1] }
 0x10b   : > { %2902 = vst.msk [vmem:[%s3469_s25 + $0x20] sm:$0xff] %vm1245_vm4, %v1603_v45  ;;  %v1598_v48 = vadd.f32 %v1594_v11, %v1576_v47  ;;  %2490 = vmatpush.bf16.msrb.mxu3 %v3268_v30  ;;  %v2445_v10 = vunpack.c.l.b16 %v949_v59 }
 0x10d   : > { %v1600_v52 = vmul.f32 %v3444_v31, %v1598_v48  ;;  %v1647_v54 = vpop.f32.mrf.mxu1  ;;  %v1677_v58 = vpop.f32.mrf.mxu3  ;;  %v2446_v16 = vpack.c.b16 %v2445_v10, %v2445_v10 }
 0x10e   : > { %v1631_v53 = vpop.f32.mrf.mxu0 }
 0x10f   : > { %v1602_v55 = vadd.f32 %v3452_v37, %v1600_v52  ;;  %2961 = vmatmul.msk.bf16.vlgmr.msrb.gmra.mxu2 %vm990_vm1, %v3572_v50  ;;  %v1632_v56 = vadd.f32 %v1631_v53, %v1617_v36  ;;  %v2454_v19 = vshll.u32 %v2446_v16, 16  ;;  %v2478_v36 = vrot.slane %v2446_v16, 1 }
 0x110   : > { %2468 = vmatpush.bf16.msrb.mxu2 %v3240_v13 }
 0x111   : > { %v1604_v9 = vmax.f32 %v1602_v55, 0.0  ;;  %2959 = vmatmul.msk.bf16.vlgmr.msrb.gmra.mxu0 %vm990_vm1, %v3546_v8  ;;  %v1650_v46 = vadd.f32 %v1645_v60, %v1632_v56  ;;  %v2479_v43 = vsel %vm1031_vm2, %v2477_v33, %v2478_v36 }
 0x112   : > { %v1661_v57 = vpop.f32.mrf.mxu2  ;;  %2411 = vmatpush.bf16.msrb.mxu0 %v3247_v15 }
 0x113   : > { %2903 = vst.msk [vmem:[%s3469_s25 + $0x28] sm:$0xff] %vm1245_vm4, %v1604_v9  ;;  %v1666_v63 = vadd.f32 %v1661_v57, %v1650_v46 }
 0x115   : > { %v1717_v61 = vpop.f32.mrf.mxu1  ;;  %v1679_v1 = vpop.f32.mrf.mxu3  ;;  %v1682_v30 = vadd.f32 %v1677_v58, %v1666_v63 }
 0x116   : > { %v1633_v13 = vpop.f32.mrf.mxu0 }
 0x117   : > { %v1634_v0 = vadd.f32 %v1633_v13, %v1619_v51 }
 0x118   : > { %2966 = vmatmul.msk.bf16.vlgmr.msra.gmra.mxu1 %vm990_vm1, %v3518_v42 }
 0x119   : > { %v1651_v34 = vadd.f32 %v1647_v54, %v1634_v0 }
 0x11a   : > { %v1663_v15 = vpop.f32.mrf.mxu2  ;;  %2968 = vmatmul.msk.bf16.vlgmr.msra.gmra.mxu3 %vm990_vm1, %v2277_v40 }
 0x11b   : > { %v1667_v14 = vadd.f32 %v1663_v15, %v1651_v34 }
 0x11d   : > { %v1719_v5 = vpop.f32.mrf.mxu1  ;;  %v1772_v21 = vpop.f32.mrf.mxu3  ;;  %v1683_v22 = vadd.f32 %v1679_v1, %v1667_v14 }
 0x11e   : > { %v1693_v4 = vpop.f32.mrf.mxu0 }
 0x11f   : > { %v1698_v12 = vadd.f32 %v1693_v4, %v1682_v30  ;;  %2967 = vmatmul.msk.bf16.vlgmr.msra.gmra.mxu2 %vm990_vm1, %v3546_v8 }
 0x121   : > { %2965 = vmatmul.msk.bf16.vlgmr.msra.gmra.mxu0 %vm990_vm1, %v3502_v20  ;;  %v1722_v62 = vadd.f32 %v1717_v61, %v1698_v12  ;;  %v2456_v20 = vrot.slane %v2454_v19, 1 }
 0x122   : > { %v1750_v42 = vpop.f32.mrf.mxu2 }
 0x123   : > { %v1755_v17 = vadd.f32 %v1750_v42, %v1722_v62  ;;  %v2457_v38 = vsel %vm977_vm3, %v2452_v27, %v2456_v20 }
 0x125   : > { %v1777_v23 = vadd.f32 %v1772_v21, %v1755_v17  ;;  %v1811_v8 = vpop.f32.mrf.mxu1  ;;  %v1774_v39 = vpop.f32.mrf.mxu3 }
 0x126   : > { %v1695_v24 = vpop.f32.mrf.mxu0 }
 0x127   : > { %v1699_v25 = vadd.f32 %v1695_v24, %v1683_v22  ;;  %v1779_v26 = vmul.f32 %v3444_v31, %v1777_v23 }
 0x128   : > { %2974 = vmatmul.msk.bf16.vlgmr.msrb.gmra.mxu1 %vm990_vm1, %v2990_v35 }
 0x129   : > { %v1723_v6 = vadd.f32 %v1719_v5, %v1699_v25  ;;  %v1781_v28 = vadd.f32 %v3452_v37, %v1779_v26 }
 0x12a   : > { %v1752_v29 = vpop.f32.mrf.mxu2  ;;  %2976 = vmatmul.msk.bf16.vlgmr.msrb.gmra.mxu3 %vm990_vm1, %v2479_v43 }
 0x12b   : > { %v1756_v32 = vadd.f32 %v1752_v29, %v1723_v6  ;;  %v1783_v3 = vmax.f32 %v1781_v28, 0.0 }
 0x12d   : > { %2917 = vst.msk [vmem:[%s3469_s25 + $0x30] sm:$0xff] %vm1245_vm4, %v1783_v3  ;;  %v1778_v60 = vadd.f32 %v1774_v39, %v1756_v32  ;;  %v1813_v41 = vpop.f32.mrf.mxu1  ;;  %v1841_v11 = vpop.f32.mrf.mxu3 }
 0x12e   : > { %v1797_v40 = vpop.f32.mrf.mxu0 }
 0x12f   : > { %2975 = vmatmul.msk.bf16.vlgmr.msrb.gmra.mxu2 %vm990_vm1, %v2457_v38  ;;  %v1780_v44 = vmul.f32 %v3444_v31, %v1778_v60  ;;  %v1812_v52 = vadd.f32 %v1811_v8, %v1797_v40 }
 0x131   : > { %2969 = vmatmul.msk.bf16.vlgmr.msrb.gmra.mxu0 %vm990_vm1, %v3572_v50  ;;  %v1782_v2 = vadd.f32 %v3452_v37, %v1780_v44 }
 0x132   : > { %v1825_v45 = vpop.f32.mrf.mxu2 }
 0x133   : > { %v1784_v47 = vmax.f32 %v1782_v2, 0.0  ;;  %v1830_v54 = vadd.f32 %v1825_v45, %v1812_v52 }
 0x135   : > { %2918 = vst.msk [vmem:[%s3469_s25 + $0x38] sm:$0xff] %vm1245_vm4, %v1784_v47  ;;  %v1873_v51 = vpop.f32.mrf.mxu1  ;;  %v1843_v55 = vpop.f32.mrf.mxu3  ;;  %v1846_v57 = vadd.f32 %v1841_v11, %v1830_v54 }
 0x136   : > { %v1799_v48 = vpop.f32.mrf.mxu0 }
 0x137   : > { %v1814_v58 = vadd.f32 %v1813_v41, %v1799_v48 }
 0x13a   : > { %v1827_v53 = vpop.f32.mrf.mxu2 }
 0x13b   : > { %v1831_v13 = vadd.f32 %v1827_v53, %v1814_v58 }
 0x13d   : > { %v1875_v56 = vpop.f32.mrf.mxu1  ;;  %v1930_v61 = vpop.f32.mrf.mxu3  ;;  %v1847_v59 = vadd.f32 %v1843_v55, %v1831_v13 }
 0x13e   : > { %v1857_v9 = vpop.f32.mrf.mxu0 }
 0x13f   : > { %v1862_v50 = vadd.f32 %v1857_v9, %v1846_v57 }
 0x141   : > { %v1878_v63 = vadd.f32 %v1873_v51, %v1862_v50 }
 0x142   : > { %v1897_v46 = vpop.f32.mrf.mxu2 }
 0x143   : > { %v1902_v35 = vadd.f32 %v1897_v46, %v1878_v63 }
 0x145   : > { %v1977_v15 = vpop.f32.mrf.mxu1  ;;  %v1932_v30 = vpop.f32.mrf.mxu3  ;;  %v1935_v5 = vadd.f32 %v1930_v61, %v1902_v35 }
 0x146   : > { %v1859_v0 = vpop.f32.mrf.mxu0 }
 0x147   : > { %v1863_v1 = vadd.f32 %v1859_v0, %v1847_v59 }
 0x149   : > { %v1879_v4 = vadd.f32 %v1875_v56, %v1863_v1 }
 0x14a   : > { %v1899_v34 = vpop.f32.mrf.mxu2 }
 0x14b   : > { %v1903_v14 = vadd.f32 %v1899_v34, %v1879_v4 }
 0x14d   : > { %v1979_v12 = vpop.f32.mrf.mxu1  ;;  %v2005_v7 = vpop.f32.mrf.mxu3  ;;  %v1936_v18 = vadd.f32 %v1932_v30, %v1903_v14 }
 0x14e   : > { %v1952_v10 = vpop.f32.mrf.mxu0 }
 0x14f   : > { %v1957_v49 = vadd.f32 %v1952_v10, %v1935_v5 }
 0x151   : > { %v1959_v62 = vmul.f32 %v3444_v31, %v1957_v49 }
 0x152   : > { %v1991_v42 = vpop.f32.mrf.mxu2 }
 0x153   : > { %v1961_v16 = vadd.f32 %v3452_v37, %v1959_v62  ;;  %v1992_v8 = vadd.f32 %v1991_v42, %v1977_v15 }
 0x155   : > { %v1963_v17 = vmax.f32 %v1961_v16, 0.0  ;;  %v2037_v21 = vpop.f32.mrf.mxu1  ;;  %v2007_v27 = vpop.f32.mrf.mxu3  ;;  %v2010_v28 = vadd.f32 %v2005_v7, %v1992_v8 }
 0x156   : > { %v1954_v19 = vpop.f32.mrf.mxu0 }
 0x157   : > { %2932 = vst.msk [vmem:[%s3469_s25 + $0x40] sm:$0xff] %vm1245_vm4, %v1963_v17  ;;  %v1958_v22 = vadd.f32 %v1954_v19, %v1936_v18 }
 0x159   : > { %v1960_v23 = vmul.f32 %v3444_v31, %v1958_v22 }
 0x15a   : > { %v1993_v24 = vpop.f32.mrf.mxu2 }
 0x15b   : > { %v1962_v25 = vadd.f32 %v3452_v37, %v1960_v23  ;;  %v1994_v33 = vadd.f32 %v1993_v24, %v1979_v12 }
 0x15d   : > { %v1964_v26 = vmax.f32 %v1962_v25, 0.0  ;;  %v2039_v6 = vpop.f32.mrf.mxu1  ;;  %v2077_v36 = vpop.f32.mrf.mxu3  ;;  %v2011_v60 = vadd.f32 %v2007_v27, %v1994_v33 }
 0x15e   : > { %v2021_v20 = vpop.f32.mrf.mxu0 }
 0x15f   : > { %2933 = vst.msk [vmem:[%s3469_s25 + $0x48] sm:$0xff] %vm1245_vm4, %v1964_v26  ;;  %v2026_v29 = vadd.f32 %v2021_v20, %v2010_v28 }
 0x161   : > { %v2042_v3 = vadd.f32 %v2037_v21, %v2026_v29 }
 0x162   : > { %v2053_v32 = vpop.f32.mrf.mxu2 }
 0x163   : > { %v2058_v40 = vadd.f32 %v2053_v32, %v2042_v3 }
 0x165   : > { %v2132_v39 = vpop.f32.mrf.mxu1  ;;  %v2079_v44 = vpop.f32.mrf.mxu3  ;;  %v2082_v45 = vadd.f32 %v2077_v36, %v2058_v40 }
 0x166   : > { %v2023_v38 = vpop.f32.mrf.mxu0 }
 0x167   : > { %v2027_v41 = vadd.f32 %v2023_v38, %v2011_v60 }
 0x169   : > { %v2043_v2 = vadd.f32 %v2039_v6, %v2027_v41 }
 0x16a   : > { %v2055_v43 = vpop.f32.mrf.mxu2 }
 0x16b   : > { %v2059_v51 = vadd.f32 %v2055_v43, %v2043_v2 }
 0x16d   : > { %v2134_v11 = vpop.f32.mrf.mxu1  ;;  %v2171_v9 = vpop.f32.mrf.mxu3  ;;  %v2083_v56 = vadd.f32 %v2079_v44, %v2059_v51 }
 0x16e   : > { %v2110_v47 = vpop.f32.mrf.mxu0 }
 0x16f   : > { %v2115_v48 = vadd.f32 %v2110_v47, %v2082_v45 }
 0x171   : > { %v2137_v52 = vadd.f32 %v2132_v39, %v2115_v48 }
 0x172   : > { %v2157_v53 = vpop.f32.mrf.mxu2 }
 0x173   : > { %v2139_v54 = vmul.f32 %v3444_v31, %v2137_v52  ;;  %v2172_v1 = vadd.f32 %v2171_v9, %v2157_v53 }
 0x175   : > { %v2141_v55 = vadd.f32 %v3452_v37, %v2139_v54  ;;  %v2201_v58 = vpop.f32.mrf.mxu1  ;;  %v2173_v15 = vpop.f32.mrf.mxu3 }
 0x176   : > { %v2112_v57 = vpop.f32.mrf.mxu0 }
 0x177   : > { %v2143_v50 = vmax.f32 %v2141_v55, 0.0  ;;  %v2116_v46 = vadd.f32 %v2112_v57, %v2083_v56 }
 0x179   : > { %2947 = vst.msk [vmem:[%s3469_s25 + $0x50] sm:$0xff] %vm1245_vm4, %v2143_v50  ;;  %v2138_v13 = vadd.f32 %v2134_v11, %v2116_v46 }
 0x17a   : > { %v2159_v61 = vpop.f32.mrf.mxu2 }
 0x17b   : > { %v2140_v63 = vmul.f32 %v3444_v31, %v2138_v13  ;;  %v2174_v14 = vadd.f32 %v2173_v15, %v2159_v61 }
 0x17d   : > { %v2142_v0 = vadd.f32 %v3452_v37, %v2140_v63  ;;  %v2203_v35 = vpop.f32.mrf.mxu1  ;;  %v2233_v5 = vpop.f32.mrf.mxu3 }
 0x17e   : > { %v2185_v59 = vpop.f32.mrf.mxu0 }
 0x17f   : > { %v2144_v34 = vmax.f32 %v2142_v0, 0.0  ;;  %v2190_v30 = vadd.f32 %v2185_v59, %v2172_v1 }
 0x181   : > { %2948 = vst.msk [vmem:[%s3469_s25 + $0x58] sm:$0xff] %vm1245_vm4, %v2144_v34  ;;  %v2206_v10 = vadd.f32 %v2201_v58, %v2190_v30 }
 0x182   : > { %v2217_v4 = vpop.f32.mrf.mxu2 }
 0x183   : > { %v2222_v62 = vadd.f32 %v2217_v4, %v2206_v10 }
 0x185   : > { %v2290_v49 = vpop.f32.mrf.mxu1  ;;  %v2235_v17 = vpop.f32.mrf.mxu3  ;;  %v2238_v18 = vadd.f32 %v2233_v5, %v2222_v62 }
 0x186   : > { %v2187_v12 = vpop.f32.mrf.mxu0 }
 0x187   : > { %v2191_v42 = vadd.f32 %v2187_v12, %v2174_v14 }
 0x189   : > { %v2207_v7 = vadd.f32 %v2203_v35, %v2191_v42 }
 0x18a   : > { %v2219_v16 = vpop.f32.mrf.mxu2 }
 0x18b   : > { %v2223_v23 = vadd.f32 %v2219_v16, %v2207_v7 }
 0x18d   : > { %v2292_v22 = vpop.f32.mrf.mxu1  ;;  %v2337_v26 = vpop.f32.mrf.mxu3  ;;  %v2239_v20 = vadd.f32 %v2235_v17, %v2223_v23 }
 0x18e   : > { %v2257_v19 = vpop.f32.mrf.mxu0 }
 0x18f   : > { %v2262_v21 = vadd.f32 %v2257_v19, %v2238_v18 }
 0x191   : > { %v2295_v24 = vadd.f32 %v2290_v49, %v2262_v21 }
 0x192   : > { %v2312_v8 = vpop.f32.mrf.mxu2 }
 0x193   : > { %v2317_v25 = vadd.f32 %v2312_v8, %v2295_v24 }
 0x195   : > { %v2319_v27 = vmul.f32 %v3444_v31, %v2317_v25  ;;  %v2365_v36 = vpop.f32.mrf.mxu1  ;;  %v2339_v39 = vpop.f32.mrf.mxu3 }
 0x196   : > { %v2259_v6 = vpop.f32.mrf.mxu0 }
 0x197   : > { %v2321_v28 = vadd.f32 %v3452_v37, %v2319_v27  ;;  %v2263_v29 = vadd.f32 %v2259_v6, %v2239_v20 }
 0x199   : > { %v2323_v32 = vmax.f32 %v2321_v28, 0.0  ;;  %v2296_v33 = vadd.f32 %v2292_v22, %v2263_v29 }
 0x19a   : > { %v2314_v3 = vpop.f32.mrf.mxu2 }
 0x19b   : > { %2962 = vst.msk [vmem:[%s3469_s25 + $0x60] sm:$0xff] %vm1245_vm4, %v2323_v32  ;;  %v2318_v38 = vadd.f32 %v2314_v3, %v2296_v33 }
 0x19d   : > { %v2320_v60 = vmul.f32 %v3444_v31, %v2318_v38  ;;  %v2367_v45 = vpop.f32.mrf.mxu1  ;;  %v2397_v47 = vpop.f32.mrf.mxu3 }
 0x19e   : > { %v2351_v40 = vpop.f32.mrf.mxu0 }
 0x19f   : > { %v2322_v41 = vadd.f32 %v3452_v37, %v2320_v60  ;;  %v2352_v44 = vadd.f32 %v2351_v40, %v2337_v26 }
 0x1a1   : > { %v2324_v43 = vmax.f32 %v2322_v41, 0.0  ;;  %v2370_v11 = vadd.f32 %v2365_v36, %v2352_v44 }
 0x1a2   : > { %v2381_v2 = vpop.f32.mrf.mxu2 }
 0x1a3   : > { %2963 = vst.msk [vmem:[%s3469_s25 + $0x68] sm:$0xff] %vm1245_vm4, %v2324_v43  ;;  %v2386_v51 = vadd.f32 %v2381_v2, %v2370_v11 }
 0x1a5   : > { %v2399_v54 = vpop.f32.mrf.mxu3  ;;  %v2402_v9 = vadd.f32 %v2397_v47, %v2386_v51  ;;  %v2437_v56 = vpop.f32.mrf.mxu1 }
 0x1a6   : > { %v2353_v48 = vpop.f32.mrf.mxu0 }
 0x1a7   : > { %v2354_v52 = vadd.f32 %v2353_v48, %v2339_v39 }
 0x1a9   : > { %v2371_v55 = vadd.f32 %v2367_v45, %v2354_v52 }
 0x1aa   : > { %v2383_v53 = vpop.f32.mrf.mxu2 }
 0x1ab   : > { %v2387_v50 = vadd.f32 %v2383_v53, %v2371_v55 }
 0x1ad   : > { %v2492_v63 = vpop.f32.mrf.mxu3  ;;  %v2403_v0 = vadd.f32 %v2399_v54, %v2387_v50  ;;  %v2439_v1 = vpop.f32.mrf.mxu1 }
 0x1ae   : > { %v2413_v57 = vpop.f32.mrf.mxu0 }
 0x1af   : > { %v2418_v58 = vadd.f32 %v2413_v57, %v2402_v9 }
 0x1b1   : > { %v2442_v46 = vadd.f32 %v2437_v56, %v2418_v58 }
 0x1b2   : > { %v2470_v13 = vpop.f32.mrf.mxu2 }
 0x1b3   : > { %v2475_v61 = vadd.f32 %v2470_v13, %v2442_v46 }
 0x1b5   : > { %v2497_v15 = vadd.f32 %v2492_v63, %v2475_v61  ;;  %v2494_v49 = vpop.f32.mrf.mxu3 }
 0x1b6   : > { %v2415_v59 = vpop.f32.mrf.mxu0 }
 0x1b7   : > { %v2419_v35 = vadd.f32 %v2415_v59, %v2403_v0  ;;  %v2499_v34 = vmul.f32 %v3444_v31, %v2497_v15 }
 0x1b9   : > { %v2443_v30 = vadd.f32 %v2439_v1, %v2419_v35  ;;  %v2501_v4 = vadd.f32 %v3452_v37, %v2499_v34 }
 0x1ba   : > { %v2472_v5 = vpop.f32.mrf.mxu2 }
 0x1bb   : > { %v2476_v10 = vadd.f32 %v2472_v5, %v2443_v30  ;;  %v2503_v12 = vmax.f32 %v2501_v4, 0.0 }
 0x1bd   : > { %2977 = vst.msk [vmem:[%s3469_s25 + $0x70] sm:$0xff] %vm1245_vm4, %v2503_v12  ;;  %v2498_v14 = vadd.f32 %v2494_v49, %v2476_v10 }
 0x1bf   : > { %v2500_v62 = vmul.f32 %v3444_v31, %v2498_v14 }
 0x1c1   : > { %v2502_v42 = vadd.f32 %v3452_v37, %v2500_v62 }
 0x1c3   : > { %v2504_v16 = vmax.f32 %v2502_v42, 0.0 }
 0x1c5   : > { %2978 = vst.msk [vmem:[%s3469_s25 + $0x78] sm:$0xff] %vm1245_vm4, %v2504_v16 }
 0x1c6 PF: > { %s23_s29 = sadd.s32 1, %s3082_s29   ;;  %s3678_s18 = sld [smem:[#allocation2_spill]] }
 0x1c7   : > { %p20_p3 = scmp.ge.s32.totalorder %s23_s29, 6   ;;  %s3679_s24 = sld [smem:[#allocation3_spill]] }
 0x1c8   : > { %s3680_s25 = smov %s3074_s27  ;;  %s3681_s26 = smov %s3078_s28 }
 0x1c9   :  { %22 = sbr.rel (!%p20_p3) target bundleno = 3 (0x3), region = 144 }
 0x1cc   : > { %s3682_s27 = smov %s3678_s18 }
 0x1cd   : > { %s3683_s28 = smov %s3679_s24 }

</bundles_post_ra>
